<compile_context>
chip_gen: v6e
topology: v6e:2x2x1
jax: 0.10.0
libtpu: 0.0.40
codegen_flags: <defaults>
</compile_context>

<pallas_src>
import math

import jax
import jax.numpy as jnp
from jax import lax
from jax.experimental import pallas as pl
from jax.experimental.pallas import tpu as pltpu

_EPS = 1e-5
_SLOPE = 0.2
_INV_SQRT2 = 1.0 / math.sqrt(2.0)


def _leaky(x):
    return jnp.where(x > 0, x, _SLOPE * x)


# ----------------------------- Pallas kernels ---------------------------------

def _make_stage1_kernel(H, W, Cin, normalize, downsample):
    """[norm1] -> LeakyReLU -> 3x3 conv (reflect pad) -> [avgpool].  One batch elem/step."""
    HW = H * W

    def kernel(*refs):
        it = iter(refs)
        xp_ref = next(it)                       # (1, H+2, W+2, Cin) reflect-padded x
        w1_ref = next(it)                       # (9, Cin, Cin)  per-tap weights
        b1_ref = next(it)                       # (1, Cin)
        g_ref = next(it) if normalize else None
        be_ref = next(it) if normalize else None
        pool_ref = next(it) if downsample else None
        out_ref = next(it)                      # (1, H1*W1, Cin)

        xp = xp_ref[0]                          # (H+2, W+2, Cin)
        if normalize:
            # InstanceNorm stats over the *unpadded* interior; the padded border holds
            # copies of interior pixels, so applying the same affine map is exact.
            intr = xp[1:H + 1, 1:W + 1, :].reshape(HW, Cin)
            mean = jnp.mean(intr, axis=0, keepdims=True)                    # (1, Cin)
            var = jnp.mean(jnp.square(intr - mean), axis=0, keepdims=True)  # (1, Cin)
            scale = g_ref[...] / jnp.sqrt(var + _EPS)
            shift = be_ref[...] - mean * scale
            xp = xp * scale.reshape(1, 1, Cin) + shift.reshape(1, 1, Cin)
        a = _leaky(xp)

        # 3x3 conv as 9 shifted-tap matmuls (reflection padding already in `a`).
        acc = None
        for k in range(9):
            dy, dx = k // 3, k % 3
            tap = a[dy:dy + H, dx:dx + W, :].reshape(HW, Cin)
            d = jnp.dot(tap, w1_ref[k], preferred_element_type=jnp.float32)
            acc = d if acc is None else acc + d
        y = acc + b1_ref[...]                   # (HW, Cin)

        if downsample:
            y = jnp.dot(pool_ref[...], y, preferred_element_type=jnp.float32)  # (HoWo, Cin)

        out_ref[0] = y.astype(out_ref.dtype)

    return kernel


def _make_stage2_kernel(H1, W1, Cin, Cout, normalize, downsample, learned_sc):
    """[norm2] -> LeakyReLU -> 3x3 conv + shortcut (+ pool) + add + /sqrt(2)."""
    HW1 = H1 * W1

    def kernel(*refs):
        it = iter(refs)
        hp_ref = next(it)                       # (1, H1+2, W1+2, Cin) padded intermediate
        x_ref = next(it)                        # (1, H*W, Cin) original-res input (flat)
        w2_ref = next(it)                       # (9, Cin, Cout)
        b2_ref = next(it)                       # (1, Cout)
        g_ref = next(it) if normalize else None
        be_ref = next(it) if normalize else None
        wsc_ref = next(it) if learned_sc else None
        pool_ref = next(it) if downsample else None
        out_ref = next(it)                      # (1, H1*W1, Cout)

        hp = hp_ref[0]                          # (H1+2, W1+2, Cin)
        if normalize:
            intr = hp[1:H1 + 1, 1:W1 + 1, :].reshape(HW1, Cin)
            mean = jnp.mean(intr, axis=0, keepdims=True)
            var = jnp.mean(jnp.square(intr - mean), axis=0, keepdims=True)
            scale = g_ref[...] / jnp.sqrt(var + _EPS)
            shift = be_ref[...] - mean * scale
            hp = hp * scale.reshape(1, 1, Cin) + shift.reshape(1, 1, Cin)
        a = _leaky(hp)

        acc = None
        for k in range(9):
            dy, dx = k // 3, k % 3
            tap = a[dy:dy + H1, dx:dx + W1, :].reshape(HW1, Cin)
            d = jnp.dot(tap, w2_ref[k], preferred_element_type=jnp.float32)
            acc = d if acc is None else acc + d
        res = acc + b2_ref[...]                 # (HW1, Cout)

        # Shortcut branch: [conv1x1] -> [avgpool].
        x = x_ref[0]                            # (H*W, Cin)
        if learned_sc:
            sc = jnp.dot(x, wsc_ref[...], preferred_element_type=jnp.float32)
        else:
            sc = x
        if downsample:
            sc = jnp.dot(pool_ref[...], sc, preferred_element_type=jnp.float32)

        out_ref[0] = ((sc + res) * _INV_SQRT2).astype(out_ref.dtype)

    return kernel


# ------------------------------ JAX glue --------------------------------------

def _full_spec(arr):
    zeros = (0,) * arr.ndim
    return pl.BlockSpec(arr.shape, lambda n, _z=zeros: _z)


def _avgpool2x2_matrix(H, W):
    """Linear map (HoWo, HW) implementing 2x2 average pooling on the flattened spatial dim."""
    Ho, Wo = H // 2, W // 2
    r = jnp.arange(Ho * Wo)
    ho, wo = r // Wo, r % Wo
    c = jnp.arange(H * W)
    h, w = c // W, c % W
    sel = ((h[None, :] // 2) == ho[:, None]) & ((w[None, :] // 2) == wo[:, None])
    return sel.astype(jnp.float32) * 0.25


def resblk_pallas(x_nchw, params, *, normalize=False, downsample=False):
    N, Cin, H, W = x_nchw.shape
    Cout = params["conv2_w"].shape[0]
    learned_sc = Cin != Cout
    H1, W1 = (H // 2, W // 2) if downsample else (H, W)
    f32 = jnp.float32

    x_nhwc = jnp.transpose(x_nchw, (0, 2, 3, 1)).astype(f32)
    x_flat = x_nhwc.reshape(N, H * W, Cin)
    x_pad = jnp.pad(x_nhwc, ((0, 0), (1, 1), (1, 1), (0, 0)), mode="reflect")

    # Conv weights as tap-major matmul slabs: OIHW -> (ky*3+kx, Cin, Cout).
    w1 = jnp.transpose(params["conv1_w"], (2, 3, 1, 0)).reshape(9, Cin, Cin).astype(f32)
    b1 = params["conv1_b"].reshape(1, Cin).astype(f32)
    w2 = jnp.transpose(params["conv2_w"], (2, 3, 1, 0)).reshape(9, Cin, Cout).astype(f32)
    b2 = params["conv2_b"].reshape(1, Cout).astype(f32)
    pool = _avgpool2x2_matrix(H, W) if downsample else None

    # ---------------- stage 1 ----------------
    s1_inputs = [x_pad, w1, b1]
    s1_specs = [pl.BlockSpec((1, H + 2, W + 2, Cin), lambda n: (n, 0, 0, 0)),
                _full_spec(w1), _full_spec(b1)]
    if normalize:
        g1 = params["norm1_g"].reshape(1, Cin).astype(f32)
        be1 = params["norm1_b"].reshape(1, Cin).astype(f32)
        s1_inputs += [g1, be1]
        s1_specs += [_full_spec(g1), _full_spec(be1)]
    if downsample:
        s1_inputs += [pool]
        s1_specs += [_full_spec(pool)]

    h1_flat = pl.pallas_call(
        _make_stage1_kernel(H, W, Cin, normalize, downsample),
        out_shape=jax.ShapeDtypeStruct((N, H1 * W1, Cin), f32),
        grid_spec=pltpu.PrefetchScalarGridSpec(
            num_scalar_prefetch=0,
            grid=(N,),
            in_specs=s1_specs,
            out_specs=pl.BlockSpec((1, H1 * W1, Cin), lambda n: (n, 0, 0)),
        ),
        compiler_params=pltpu.CompilerParams(dimension_semantics=("parallel",)),
    )(*s1_inputs)

    # Reflect halo for the second conv (pure data movement, done in plain JAX).
    h1_pad = jnp.pad(h1_flat.reshape(N, H1, W1, Cin),
                     ((0, 0), (1, 1), (1, 1), (0, 0)), mode="reflect")

    # ---------------- stage 2 ----------------
    s2_inputs = [h1_pad, x_flat, w2, b2]
    s2_specs = [pl.BlockSpec((1, H1 + 2, W1 + 2, Cin), lambda n: (n, 0, 0, 0)),
                pl.BlockSpec((1, H * W, Cin), lambda n: (n, 0, 0)),
                _full_spec(w2), _full_spec(b2)]
    if normalize:
        g2 = params["norm2_g"].reshape(1, Cin).astype(f32)
        be2 = params["norm2_b"].reshape(1, Cin).astype(f32)
        s2_inputs += [g2, be2]
        s2_specs += [_full_spec(g2), _full_spec(be2)]
    if learned_sc:
        wsc = jnp.transpose(params["sc_w"][:, :, 0, 0], (1, 0)).astype(f32)   # (Cin, Cout)
        s2_inputs += [wsc]
        s2_specs += [_full_spec(wsc)]
    if downsample:
        s2_inputs += [pool]
        s2_specs += [_full_spec(pool)]

    out_flat = pl.pallas_call(
        _make_stage2_kernel(H1, W1, Cin, Cout, normalize, downsample, learned_sc),
        out_shape=jax.ShapeDtypeStruct((N, H1 * W1, Cout), f32),
        grid_spec=pltpu.PrefetchScalarGridSpec(
            num_scalar_prefetch=0,
            grid=(N,),
            in_specs=s2_specs,
            out_specs=pl.BlockSpec((1, H1 * W1, Cout), lambda n: (n, 0, 0)),
        ),
        compiler_params=pltpu.CompilerParams(dimension_semantics=("parallel",)),
    )(*s2_inputs)

    return jnp.transpose(out_flat.reshape(N, H1, W1, Cout), (0, 3, 1, 2))


# --------------------------- pure-JAX reference --------------------------------

def _reflect_pad_nchw(t):
    return jnp.pad(t, ((0, 0), (0, 0), (1, 1), (1, 1)), mode="reflect")


def _conv_nchw(t, w, b=None):
    y = lax.conv_general_dilated(t, w, (1, 1), "VALID",
                                 dimension_numbers=("NCHW", "OIHW", "NCHW"))
    if b is not None:
        y = y + b[None, :, None, None]
    return y


def _instance_norm_nchw(t, gamma, beta, eps=_EPS):
    mean = jnp.mean(t, axis=(2, 3), keepdims=True)
    var = jnp.mean(jnp.square(t - mean), axis=(2, 3), keepdims=True)
    return (t - mean) / jnp.sqrt(var + eps) * gamma[None, :, None, None] \
        + beta[None, :, None, None]


def _avgpool2_nchw(t):
    N, C, H, W = t.shape
    return t.reshape(N, C, H // 2, 2, W // 2, 2).mean(axis=(3, 5))


def resblk_reference(x, p, *, normalize=False, downsample=False):
    Cin = x.shape[1]
    Cout = p["conv2_w"].shape[0]
    learned_sc = Cin != Cout
    h = x
    if normalize:
        h = _instance_norm_nchw(h, p["norm1_g"], p["norm1_b"])
    h = _leaky(h)
    h = _conv_nchw(_reflect_pad_nchw(h), p["conv1_w"], p["conv1_b"])
    if downsample:
        h = _avgpool2_nchw(h)
    if normalize:
        h = _instance_norm_nchw(h, p["norm2_g"], p["norm2_b"])
    h = _leaky(h)
    h = _conv_nchw(_reflect_pad_nchw(h), p["conv2_w"], p["conv2_b"])
    s = x
    if learned_sc:
        s = _conv_nchw(s, p["sc_w"])
    if downsample:
        s = _avgpool2_nchw(s)
    return (s + h) * _INV_SQRT2


# --------------------------------- main ----------------------------------------

def _init_params(key, cin, cout):
    ks = jax.random.split(key, 10)

    def nrm(k, shape, s=0.1):
        return s * jax.random.normal(k, shape, jnp.float32)

    p = {
        "conv1_w": nrm(ks[0], (cin, cin, 3, 3)),
        "conv1_b": nrm(ks[1], (cin,), 0.05),
        "conv2_w": nrm(ks[2], (cout, cin, 3, 3)),
        "conv2_b": nrm(ks[3], (cout,), 0.05),
        "norm1_g": 1.0 + nrm(ks[4], (cin,)),
        "norm1_b": nrm(ks[5], (cin,)),
        "norm2_g": 1.0 + nrm(ks[6], (cin,)),
        "norm2_b": nrm(ks[7], (cin,)),
    }
    if cin != cout:
        p["sc_w"] = nrm(ks[8], (cout, cin, 1, 1))   # conv1x1, bias=False
    return p


if __name__ == "__main__":
    key = jax.random.PRNGKey(0)
    kx, kp1, kp2 = jax.random.split(key, 3)

    N, H, W = 2, 16, 16

    # Config A: dim_in != dim_out (learned shortcut), InstanceNorm + downsample.
    Cin_a, Cout_a = 4, 8
    x_a = jax.random.normal(kx, (N, Cin_a, H, W), jnp.float32)
    p_a = _init_params(kp1, Cin_a, Cout_a)
    out_a = jax.block_until_ready(resblk_pallas(x_a, p_a, normalize=True, downsample=True))
    ref_a = jax.block_until_ready(resblk_reference(x_a, p_a, normalize=True, downsample=True))
    assert out_a.shape == (N, Cout_a, H // 2, W // 2), out_a.shape
    err_a = float(jnp.max(jnp.abs(out_a - ref_a)))
    assert jnp.allclose(out_a, ref_a, rtol=3e-3, atol=3e-3), f"config A max abs err = {err_a}"

    # Config B: module defaults (dim_in == dim_out, no norm, no downsample).
    Cin_b = Cout_b = 4
    x_b = jax.random.normal(kx, (N, Cin_b, H, W), jnp.float32)
    p_b = _init_params(kp2, Cin_b, Cout_b)
    out_b = jax.block_until_ready(resblk_pallas(x_b, p_b, normalize=False, downsample=False))
    ref_b = jax.block_until_ready(resblk_reference(x_b, p_b, normalize=False, downsample=False))
    assert out_b.shape == (N, Cout_b, H, W), out_b.shape
    err_b = float(jnp.max(jnp.abs(out_b - ref_b)))
    assert jnp.allclose(out_b, ref_b, rtol=3e-3, atol=3e-3), f"config B max abs err = {err_b}"

    print("KERNEL_OK")
</pallas_src>

<mosaic_0001>
module attributes {stable_mosaic.version = 11 : i64} {
  func.func @kernel(%arg0: i32, %arg1: memref<1x18x18x4xf32, #tpu.memory_space<vmem>>, %arg2: memref<9x4x4xf32, #tpu.memory_space<vmem>>, %arg3: memref<1x4xf32, #tpu.memory_space<vmem>>, %arg4: memref<1x4xf32, #tpu.memory_space<vmem>>, %arg5: memref<1x4xf32, #tpu.memory_space<vmem>>, %arg6: memref<64x256xf32, #tpu.memory_space<vmem>>, %arg7: memref<1x64x4xf32, #tpu.memory_space<vmem>>) attributes {dimension_semantics = [#tpu.dimension_semantics<parallel>], iteration_bounds = array<i64: 2>, scalar_prefetch = 0 : i64, scratch_operands = 0 : i64, tpu.core_type = #tpu.core_type<tc>, window_params = [{transform_indices = @transform_0, window_bounds = array<i64: 1, 18, 18, 4>}, {pipeline_mode = #tpu.pipeline_mode<synchronous>, transform_indices = @transform_1, window_bounds = array<i64: 9, 4, 4>}, {pipeline_mode = #tpu.pipeline_mode<synchronous>, transform_indices = @transform_2, window_bounds = array<i64: 1, 4>}, {pipeline_mode = #tpu.pipeline_mode<synchronous>, transform_indices = @transform_3, window_bounds = array<i64: 1, 4>}, {pipeline_mode = #tpu.pipeline_mode<synchronous>, transform_indices = @transform_4, window_bounds = array<i64: 1, 4>}, {pipeline_mode = #tpu.pipeline_mode<synchronous>, transform_indices = @transform_5, window_bounds = array<i64: 64, 256>}, {transform_indices = @transform_6, window_bounds = array<i64: 1, 64, 4>}]} {
    %c0 = arith.constant 0 : index
    %c0_0 = arith.constant 0 : index
    %c0_1 = arith.constant 0 : index
    %c0_2 = arith.constant 0 : index
    %0 = vector.load %arg1[%c0, %c0_0, %c0_1, %c0_2] : memref<1x18x18x4xf32, #tpu.memory_space<vmem>>, vector<1x18x18x4xf32>
    %1 = vector.shape_cast %0 : vector<1x18x18x4xf32> to vector<18x18x4xf32>
    %2 = vector.extract_strided_slice %1 {offsets = [1, 1, 0], sizes = [16, 16, 4], strides = [1, 1, 1]} : vector<18x18x4xf32> to vector<16x16x4xf32>
    %3 = vector.shape_cast %2 : vector<16x16x4xf32> to vector<256x4xf32>
    %cst = arith.constant dense<0.000000e+00> : vector<4xf32>
    %4 = vector.multi_reduction <add>, %3, %cst [0] : vector<256x4xf32> to vector<4xf32>
    %5 = vector.shape_cast %4 : vector<4xf32> to vector<1x4xf32>
    %cst_3 = arith.constant 2.560000e+02 : f32
    %6 = vector.broadcast %cst_3 : f32 to vector<1x4xf32>
    %7 = arith.divf %5, %6 : vector<1x4xf32>
    %8 = vector.broadcast %7 : vector<1x4xf32> to vector<256x4xf32>
    %9 = arith.subf %3, %8 : vector<256x4xf32>
    %10 = arith.mulf %9, %9 : vector<256x4xf32>
    %cst_4 = arith.constant dense<0.000000e+00> : vector<4xf32>
    %11 = vector.multi_reduction <add>, %10, %cst_4 [0] : vector<256x4xf32> to vector<4xf32>
    %12 = vector.shape_cast %11 : vector<4xf32> to vector<1x4xf32>
    %cst_5 = arith.constant 2.560000e+02 : f32
    %13 = vector.broadcast %cst_5 : f32 to vector<1x4xf32>
    %14 = arith.divf %12, %13 : vector<1x4xf32>
    %c0_6 = arith.constant 0 : index
    %c0_7 = arith.constant 0 : index
    %15 = vector.load %arg4[%c0_6, %c0_7] : memref<1x4xf32, #tpu.memory_space<vmem>>, vector<1x4xf32>
    %cst_8 = arith.constant 9.99999974E-6 : f32
    %16 = vector.broadcast %cst_8 : f32 to vector<1x4xf32>
    %17 = arith.addf %14, %16 : vector<1x4xf32>
    %18 = math.sqrt %17 : vector<1x4xf32>
    %19 = arith.divf %15, %18 : vector<1x4xf32>
    %c0_9 = arith.constant 0 : index
    %c0_10 = arith.constant 0 : index
    %20 = vector.load %arg5[%c0_9, %c0_10] : memref<1x4xf32, #tpu.memory_space<vmem>>, vector<1x4xf32>
    %21 = arith.mulf %7, %19 : vector<1x4xf32>
    %22 = arith.subf %20, %21 : vector<1x4xf32>
    %23 = vector.shape_cast %19 : vector<1x4xf32> to vector<1x1x4xf32>
    %24 = vector.broadcast %23 : vector<1x1x4xf32> to vector<18x18x4xf32>
    %25 = arith.mulf %1, %24 : vector<18x18x4xf32>
    %26 = vector.shape_cast %22 : vector<1x4xf32> to vector<1x1x4xf32>
    %27 = vector.broadcast %26 : vector<1x1x4xf32> to vector<18x18x4xf32>
    %28 = arith.addf %25, %27 : vector<18x18x4xf32>
    %cst_11 = arith.constant 0.000000e+00 : f32
    %29 = vector.broadcast %cst_11 : f32 to vector<18x18x4xf32>
    %30 = arith.cmpf ogt, %28, %29 : vector<18x18x4xf32>
    %cst_12 = arith.constant 2.000000e-01 : f32
    %31 = vector.broadcast %cst_12 : f32 to vector<18x18x4xf32>
    %32 = arith.mulf %31, %28 : vector<18x18x4xf32>
    %33 = arith.select %30, %28, %32 : vector<18x18x4xi1>, vector<18x18x4xf32>
    %34 = vector.extract_strided_slice %33 {offsets = [0, 0, 0], sizes = [16, 16, 4], strides = [1, 1, 1]} : vector<18x18x4xf32> to vector<16x16x4xf32>
    %35 = vector.shape_cast %34 : vector<16x16x4xf32> to vector<256x4xf32>
    %c0_13 = arith.constant 0 : index
    %c0_14 = arith.constant 0 : index
    %c0_15 = arith.constant 0 : index
    %36 = vector.load %arg2[%c0_13, %c0_14, %c0_15] : memref<9x4x4xf32, #tpu.memory_space<vmem>>, vector<1x4x4xf32>
    %37 = vector.shape_cast %36 : vector<1x4x4xf32> to vector<4x4xf32>
    %cst_16 = arith.constant dense<0.000000e+00> : vector<256x4xf32>
    %38 = tpu.matmul %35, %37, %cst_16 {dimension_numbers = #tpu.dot_dimension_numbers<[1], [0], [0], [1], [0, 0, 1, 1], [], []>} : vector<256x4xf32>, vector<4x4xf32>, vector<256x4xf32> -> vector<256x4xf32>
    %39 = vector.extract_strided_slice %33 {offsets = [0, 1, 0], sizes = [16, 16, 4], strides = [1, 1, 1]} : vector<18x18x4xf32> to vector<16x16x4xf32>
    %40 = vector.shape_cast %39 : vector<16x16x4xf32> to vector<256x4xf32>
    %c1 = arith.constant 1 : index
    %c0_17 = arith.constant 0 : index
    %c0_18 = arith.constant 0 : index
    %41 = vector.load %arg2[%c1, %c0_17, %c0_18] : memref<9x4x4xf32, #tpu.memory_space<vmem>>, vector<1x4x4xf32>
    %42 = vector.shape_cast %41 : vector<1x4x4xf32> to vector<4x4xf32>
    %cst_19 = arith.constant dense<0.000000e+00> : vector<256x4xf32>
    %43 = tpu.matmul %40, %42, %cst_19 {dimension_numbers = #tpu.dot_dimension_numbers<[1], [0], [0], [1], [0, 0, 1, 1], [], []>} : vector<256x4xf32>, vector<4x4xf32>, vector<256x4xf32> -> vector<256x4xf32>
    %44 = arith.addf %38, %43 : vector<256x4xf32>
    %45 = vector.extract_strided_slice %33 {offsets = [0, 2, 0], sizes = [16, 16, 4], strides = [1, 1, 1]} : vector<18x18x4xf32> to vector<16x16x4xf32>
    %46 = vector.shape_cast %45 : vector<16x16x4xf32> to vector<256x4xf32>
    %c2 = arith.constant 2 : index
    %c0_20 = arith.constant 0 : index
    %c0_21 = arith.constant 0 : index
    %47 = vector.load %arg2[%c2, %c0_20, %c0_21] : memref<9x4x4xf32, #tpu.memory_space<vmem>>, vector<1x4x4xf32>
    %48 = vector.shape_cast %47 : vector<1x4x4xf32> to vector<4x4xf32>
    %cst_22 = arith.constant dense<0.000000e+00> : vector<256x4xf32>
    %49 = tpu.matmul %46, %48, %cst_22 {dimension_numbers = #tpu.dot_dimension_numbers<[1], [0], [0], [1], [0, 0, 1, 1], [], []>} : vector<256x4xf32>, vector<4x4xf32>, vector<256x4xf32> -> vector<256x4xf32>
    %50 = arith.addf %44, %49 : vector<256x4xf32>
    %51 = vector.extract_strided_slice %33 {offsets = [1, 0, 0], sizes = [16, 16, 4], strides = [1, 1, 1]} : vector<18x18x4xf32> to vector<16x16x4xf32>
    %52 = vector.shape_cast %51 : vector<16x16x4xf32> to vector<256x4xf32>
    %c3 = arith.constant 3 : index
    %c0_23 = arith.constant 0 : index
    %c0_24 = arith.constant 0 : index
    %53 = vector.load %arg2[%c3, %c0_23, %c0_24] : memref<9x4x4xf32, #tpu.memory_space<vmem>>, vector<1x4x4xf32>
    %54 = vector.shape_cast %53 : vector<1x4x4xf32> to vector<4x4xf32>
    %cst_25 = arith.constant dense<0.000000e+00> : vector<256x4xf32>
    %55 = tpu.matmul %52, %54, %cst_25 {dimension_numbers = #tpu.dot_dimension_numbers<[1], [0], [0], [1], [0, 0, 1, 1], [], []>} : vector<256x4xf32>, vector<4x4xf32>, vector<256x4xf32> -> vector<256x4xf32>
    %56 = arith.addf %50, %55 : vector<256x4xf32>
    %57 = vector.extract_strided_slice %33 {offsets = [1, 1, 0], sizes = [16, 16, 4], strides = [1, 1, 1]} : vector<18x18x4xf32> to vector<16x16x4xf32>
    %58 = vector.shape_cast %57 : vector<16x16x4xf32> to vector<256x4xf32>
    %c4 = arith.constant 4 : index
    %c0_26 = arith.constant 0 : index
    %c0_27 = arith.constant 0 : index
    %59 = vector.load %arg2[%c4, %c0_26, %c0_27] : memref<9x4x4xf32, #tpu.memory_space<vmem>>, vector<1x4x4xf32>
    %60 = vector.shape_cast %59 : vector<1x4x4xf32> to vector<4x4xf32>
    %cst_28 = arith.constant dense<0.000000e+00> : vector<256x4xf32>
    %61 = tpu.matmul %58, %60, %cst_28 {dimension_numbers = #tpu.dot_dimension_numbers<[1], [0], [0], [1], [0, 0, 1, 1], [], []>} : vector<256x4xf32>, vector<4x4xf32>, vector<256x4xf32> -> vector<256x4xf32>
    %62 = arith.addf %56, %61 : vector<256x4xf32>
    %63 = vector.extract_strided_slice %33 {offsets = [1, 2, 0], sizes = [16, 16, 4], strides = [1, 1, 1]} : vector<18x18x4xf32> to vector<16x16x4xf32>
    %64 = vector.shape_cast %63 : vector<16x16x4xf32> to vector<256x4xf32>
    %c5 = arith.constant 5 : index
    %c0_29 = arith.constant 0 : index
    %c0_30 = arith.constant 0 : index
    %65 = vector.load %arg2[%c5, %c0_29, %c0_30] : memref<9x4x4xf32, #tpu.memory_space<vmem>>, vector<1x4x4xf32>
    %66 = vector.shape_cast %65 : vector<1x4x4xf32> to vector<4x4xf32>
    %cst_31 = arith.constant dense<0.000000e+00> : vector<256x4xf32>
    %67 = tpu.matmul %64, %66, %cst_31 {dimension_numbers = #tpu.dot_dimension_numbers<[1], [0], [0], [1], [0, 0, 1, 1], [], []>} : vector<256x4xf32>, vector<4x4xf32>, vector<256x4xf32> -> vector<256x4xf32>
    %68 = arith.addf %62, %67 : vector<256x4xf32>
    %69 = vector.extract_strided_slice %33 {offsets = [2, 0, 0], sizes = [16, 16, 4], strides = [1, 1, 1]} : vector<18x18x4xf32> to vector<16x16x4xf32>
    %70 = vector.shape_cast %69 : vector<16x16x4xf32> to vector<256x4xf32>
    %c6 = arith.constant 6 : index
    %c0_32 = arith.constant 0 : index
    %c0_33 = arith.constant 0 : index
    %71 = vector.load %arg2[%c6, %c0_32, %c0_33] : memref<9x4x4xf32, #tpu.memory_space<vmem>>, vector<1x4x4xf32>
    %72 = vector.shape_cast %71 : vector<1x4x4xf32> to vector<4x4xf32>
    %cst_34 = arith.constant dense<0.000000e+00> : vector<256x4xf32>
    %73 = tpu.matmul %70, %72, %cst_34 {dimension_numbers = #tpu.dot_dimension_numbers<[1], [0], [0], [1], [0, 0, 1, 1], [], []>} : vector<256x4xf32>, vector<4x4xf32>, vector<256x4xf32> -> vector<256x4xf32>
    %74 = arith.addf %68, %73 : vector<256x4xf32>
    %75 = vector.extract_strided_slice %33 {offsets = [2, 1, 0], sizes = [16, 16, 4], strides = [1, 1, 1]} : vector<18x18x4xf32> to vector<16x16x4xf32>
    %76 = vector.shape_cast %75 : vector<16x16x4xf32> to vector<256x4xf32>
    %c7 = arith.constant 7 : index
    %c0_35 = arith.constant 0 : index
    %c0_36 = arith.constant 0 : index
    %77 = vector.load %arg2[%c7, %c0_35, %c0_36] : memref<9x4x4xf32, #tpu.memory_space<vmem>>, vector<1x4x4xf32>
    %78 = vector.shape_cast %77 : vector<1x4x4xf32> to vector<4x4xf32>
    %cst_37 = arith.constant dense<0.000000e+00> : vector<256x4xf32>
    %79 = tpu.matmul %76, %78, %cst_37 {dimension_numbers = #tpu.dot_dimension_numbers<[1], [0], [0], [1], [0, 0, 1, 1], [], []>} : vector<256x4xf32>, vector<4x4xf32>, vector<256x4xf32> -> vector<256x4xf32>
    %80 = arith.addf %74, %79 : vector<256x4xf32>
    %81 = vector.extract_strided_slice %33 {offsets = [2, 2, 0], sizes = [16, 16, 4], strides = [1, 1, 1]} : vector<18x18x4xf32> to vector<16x16x4xf32>
    %82 = vector.shape_cast %81 : vector<16x16x4xf32> to vector<256x4xf32>
    %c8 = arith.constant 8 : index
    %c0_38 = arith.constant 0 : index
    %c0_39 = arith.constant 0 : index
    %83 = vector.load %arg2[%c8, %c0_38, %c0_39] : memref<9x4x4xf32, #tpu.memory_space<vmem>>, vector<1x4x4xf32>
    %84 = vector.shape_cast %83 : vector<1x4x4xf32> to vector<4x4xf32>
    %cst_40 = arith.constant dense<0.000000e+00> : vector<256x4xf32>
    %85 = tpu.matmul %82, %84, %cst_40 {dimension_numbers = #tpu.dot_dimension_numbers<[1], [0], [0], [1], [0, 0, 1, 1], [], []>} : vector<256x4xf32>, vector<4x4xf32>, vector<256x4xf32> -> vector<256x4xf32>
    %86 = arith.addf %80, %85 : vector<256x4xf32>
    %c0_41 = arith.constant 0 : index
    %c0_42 = arith.constant 0 : index
    %87 = vector.load %arg3[%c0_41, %c0_42] : memref<1x4xf32, #tpu.memory_space<vmem>>, vector<1x4xf32>
    %88 = vector.broadcast %87 : vector<1x4xf32> to vector<256x4xf32>
    %89 = arith.addf %86, %88 : vector<256x4xf32>
    %c0_43 = arith.constant 0 : index
    %c0_44 = arith.constant 0 : index
    %90 = vector.load %arg6[%c0_43, %c0_44] : memref<64x256xf32, #tpu.memory_space<vmem>>, vector<64x256xf32>
    %cst_45 = arith.constant dense<0.000000e+00> : vector<64x4xf32>
    %91 = tpu.matmul %90, %89, %cst_45 {dimension_numbers = #tpu.dot_dimension_numbers<[1], [0], [0], [1], [0, 0, 1, 1], [], []>} : vector<64x256xf32>, vector<256x4xf32>, vector<64x4xf32> -> vector<64x4xf32>
    %c0_46 = arith.constant 0 : index
    %c0_47 = arith.constant 0 : index
    %c0_48 = arith.constant 0 : index
    %92 = vector.load %arg7[%c0_46, %c0_47, %c0_48] : memref<1x64x4xf32, #tpu.memory_space<vmem>>, vector<1x64x4xf32>
    %93 = vector.shape_cast %92 : vector<1x64x4xf32> to vector<64x4xf32>
    %94 = vector.shape_cast %91 : vector<64x4xf32> to vector<1x64x4xf32>
    tpu.vector_store %arg7[%c0_46, %c0_47, %c0_48], %94 {strides = array<i32>} : memref<1x64x4xf32, #tpu.memory_space<vmem>>, vector<1x64x4xf32>,
    return
  }
  func.func @transform_0(%arg0: i32) -> (i32, i32, i32, i32) {
    %c0_i32 = arith.constant 0 : i32
    %c0_i32_0 = arith.constant 0 : i32
    %c0_i32_1 = arith.constant 0 : i32
    %c0_i32_2 = arith.constant 0 : i32
    return %arg0, %c0_i32, %c0_i32_0, %c0_i32_1 : i32, i32, i32, i32
  }
  func.func @transform_1(%arg0: i32) -> (i32, i32, i32) {
    %c0_i32 = arith.constant 0 : i32
    %c0_i32_0 = arith.constant 0 : i32
    %c0_i32_1 = arith.constant 0 : i32
    %c0_i32_2 = arith.constant 0 : i32
    return %c0_i32, %c0_i32_0, %c0_i32_1 : i32, i32, i32
  }
  func.func @transform_2(%arg0: i32) -> (i32, i32) {
    %c0_i32 = arith.constant 0 : i32
    %c0_i32_0 = arith.constant 0 : i32
    %c0_i32_1 = arith.constant 0 : i32
    return %c0_i32, %c0_i32_0 : i32, i32
  }
  func.func @transform_3(%arg0: i32) -> (i32, i32) {
    %c0_i32 = arith.constant 0 : i32
    %c0_i32_0 = arith.constant 0 : i32
    %c0_i32_1 = arith.constant 0 : i32
    return %c0_i32, %c0_i32_0 : i32, i32
  }
  func.func @transform_4(%arg0: i32) -> (i32, i32) {
    %c0_i32 = arith.constant 0 : i32
    %c0_i32_0 = arith.constant 0 : i32
    %c0_i32_1 = arith.constant 0 : i32
    return %c0_i32, %c0_i32_0 : i32, i32
  }
  func.func @transform_5(%arg0: i32) -> (i32, i32) {
    %c0_i32 = arith.constant 0 : i32
    %c0_i32_0 = arith.constant 0 : i32
    %c0_i32_1 = arith.constant 0 : i32
    return %c0_i32, %c0_i32_0 : i32, i32
  }
  func.func @transform_6(%arg0: i32) -> (i32, i32, i32) {
    %c0_i32 = arith.constant 0 : i32
    %c0_i32_0 = arith.constant 0 : i32
    %c0_i32_1 = arith.constant 0 : i32
    return %arg0, %c0_i32, %c0_i32_0 : i32, i32, i32
  }
}

</mosaic_0001>

<bundles_post_ra>
// kernel: tpu_custom_call.1
= control target key start
LH: loop header
LB: loop body
LE: loop exit
PB: predicated region body
PF: predicated region fallthrough
CT: control target
= control target key end

     0   :  { %s5138_s21 = smov 0   ;;  %s7472_s0 = inlined_call_operand.vmem [shape: f32[2,18,18,4], index: 0, kind: input, shape index: {}]   ;;  %s7473_s1 = inlined_call_operand.vmem [shape: f32[9,4,4], index: 1, kind: input, shape index: {}]   ;;  %s7474_s2 = inlined_call_operand.vmem [shape: f32[1,4], index: 2, kind: input, shape index: {}]   ;;  %s7475_s3 = inlined_call_operand.vmem [shape: f32[1,4], index: 3, kind: input, shape index: {}]   ;;  %s7476_s4 = inlined_call_operand.vmem [shape: f32[1,4], index: 4, kind: input, shape index: {}]   ;;  %s7477_s5 = inlined_call_operand.vmem [shape: f32[64,256], index: 5, kind: input, shape index: {}]   ;;  %s7478_s6 = inlined_call_operand.vmem [shape: f32[2,64,4], index: 6, kind: output, shape index: {}]  }
   0x1 LB: > { %s3937_s22 = sadd.s32 4294967295, %s5101_s21   ;;  %p3941_p0 = scmp.ge.s32.totalorder %s5101_s21, 1  ;;  %s5101_s21 = sphi %s5138_s21, %s16_s21  }
   0x2   : > { %p212_p1 = scmp.lt.s32.totalorder %s5101_s21, 3 }
   0x4   : > { %p213_p2 = pnand %p3941_p0, %p212_p1 }
   0x6   : > { %216 = sbr.rel (%p213_p2) target bundleno = 1016 (0x3f8), region = 44 }
   0xb   : > { %v3945_v0 = vld [vmem:[%s7473_s1 + $0x4] sm:$0xf]  ;;  %vm1164_vm0 = vcmask 1043456   ;;  %p242_p3 = scmp.lt.s32.totalorder %s3937_s22, 1  ;;  %vm354_vm1 = vcmask 1046528   ;;  %vm467_vm2 = vcmask 31744  }
   0xc   : > { %4607 = vmatprep.subr.msk.mxu0 %vm1164_vm0, %v3945_v0  ;;  %5057 = vmatprep.subr.msk.mxu1 %vm1164_vm0, %v3945_v0 }
   0xd   : > { %4608 = vmatpush3.msk.msra.mxu0 %vm1164_vm0, %v3945_v0  ;;  %5058 = vmatpush3.msk.msra.mxu1 %vm1164_vm0, %v3945_v0  ;;  %s7789_s22 = smov (!%p242_p3, %s3937_s22), 1 }
   0xe   : > { %s5059_s25 = smul.u32 432, %s7789_s22  ;;  %s4253_s15 = sshll.u32 %s7789_s22, 6 }
   0xf   : > { %s7451_s18 = scalar_lea.vmem %s7478_s6, %s4253_s15 }
  0x10   : > { %s5159_s28 = scalar_lea.vmem %s7472_s0, %s5059_s25 }
  0x11   : > { %v5162_v1 = vld [vmem:[%s5159_s28 + $0x18] sm:$0xff]  ;;  %v5165_v2 = vld [vmem:[%s5159_s28 + $0x20] sm:$0xff]  ;;  %v5168_v3 = vld [vmem:[%s5159_s28 + $0x28] sm:$0x3] }
  0x12   : > { %v5171_v4 = vld [vmem:[%s5159_s28 + $0x30] sm:$0xff]  ;;  %v5174_v5 = vld [vmem:[%s5159_s28 + $0x38] sm:$0xff]  ;;  %v5177_v6 = vld [vmem:[%s5159_s28 + $0x40] sm:$0x3]  ;;  %v355_v7 = vrot.slane %v5162_v1, 1  ;;  %v356_v8 = vrot.slane %v5165_v2, 1 }
  0x13   : > { %v358_v9 = vrot.slane %v5168_v3, 1  ;;  %v360_v10 = vrot.slane %v5171_v4, 1  ;;  %v361_v11 = vrot.slane %v5174_v5, 1  ;;  %v5185_v12 = vld [vmem:[%s5159_s28 + $0x48] sm:$0xff]  ;;  %v5188_v13 = vld [vmem:[%s5159_s28 + $0x50] sm:$0xff]  ;;  %v363_v14 = vrot.slane %v5177_v6, 1 }
  0x14   : > { %7575 = vst [vmem:[#allocation2_spill] sm:$0xff] %v5185_v12  ;;  %7576 = vst [vmem:[#allocation3_spill] sm:$0xff] %v5188_v13  ;;  %v5192_v15 = vld [vmem:[%s5159_s28 + $0x58] sm:$0x3]  ;;  %v5195_v16 = vsel %vm354_vm1, %v355_v7, %v356_v8  ;;  %v365_v19 = vrot.slane %v5185_v12, 1  ;;  %v366_v20 = vrot.slane %v5188_v13, 1 }
  0x15   : > { %7577 = vst [vmem:[#allocation4_spill] sm:$0xff] %v5192_v15  ;;  %v5198_v17 = vsel %vm354_vm1, %v356_v8, %v358_v9  ;;  %v5201_v18 = vsel %vm354_vm1, %v360_v10, %v361_v11  ;;  %v5206_v21 = vld [vmem:[%s5159_s28 + $0x60] sm:$0xff]  ;;  %v5209_v22 = vld [vmem:[%s5159_s28 + $0x68] sm:$0xff]  ;;  %v5212_v23 = vsel %vm354_vm1, %v361_v11, %v363_v14  ;;  %v368_v24 = vrot.slane %v5192_v15, 1  ;;  %v5218_v26 = vld [vmem:[%s5159_s28 + $0x70] sm:$0x3] }
  0x16   : > { %7578 = vst [vmem:[#allocation5_spill] sm:$0xff] %v5206_v21  ;;  %7579 = vst [vmem:[#allocation6_spill] sm:$0xff] %v5209_v22  ;;  %v468_v25 = vsel %vm467_vm2, %v5195_v16, 0.0  ;;  %v469_v27 = vsel %vm467_vm2, %v5198_v17, 0.0  ;;  %v471_v28 = vsel %vm467_vm2, %v5201_v18, 0.0  ;;  %v5225_v29 = vsel %vm354_vm1, %v365_v19, %v366_v20  ;;  %v5230_v33 = vld [vmem:[%s5159_s28 + $0x78] sm:$0xff] }
  0x17   : > { %7580 = vst [vmem:[#allocation7_spill] sm:$0xff] %v5218_v26  ;;  %v370_v30 = vrot.slane %v5206_v21, 1  ;;  %v371_v31 = vrot.slane %v5209_v22, 1  ;;  %v470_v32 = vadd.f32 %v469_v27, %v468_v25  ;;  %7581 = vst [vmem:[#allocation8_spill] sm:$0xff] %v5230_v33  ;;  %v268_v34 = vld [vmem:[%s5159_s28 + $0x80] sm:$0xff]  ;;  %v473_v35 = vsel %vm467_vm2, %v5212_v23, 0.0 }
  0x18   : > { %v5236_v36 = vsel %vm354_vm1, %v366_v20, %v368_v24  ;;  %v373_v37 = vrot.slane %v5218_v26, 1  ;;  %v269_v39 = vld [vmem:[%s5159_s28 + $0x88] sm:$0x3]  ;;  %v475_v40 = vsel %vm467_vm2, %v5225_v29, 0.0  ;;  %v375_v42 = vrot.slane %v5230_v33, 1  ;;  %v270_v45 = vld [vmem:[%s5159_s28 + $0x90] sm:$0xff] }
  0x19   : > { %v472_v38 = vadd.f32 %v471_v28, %v470_v32  ;;  %v5243_v41 = vsel %vm354_vm1, %v370_v30, %v371_v31  ;;  %v376_v43 = vrot.slane %v268_v34, 1  ;;  %v271_v46 = vld [vmem:[%s5159_s28 + $0x98] sm:$0xff]  ;;  %v477_v47 = vsel %vm467_vm2, %v5236_v36, 0.0  ;;  %v272_v51 = vld [vmem:[%s5159_s28 + $0xa0] sm:$0x3]  ;;  %v273_v57 = vld [vmem:[%s5159_s28 + $0xa8] sm:$0xff] }
  0x1a   : > { %v5251_v48 = vsel %vm354_vm1, %v371_v31, %v373_v37  ;;  %v378_v49 = vrot.slane %v269_v39, 1  ;;  %v479_v52 = vsel %vm467_vm2, %v5243_v41, 0.0  ;;  %v380_v54 = vrot.slane %v270_v45, 1  ;;  %v274_v58 = vld [vmem:[%s5159_s28 + $0xb0] sm:$0xff]  ;;  %v275_v63 = vld [vmem:[%s5159_s28 + $0xb8] sm:$0x3] }
  0x1b   : > { %v474_v44 = vadd.f32 %v473_v35, %v472_v38  ;;  %v5257_v53 = vsel %vm354_vm1, %v375_v42, %v376_v43  ;;  %v381_v55 = vrot.slane %v271_v46, 1  ;;  %v481_v59 = vsel %vm467_vm2, %v5251_v48, 0.0  ;;  %v276_v11 = vld [vmem:[%s5159_s28 + $0xc0] sm:$0xff]  ;;  %v277_v14 = vld [vmem:[%s5159_s28 + $0xc8] sm:$0xff]  ;;  %v278_v27 = vld [vmem:[%s5159_s28 + $0xd0] sm:$0x3] }
  0x1c   : > { %v5264_v60 = vsel %vm354_vm1, %v376_v43, %v378_v49  ;;  %v383_v61 = vrot.slane %v272_v51, 1  ;;  %v483_v0 = vsel %vm467_vm2, %v5257_v53, 0.0  ;;  %v385_v8 = vrot.slane %v273_v57, 1  ;;  %v279_v35 = vld [vmem:[%s5159_s28 + $0xd8] sm:$0xff]  ;;  %v280_v37 = vld [vmem:[%s5159_s28 + $0xe0] sm:$0xff]  ;;  %v301_v22 = vld [vmem:[%s5159_s28 + $0x188] sm:$0xff] }
  0x1d   : > { %v476_v50 = vadd.f32 %v475_v40, %v474_v44  ;;  %v5270_v7 = vsel %vm354_vm1, %v380_v54, %v381_v55  ;;  %v386_v9 = vrot.slane %v274_v58, 1  ;;  %v485_v19 = vsel %vm467_vm2, %v5264_v60, 0.0  ;;  %v281_v43 = vld [vmem:[%s5159_s28 + $0xe8] sm:$0x3]  ;;  %v283_v51 = vld [vmem:[%s5159_s28 + $0xf8] sm:$0xff]  ;;  %v300_v26 = vld [vmem:[%s5159_s28 + $0x180] sm:$0xff] }
  0x1e   : > { %v5277_v20 = vsel %vm354_vm1, %v381_v55, %v383_v61  ;;  %v388_v24 = vrot.slane %v275_v63, 1  ;;  %v487_v28 = vsel %vm467_vm2, %v5270_v7, 0.0  ;;  %v390_v31 = vrot.slane %v276_v11, 1  ;;  %v284_v57 = vld [vmem:[%s5159_s28 + $0x100] sm:$0x3] }
  0x1f   : > { %v478_v56 = vadd.f32 %v477_v47, %v476_v50  ;;  %v5283_v30 = vsel %vm354_vm1, %v385_v8, %v386_v9  ;;  %v391_v32 = vrot.slane %v277_v14, 1  ;;  %v489_v38 = vsel %vm467_vm2, %v5277_v20, 0.0  ;;  %v282_v50 = vld [vmem:[%s5159_s28 + $0xf0] sm:$0xff] }
  0x20   : > { %v5290_v39 = vsel %vm354_vm1, %v386_v9, %v388_v24  ;;  %v393_v40 = vrot.slane %v278_v27, 1  ;;  %v491_v44 = vsel %vm467_vm2, %v5283_v30, 0.0  ;;  %v395_v46 = vrot.slane %v279_v35, 1  ;;  %v286_v8 = vld [vmem:[%s5159_s28 + $0x110] sm:$0xff] }
  0x21   : > { %v480_v62 = vadd.f32 %v479_v52, %v478_v56  ;;  %v5296_v45 = vsel %vm354_vm1, %v390_v31, %v391_v32  ;;  %v396_v47 = vrot.slane %v280_v37, 1  ;;  %v493_v52 = vsel %vm467_vm2, %v5290_v39, 0.0  ;;  %v302_v21 = vld [vmem:[%s5159_s28 + $0x190] sm:$0x3] }
  0x22   : > { %v5303_v54 = vsel %vm354_vm1, %v391_v32, %v393_v40  ;;  %v398_v55 = vrot.slane %v281_v43, 1  ;;  %v495_v58 = vsel %vm467_vm2, %v5296_v45, 0.0  ;;  %v400_v61 = vrot.slane %v282_v50, 1  ;;  %v5325_v32 = vld [vmem:[%s5159_s28 + $0x120] sm:$0xff]  ;;  %v5346_v50 = vld [vmem:[%s5159_s28 + $0x138] sm:$0xff] }
  0x23   : > { %v482_v10 = vadd.f32 %v481_v59, %v480_v62  ;;  %v5309_v59 = vsel %vm354_vm1, %v395_v46, %v396_v47  ;;  %v401_v62 = vrot.slane %v283_v51, 1  ;;  %v497_v9 = vsel %vm467_vm2, %v5303_v54, 0.0  ;;  %v5349_v51 = vld [vmem:[%s5159_s28 + $0x140] sm:$0xff] }
  0x24   : > { %v403_v11 = vrot.slane %v284_v57, 1  ;;  %v499_v24 = vsel %vm467_vm2, %v5309_v59, 0.0  ;;  %v410_v46 = vrot.slane %v5325_v32, 1 }
  0x25   : > { %v484_v25 = vadd.f32 %v483_v0, %v482_v10  ;;  %v285_v0 = vld [vmem:[%s5159_s28 + $0x108] sm:$0xff]  ;;  %v5316_v10 = vsel %vm354_vm1, %v396_v47, %v398_v55 }
  0x26   : > { %v405_v27 = vrot.slane %v285_v0, 1  ;;  %v501_v35 = vsel %vm467_vm2, %v5316_v10, 0.0  ;;  %v5333_v37 = vsel %vm354_vm1, %v401_v62, %v403_v11  ;;  %v416_v0 = vrot.slane %v5349_v51, 1  ;;  %v5371_v11 = vld [vmem:[%s5159_s28 + $0x158] sm:$0xff] }
  0x27   : > { %v486_v34 = vadd.f32 %v485_v19, %v484_v25  ;;  %v287_v19 = vld [vmem:[%s5159_s28 + $0x118] sm:$0x3]  ;;  %v5322_v25 = vsel %vm354_vm1, %v400_v61, %v401_v62 }
  0x28   : > { %v503_v43 = vsel %vm467_vm2, %v5322_v25, 0.0 }
  0x29   : > { %v488_v42 = vadd.f32 %v487_v28, %v486_v34  ;;  %v406_v28 = vrot.slane %v286_v8, 1  ;;  %v5328_v34 = vld [vmem:[%s5159_s28 + $0x128] sm:$0xff] }
  0x2a   : > { %v411_v47 = vrot.slane %v5328_v34, 1 }
  0x2b   : > { %v490_v49 = vadd.f32 %v489_v38, %v488_v42  ;;  %v408_v38 = vrot.slane %v287_v19, 1  ;;  %v5336_v42 = vld [vmem:[%s5159_s28 + $0x130] sm:$0x3] }
  0x2c   : > { %v5363_v62 = vsel %vm354_vm1, %v410_v46, %v411_v47  ;;  %v5390_v46 = vld [vmem:[%s5159_s28 + $0x168] sm:$0xff] }
  0x2d   : > { %v492_v56 = vadd.f32 %v491_v44, %v490_v49  ;;  %v5341_v44 = vsel %vm354_vm1, %v405_v27, %v406_v28  ;;  %v5354_v55 = vsel %vm354_vm1, %v406_v28, %v408_v38  ;;  %v5380_v28 = vld [vmem:[%s5159_s28 + $0x160] sm:$0x3]  ;;  %7583 = vst [vmem:[#allocation10_spill] sm:$0xff] %v5390_v46 }
  0x2e   : > { %v507_v61 = vsel %vm467_vm2, %v5341_v44, 0.0  ;;  %7582 = vst [vmem:[#allocation9_spill] sm:$0xff] %v5380_v28 }
  0x2f   : > { %v494_v63 = vadd.f32 %v493_v52, %v492_v56  ;;  %v505_v52 = vsel %vm467_vm2, %v5333_v37, 0.0  ;;  %v413_v56 = vrot.slane %v5336_v42, 1 }
  0x31   : > { %v496_v14 = vadd.f32 %v495_v58, %v494_v63  ;;  %v5358_v58 = vld [vmem:[%s5159_s28 + $0x148] sm:$0x3]  ;;  %v415_v63 = vrot.slane %v5346_v50, 1  ;;  %v5376_v19 = vsel %vm354_vm1, %v411_v47, %v413_v56  ;;  %v5393_v47 = vld [vmem:[%s5159_s28 + $0x170] sm:$0xff]  ;;  %v423_v56 = vrot.slane %v5380_v28, 1 }
  0x32   : > { %7584 = vst [vmem:[#allocation11_spill] sm:$0xff] %v5393_v47 }
  0x33   : > { %v498_v31 = vadd.f32 %v497_v9, %v496_v14  ;;  %v5368_v9 = vld [vmem:[%s5159_s28 + $0x150] sm:$0xff]  ;;  %v509_v14 = vsel %vm467_vm2, %v5354_v55, 0.0 }
  0x34   : > { %v420_v38 = vrot.slane %v5368_v9, 1 }
  0x35   : > { %v500_v40 = vadd.f32 %v499_v24, %v498_v31  ;;  %v418_v24 = vrot.slane %v5358_v58, 1  ;;  %v511_v31 = vsel %vm467_vm2, %v5363_v62, 0.0 }
  0x37   : > { %v502_v49 = vadd.f32 %v501_v35, %v500_v40  ;;  %v5385_v35 = vsel %vm354_vm1, %v415_v63, %v416_v0  ;;  %v421_v40 = vrot.slane %v5371_v11, 1 }
  0x38   : > { %v515_v63 = vsel %vm467_vm2, %v5385_v35, 0.0 }
  0x39   : > { %v504_v57 = vadd.f32 %v503_v43, %v502_v49  ;;  %v513_v49 = vsel %vm467_vm2, %v5376_v19, 0.0 }
  0x3b   : > { %v506_v8 = vadd.f32 %v505_v52, %v504_v57  ;;  %v5398_v52 = vsel %vm354_vm1, %v416_v0, %v418_v24  ;;  %v5416_v24 = vsel %vm354_vm1, %v421_v40, %v423_v56 }
  0x3c   : > { %v517_v0 = vsel %vm467_vm2, %v5398_v52, 0.0 }
  0x3d   : > { %v508_v27 = vadd.f32 %v507_v61, %v506_v8  ;;  %v5402_v61 = vld [vmem:[%s5159_s28 + $0x178] sm:$0x3]  ;;  %v5407_v8 = vsel %vm354_vm1, %v420_v38, %v421_v40  ;;  %v433_v40 = vrot.slane %v302_v21, 1 }
  0x3e   : > { %7585 = vst [vmem:[#allocation12_spill] sm:$0xff] %v5402_v61  ;;  %v519_v38 = vsel %vm467_vm2, %v5407_v8, 0.0 }
  0x3f   : > { %v510_v43 = vadd.f32 %v509_v14, %v508_v27  ;;  %v425_v14 = vrot.slane %v5390_v46, 1  ;;  %v426_v27 = vrot.slane %v5393_v47, 1  ;;  %v430_v47 = vrot.slane %v300_v26, 1 }
  0x40   : > { %v521_v46 = vsel %vm467_vm2, %v5416_v24, 0.0 }
  0x41   : > { %v512_v57 = vadd.f32 %v511_v31, %v510_v43  ;;  %v428_v31 = vrot.slane %v5402_v61, 1  ;;  %v5423_v15 = vsel %vm354_vm1, %v425_v14, %v426_v27 }
  0x43   : > { %v514_v33 = vadd.f32 %v513_v49, %v512_v57  ;;  %v431_v49 = vrot.slane %v301_v22, 1  ;;  %v5428_v13 = vsel %vm354_vm1, %v426_v27, %v428_v31 }
  0x44   : > { %v525_v26 = vsel %vm467_vm2, %v5428_v13, 0.0 }
  0x45   : > { %v516_v43 = vadd.f32 %v515_v63, %v514_v33  ;;  %v523_v33 = vsel %vm467_vm2, %v5423_v15, 0.0  ;;  %v5433_v63 = vsel %vm354_vm1, %v430_v47, %v431_v49  ;;  %v5438_v22 = vsel %vm354_vm1, %v431_v49, %v433_v40 }
  0x46   : > { %v527_v27 = vsel %vm467_vm2, %v5433_v63, 0.0  ;;  %v529_v21 = vsel %vm467_vm2, %v5438_v22, 0.0 }
  0x47   : > { %v518_v57 = vadd.f32 %v517_v0, %v516_v43 }
  0x49   : > { %v520_v56 = vadd.f32 %v519_v38, %v518_v57 }
  0x4b   : > { %v522_v61 = vadd.f32 %v521_v46, %v520_v56 }
  0x4d   : > { %v524_v14 = vadd.f32 %v523_v33, %v522_v61 }
  0x4f   : > { %v526_v0 = vadd.f32 %v525_v26, %v524_v14 }
  0x51   : > { %v528_v31 = vadd.f32 %v527_v27, %v526_v0 }
  0x53   : > { %v530_v43 = vadd.f32 %v529_v21, %v528_v31 }
  0x55   : > { %v531_v38 = vrot.slane %v530_v43, 4 }
  0x57   : > { %v532_v47 = vadd.f32 %v531_v38, %v530_v43 }
  0x59   : > { %v533_v57 = vrot.slane %v532_v47, 2 }
  0x5b   : > { %v534_v46 = vadd.f32 %v533_v57, %v532_v47 }
  0x5d   : > { %v535_v56 = vrot.slane %v534_v46, 1 }
  0x5f   : > { %v536_v12 = vadd.f32 %v535_v56, %v534_v46 }
  0x61   : > { %v5444_v28 = vmul.f32 0.00390625, %v536_v12 }
  0x63   : > { %v539_v61 = vsub.f32 %v5195_v16, %v5444_v28  ;;  %v540_v49 = vsub.f32 %v5198_v17, %v5444_v28  ;;  %v541_v40 = vsub.f32 %v5201_v18, %v5444_v28  ;;  %v542_v33 = vsub.f32 %v5212_v23, %v5444_v28 }
  0x64   : > { %v543_v26 = vsub.f32 %v5225_v29, %v5444_v28  ;;  %v544_v12 = vsub.f32 %v5236_v36, %v5444_v28  ;;  %v545_v16 = vsub.f32 %v5243_v41, %v5444_v28  ;;  %v546_v29 = vsub.f32 %v5251_v48, %v5444_v28 }
  0x65   : > { %v571_v14 = vmul.f32 %v539_v61, %v539_v61  ;;  %v572_v27 = vmul.f32 %v540_v49, %v540_v49  ;;  %v573_v0 = vmul.f32 %v541_v40, %v541_v40  ;;  %v574_v21 = vmul.f32 %v542_v33, %v542_v33 }
  0x66   : > { %v575_v17 = vmul.f32 %v543_v26, %v543_v26  ;;  %v576_v38 = vmul.f32 %v544_v12, %v544_v12  ;;  %v547_v36 = vsub.f32 %v5257_v53, %v5444_v28  ;;  %v577_v46 = vmul.f32 %v545_v16, %v545_v16 }
  0x67   : > { %v603_v31 = vsel %vm467_vm2, %v571_v14, 0.0  ;;  %v604_v18 = vsel %vm467_vm2, %v572_v27, 0.0  ;;  %v606_v23 = vsel %vm467_vm2, %v573_v0, 0.0  ;;  %v608_v47 = vsel %vm467_vm2, %v574_v21, 0.0 }
  0x68   : > { %v605_v43 = vadd.f32 %v604_v18, %v603_v31  ;;  %v610_v41 = vsel %vm467_vm2, %v575_v17, 0.0  ;;  %v548_v61 = vsub.f32 %v5264_v60, %v5444_v28  ;;  %v578_v49 = vmul.f32 %v546_v29, %v546_v29 }
  0x69   : > { %v612_v40 = vsel %vm467_vm2, %v576_v38, 0.0  ;;  %v549_v48 = vsub.f32 %v5270_v7, %v5444_v28  ;;  %v579_v26 = vmul.f32 %v547_v36, %v547_v36  ;;  %v614_v14 = vsel %vm467_vm2, %v577_v46, 0.0 }
  0x6a   : > { %v607_v57 = vadd.f32 %v606_v23, %v605_v43  ;;  %v550_v53 = vsub.f32 %v5277_v20, %v5444_v28  ;;  %v580_v0 = vmul.f32 %v548_v61, %v548_v61  ;;  %v616_v12 = vsel %vm467_vm2, %v578_v49, 0.0 }
  0x6b   : > { %v551_v60 = vsub.f32 %v5283_v30, %v5444_v28  ;;  %v581_v16 = vmul.f32 %v549_v48, %v549_v48  ;;  %v618_v17 = vsel %vm467_vm2, %v579_v26, 0.0  ;;  %v552_v7 = vsub.f32 %v5290_v39, %v5444_v28 }
  0x6c   : > { %v609_v56 = vadd.f32 %v608_v47, %v607_v57  ;;  %v582_v18 = vmul.f32 %v550_v53, %v550_v53  ;;  %v620_v23 = vsel %vm467_vm2, %v580_v0, 0.0  ;;  %v553_v20 = vsub.f32 %v5296_v45, %v5444_v28 }
  0x6d   : > { %v583_v29 = vmul.f32 %v551_v60, %v551_v60  ;;  %v622_v38 = vsel %vm467_vm2, %v581_v16, 0.0  ;;  %v554_v30 = vsub.f32 %v5303_v54, %v5444_v28  ;;  %v584_v57 = vmul.f32 %v552_v7, %v552_v7 }
  0x6e   : > { %v611_v33 = vadd.f32 %v610_v41, %v609_v56  ;;  %v624_v36 = vsel %vm467_vm2, %v582_v18, 0.0  ;;  %v555_v39 = vsub.f32 %v5309_v59, %v5444_v28  ;;  %v585_v41 = vmul.f32 %v553_v20, %v553_v20 }
  0x6f   : > { %v626_v56 = vsel %vm467_vm2, %v583_v29, 0.0  ;;  %v556_v45 = vsub.f32 %v5316_v10, %v5444_v28  ;;  %v586_v49 = vmul.f32 %v554_v30, %v554_v30  ;;  %v557_v54 = vsub.f32 %v5322_v25, %v5444_v28 }
  0x70   : > { %v613_v27 = vadd.f32 %v612_v40, %v611_v33  ;;  %v628_v40 = vsel %vm467_vm2, %v584_v57, 0.0  ;;  %v587_v48 = vmul.f32 %v555_v39, %v555_v39  ;;  %v630_v26 = vsel %vm467_vm2, %v585_v41, 0.0 }
  0x71   : > { %v558_v59 = vsub.f32 %v5333_v37, %v5444_v28  ;;  %v632_v53 = vsel %vm467_vm2, %v586_v49, 0.0  ;;  %v559_v10 = vsub.f32 %v5341_v44, %v5444_v28  ;;  %v560_v25 = vsub.f32 %v5354_v55, %v5444_v28  ;;  %v5514_v44 = vld [vmem:[%s7473_s1] sm:$0xf] }
  0x72   : > { %v615_v21 = vadd.f32 %v614_v14, %v613_v27  ;;  %v588_v27 = vmul.f32 %v556_v45, %v556_v45  ;;  %v561_v37 = vsub.f32 %v5363_v62, %v5444_v28  ;;  %4657 = vmatprep.subr.msk.mxu1 %vm1164_vm0, %v5514_v44  ;;  %v563_v62 = vsub.f32 %v5385_v35, %v5444_v28 }
  0x73   : > { %v590_v16 = vmul.f32 %v558_v59, %v558_v59  ;;  %v591_v7 = vmul.f32 %v559_v10, %v559_v10  ;;  %v592_v55 = vmul.f32 %v560_v25, %v560_v25  ;;  %v564_v57 = vsub.f32 %v5398_v52, %v5444_v28 }
  0x74   : > { %v617_v31 = vadd.f32 %v616_v12, %v615_v21  ;;  %v589_v12 = vmul.f32 %v557_v54, %v557_v54  ;;  %v634_v21 = vsel %vm467_vm2, %v587_v48, 0.0  ;;  %v565_v39 = vsub.f32 %v5407_v8, %v5444_v28 }
  0x75   : > { %v640_v20 = vsel %vm467_vm2, %v590_v16, 0.0  ;;  %v595_v41 = vmul.f32 %v563_v62, %v563_v62  ;;  %v566_v35 = vsub.f32 %v5416_v24, %v5444_v28  ;;  %v596_v45 = vmul.f32 %v564_v57, %v564_v57 }
  0x76   : > { %v619_v43 = vadd.f32 %v618_v17, %v617_v31  ;;  %v636_v17 = vsel %vm467_vm2, %v588_v27, 0.0  ;;  %v638_v18 = vsel %vm467_vm2, %v589_v12, 0.0  ;;  %v567_v52 = vsub.f32 %v5423_v15, %v5444_v28 }
  0x77   : > { %v650_v54 = vsel %vm467_vm2, %v595_v41, 0.0  ;;  %v568_v8 = vsub.f32 %v5428_v13, %v5444_v28  ;;  %v569_v24 = vsub.f32 %v5433_v63, %v5444_v28  ;;  %v570_v15 = vsub.f32 %v5438_v22, %v5444_v28  ;;  %v5552_v22 = vld [vmem:[%s7473_s1 + $0x8] sm:$0xf] }
  0x78   : > { %v621_v47 = vadd.f32 %v620_v23, %v619_v43  ;;  %v562_v43 = vsub.f32 %v5376_v19, %v5444_v28  ;;  %v644_v19 = vsel %vm467_vm2, %v592_v55, 0.0  ;;  %v599_v27 = vmul.f32 %v567_v52, %v567_v52  ;;  %4707 = vmatprep.subr.msk.mxu0 %vm1164_vm0, %v5552_v22  ;;  %v253_v52 = vld [vmem:[%s5159_s28 + $0x8] sm:$0xff] }
  0x79   : > { %v600_v10 = vmul.f32 %v568_v8, %v568_v8  ;;  %v602_v16 = vmul.f32 %v570_v15, %v570_v15  ;;  %v688_v41 = vlaneseq  ;;  %v254_v8 = vld [vmem:[%s5159_s28 + $0x10] sm:$0x3] }
  0x7a   : > { %v623_v46 = vadd.f32 %v622_v38, %v621_v47  ;;  %v593_v38 = vmul.f32 %v561_v37, %v561_v37  ;;  %v642_v47 = vsel %vm467_vm2, %v591_v7, 0.0  ;;  %v658_v13 = vsel %vm467_vm2, %v599_v27, 0.0 }
  0x7b   : > { %v664_v7 = vsel %vm467_vm2, %v602_v16, 0.0 }
  0x7c   : > { %v625_v61 = vadd.f32 %v624_v36, %v623_v46  ;;  %v594_v36 = vmul.f32 %v562_v43, %v562_v43 }
  0x7e   : > { %v627_v33 = vadd.f32 %v626_v56, %v625_v61  ;;  %v646_v56 = vsel %vm467_vm2, %v593_v38, 0.0  ;;  %v648_v49 = vsel %vm467_vm2, %v594_v36, 0.0 }
  0x80   : > { %v629_v14 = vadd.f32 %v628_v40, %v627_v33  ;;  %v597_v33 = vmul.f32 %v565_v39, %v565_v39 }
  0x82   : > { %v631_v0 = vadd.f32 %v630_v26, %v629_v14  ;;  %v598_v26 = vmul.f32 %v566_v35, %v566_v35  ;;  %v652_v14 = vsel %vm467_vm2, %v596_v45, 0.0 }
  0x84   : > { %v633_v60 = vadd.f32 %v632_v53, %v631_v0  ;;  %v654_v53 = vsel %vm467_vm2, %v597_v33, 0.0  ;;  %v656_v12 = vsel %vm467_vm2, %v598_v26, 0.0  ;;  %v684_v33 = vld [vmem:[%s7476_s4] sm:$0x1] }
  0x86   : > { %v635_v31 = vadd.f32 %v634_v21, %v633_v60  ;;  %v601_v60 = vmul.f32 %v569_v24, %v569_v24 }
  0x88   : > { %v637_v23 = vadd.f32 %v636_v17, %v635_v31  ;;  %v660_v17 = vsel %vm467_vm2, %v600_v10, 0.0  ;;  %v662_v63 = vsel %vm467_vm2, %v601_v60, 0.0 }
  0x8a   : > { %v639_v29 = vadd.f32 %v638_v18, %v637_v23 }
  0x8c   : > { %v641_v30 = vadd.f32 %v640_v20, %v639_v29 }
  0x8e   : > { %v643_v46 = vadd.f32 %v642_v47, %v641_v30 }
  0x90   : > { %v645_v61 = vadd.f32 %v644_v19, %v643_v46 }
  0x92   : > { %v647_v40 = vadd.f32 %v646_v56, %v645_v61  ;;  %v689_v56 = vshrl.u32 %v688_v41, 7  ;;  %v673_v61 = vld [vmem:[%s7475_s3] sm:$0x1] }
  0x94   : > { %v649_v48 = vadd.f32 %v648_v49, %v647_v40  ;;  %v690_v35 = vsub.s32 0, %v689_v56  ;;  %v252_v40 = vld [vmem:[%s5159_s28] sm:$0xff] }
  0x96   : > { %v651_v59 = vadd.f32 %v650_v54, %v649_v48 }
  0x98   : > { %v653_v0 = vadd.f32 %v652_v14, %v651_v59 }
  0x9a   : > { %v655_v21 = vadd.f32 %v654_v53, %v653_v0 }
  0x9c   : > { %v657_v25 = vadd.f32 %v656_v12, %v655_v21 }
  0x9e   : > { %v659_v31 = vadd.f32 %v658_v13, %v657_v25 }
  0xa0   : > { %v661_v37 = vadd.f32 %v660_v17, %v659_v31 }
  0xa2   : > { %v663_v18 = vadd.f32 %v662_v63, %v661_v37 }
  0xa4   : > { %v665_v23 = vadd.f32 %v664_v7, %v663_v18 }
  0xa6   : > { %v666_v43 = vrot.slane %v665_v23, 4 }
  0xa8   : > { %v667_v55 = vadd.f32 %v666_v43, %v665_v23 }
  0xaa   : > { %v668_v20 = vrot.slane %v667_v55, 2 }
  0xac   : > { %v669_v29 = vadd.f32 %v668_v20, %v667_v55 }
  0xae   : > { %v670_v62 = vrot.slane %v669_v29, 1 }
  0xb0   : > { %v671_v38 = vadd.f32 %v670_v62, %v669_v29 }
  0xb2   : > { %v672_v47 = vmul.f32 0.00390625, %v671_v38 }
  0xb4   : > { %v674_v30 = vadd.f32 1e-05, %v672_v47 }
  0xb6   : > { %5068 = vrsqrt.f32 %v674_v30  ;;  %vm677_vm3 = vcmp.eq.f32.partialorder %v674_v30, inf  ;;  %v680_v36 = vand.u32 2147483648, %v674_v30  ;;  %vm679_vm4 = vcmp.eq.f32.partialorder %v674_v30, 0.0 }
  0xc3   : > { %v5069_v57 = vpop.eup %5068 }
  0xc4   : > { %v676_v19 = vmul.f32 %v5069_v57, %v674_v30 }
  0xc6   : > { %v678_v46 = vsel %vm677_vm3, %v674_v30, %v676_v19 }
  0xc7   : > { %v681_v39 = vsel %vm679_vm4, %v680_v36, %v678_v46 }
  0xc8   : > { %5070 = vrcp.f32 %v681_v39 }
  0xd5   : > { %v5071_v45 = vpop.eup %5070 }
  0xd6   : > { %v683_v49 = vmul.f32 %v5071_v45, %v673_v61 }
  0xd8   : > { %v685_v54 = vmul.f32 %v683_v49, %v5444_v28  ;;  %v5565_v48 = vrot.slane %v683_v49, %v690_v35 }
  0xda   : > { %v686_v26 = vsub.f32 %v684_v33, %v685_v54  ;;  %v693_v14 = vmul.f32 %v5565_v48, %v252_v40  ;;  %v694_v59 = vmul.f32 %v5565_v48, %v253_v52  ;;  %v729_v24 = vmul.f32 %v5565_v48, %v5325_v32 }
  0xdb   : > { %v730_v27 = vmul.f32 %v5565_v48, %v5328_v34  ;;  %v695_v53 = vmul.f32 %v5565_v48, %v254_v8  ;;  %v731_v0 = vmul.f32 %v5565_v48, %v5336_v42  ;;  %v696_v28 = vmul.f32 %v5565_v48, %v5162_v1 }
  0xdc   : > { %v5579_v15 = vrot.slane %v686_v26, %v690_v35  ;;  %v697_v10 = vmul.f32 %v5565_v48, %v5165_v2  ;;  %v732_v12 = vmul.f32 %v5565_v48, %v5346_v50  ;;  %v733_v32 = vmul.f32 %v5565_v48, %v5349_v51  ;;  %v5656_v26 = vld [vmem:[%s7473_s1 + $0xc] sm:$0xf] }
  0xdd   : > { %v698_v34 = vmul.f32 %v5565_v48, %v5168_v3  ;;  %v5591_v42 = vmul.f32 %v5565_v48, %v5358_v58  ;;  %v5595_v1 = vmul.f32 %v5565_v48, %v5171_v4  ;;  %v700_v30 = vmul.f32 %v5565_v48, %v5174_v5  ;;  %v5636_v5 = vld [vmem:[%s7473_s1 + $0x10] sm:$0xf] }
  0xde   : > { %v753_v21 = vadd.f32 %v5579_v15, %v693_v14  ;;  %v754_v2 = vadd.f32 %v5579_v15, %v694_v59  ;;  %v789_v50 = vadd.f32 %v5579_v15, %v729_v24  ;;  %v790_v60 = vadd.f32 %v5579_v15, %v730_v27 }
  0xdf   : > { %v755_v51 = vadd.f32 %v5579_v15, %v695_v53  ;;  %v791_v3 = vadd.f32 %v5579_v15, %v731_v0  ;;  %v756_v13 = vadd.f32 %v5579_v15, %v696_v28  ;;  %v757_v58 = vadd.f32 %v5579_v15, %v697_v10 }
  0xe0   : > { %vm807_vm5 = vcmp.gt.f32.partialorder %v753_v21, 0.0  ;;  %vm808_vm6 = vcmp.gt.f32.partialorder %v754_v2, 0.0  ;;  %v861_v4 = vmul.f32 0.2, %v753_v21  ;;  %v862_v25 = vmul.f32 0.2, %v754_v2 }
  0xe1   : > { %vm843_vm7 = vcmp.gt.f32.partialorder %v789_v50, 0.0  ;;  %vm844_vm8 = vcmp.gt.f32.partialorder %v790_v60, 0.0  ;;  %v897_v16 = vmul.f32 0.2, %v789_v50  ;;  %v898_v17 = vmul.f32 0.2, %v790_v60 }
  0xe2   : > { %v5605_v31 = vsel %vm807_vm5, %v753_v21, %v861_v4  ;;  %v5607_v63 = vsel %vm808_vm6, %v754_v2, %v862_v25  ;;  %vm809_vm9 = vcmp.gt.f32.partialorder %v755_v51, 0.0  ;;  %v863_v37 = vmul.f32 0.2, %v755_v51 }
  0xe3   : > { %v1018_v7 = vrot.slane %v5605_v31, 1  ;;  %v1019_v18 = vrot.slane %v5607_v63, 1  ;;  %v5611_v23 = vsel %vm843_vm7, %v789_v50, %v897_v16  ;;  %v5613_v43 = vsel %vm844_vm8, %v790_v60, %v898_v17  ;;  %v7595_v16 = vld [vmem:[#allocation9_spill] sm:$0xff] }
  0xe4   : > { %7586 = vst [vmem:[#allocation13_spill] sm:$0xff] %v5611_v23  ;;  %7587 = vst [vmem:[#allocation14_spill] sm:$0xff] %v5613_v43  ;;  %v1078_v55 = vrot.slane %v5611_v23, 1  ;;  %v1079_v20 = vrot.slane %v5613_v43, 1  ;;  %v5617_v29 = vsel %vm809_vm9, %v755_v51, %v863_v37  ;;  %vm845_vm10 = vcmp.gt.f32.partialorder %v791_v3, 0.0 }
  0xe5   : > { %v1020_v62 = vsel %vm354_vm1, %v1018_v7, %v1019_v18  ;;  %v1021_v38 = vrot.slane %v5617_v29, 1  ;;  %v899_v47 = vmul.f32 0.2, %v791_v3  ;;  %vm810_vm11 = vcmp.gt.f32.partialorder %v756_v13, 0.0 }
  0xe6   : > { %4609 = vmatprep.mubr.msk.f32.mxu0 %vm467_vm2, %v1020_v62  ;;  %v5625_v57 = vsel %vm354_vm1, %v1078_v55, %v1079_v20  ;;  %vm811_vm12 = vcmp.gt.f32.partialorder %v757_v58, 0.0  ;;  %v864_v36 = vmul.f32 0.2, %v756_v13  ;;  %v865_v39 = vmul.f32 0.2, %v757_v58 }
  0xe7   : > { %7588 = vst [vmem:[#allocation15_spill] sm:$0xff] %v5625_v57  ;;  %4645 = vmatprep.mubr.msk.f32.mxu1 %vm467_vm2, %v5625_v57  ;;  %v1022_v19 = vsel %vm354_vm1, %v1019_v18, %v1021_v38  ;;  %v5630_v46 = vsel %vm845_vm10, %v791_v3, %v899_v47  ;;  %v792_v41 = vadd.f32 %v5579_v15, %v732_v12 }
  0xe8   : > { %4610 = vmatmul.mubr.msk.f32.vlgmr.msra.gmra.mxu0 %vm467_vm2, %v1022_v19  ;;  %v1081_v56 = vrot.slane %v5630_v46, 1  ;;  %v5640_v61 = vsel %vm810_vm11, %v756_v13, %v864_v36  ;;  %v793_v35 = vadd.f32 %v5579_v15, %v733_v32  ;;  %v758_v45 = vadd.f32 %v5579_v15, %v698_v34  ;;  %v7600_v19 = vld [vmem:[#allocation10_spill] sm:$0xff] }
  0xe9   : > { %v5644_v49 = vsel %vm811_vm12, %v757_v58, %v865_v39  ;;  %v1023_v40 = vrot.slane %v5640_v61, 1  ;;  %vm846_vm13 = vcmp.gt.f32.partialorder %v792_v41, 0.0  ;;  %v900_v52 = vmul.f32 0.2, %v792_v41  ;;  %4708 = vmatpush3.msk.msra.mxu0 %vm1164_vm0, %v5552_v22 }
  0xea   : > { %v5650_v33 = vsel %vm354_vm1, %v1079_v20, %v1081_v56  ;;  %v1024_v54 = vrot.slane %v5644_v49, 1  ;;  %vm847_vm14 = vcmp.gt.f32.partialorder %v793_v35, 0.0  ;;  %v901_v8 = vmul.f32 0.2, %v793_v35  ;;  %4807 = vmatprep.subr.msk.mxu0 %vm1164_vm0, %v5636_v5  ;;  %v7596_v20 = vld [vmem:[#allocation2_spill] sm:$0xff] }
  0xeb   : > { %7589 = vst [vmem:[#allocation16_spill] sm:$0xff] %v5650_v33  ;;  %4646 = vmatmul.mubr.msk.f32.vlgmr.msra.gmra.mxu1 %vm467_vm2, %v5650_v33  ;;  %v5662_v14 = vsel %vm846_vm13, %v792_v41, %v900_v52  ;;  %vm812_vm15 = vcmp.gt.f32.partialorder %v758_v45, 0.0  ;;  %v866_v22 = vmul.f32 0.2, %v758_v45  ;;  %v794_v59 = vadd.f32 %v5579_v15, %v5591_v42  ;;  %v5082_v33 = vld [vmem:[%s5159_s28 + $0xd0] sm:$0x3] }
  0xec   : > { %7590 = vst [vmem:[#allocation17_spill] sm:$0xff] %v5662_v14  ;;  %v5667_v24 = vsel %vm354_vm1, %v1023_v40, %v1024_v54  ;;  %v5669_v27 = vsel %vm847_vm14, %v793_v35, %v901_v8  ;;  %v1083_v53 = vrot.slane %v5662_v14, 1  ;;  %v759_v0 = vadd.f32 %v5579_v15, %v5595_v1  ;;  %4658 = vmatpush3.msk.msra.mxu1 %vm1164_vm0, %v5514_v44 }
  0xed   : > { %7591 = vst [vmem:[#allocation18_spill] sm:$0xff] %v5669_v27  ;;  %4612 = vmatprep.mubr.msk.f32.mxu0 %vm467_vm2, %v5667_v24  ;;  %v1084_v28 = vrot.slane %v5669_v27, 1  ;;  %v5679_v10 = vsel %vm812_vm15, %v758_v45, %v866_v22  ;;  %vm848_vm3 = vcmp.gt.f32.partialorder %v794_v59, 0.0  ;;  %v902_v12 = vmul.f32 0.2, %v794_v59  ;;  %4757 = vmatprep.subr.msk.mxu1 %vm1164_vm0, %v5656_v26  ;;  %v7602_v22 = vld [vmem:[#allocation11_spill] sm:$0xff] }
  0xee   : > { %v1026_v32 = vrot.slane %v5679_v10, 1  ;;  %v760_v34 = vadd.f32 %v5579_v15, %v700_v30  ;;  %vm813_vm4 = vcmp.gt.f32.partialorder %v759_v0, 0.0  ;;  %v867_v42 = vmul.f32 0.2, %v759_v0  ;;  %v7599_v30 = vld [vmem:[#allocation3_spill] sm:$0xff] }
  0xef   : > { %v5686_v44 = vsel %vm354_vm1, %v1083_v53, %v1084_v28  ;;  %v5688_v1 = vsel %vm848_vm3, %v794_v59, %v902_v12  ;;  %v735_v21 = vmul.f32 %v5565_v48, %v5368_v9  ;;  %v736_v2 = vmul.f32 %v5565_v48, %v5371_v11 }
  0xf0   : > { %7592 = vst [vmem:[#allocation19_spill] sm:$0xff] %v5686_v44  ;;  %4648 = vmatprep.mubr.msk.f32.mxu1 %vm467_vm2, %v5686_v44  ;;  %v5697_v50 = vsel %vm354_vm1, %v1024_v54, %v1026_v32  ;;  %v1086_v60 = vrot.slane %v5688_v1, 1  ;;  %vm814_vm5 = vcmp.gt.f32.partialorder %v760_v34, 0.0  ;;  %v868_v51 = vmul.f32 0.2, %v760_v34 }
  0xf1   : > { %7593 = vst [vmem:[#allocation20_spill] sm:$0xff] %v5697_v50  ;;  %4613 = vmatmul.mubr.msk.f32.gmra.mxu0 %vm467_vm2, %v5697_v50  ;;  %v5702_v3 = vsel %vm813_vm4, %v759_v0, %v867_v42  ;;  %v795_v9 = vadd.f32 %v5579_v15, %v735_v21  ;;  %v796_v13 = vadd.f32 %v5579_v15, %v736_v2  ;;  %v5090_v50 = vld [vmem:[%s5159_s28 + $0x110] sm:$0xff] }
  0xf2   : > { %v701_v11 = vmul.f32 %v5565_v48, %v5177_v6  ;;  %v5709_v58 = vsel %vm354_vm1, %v1084_v28, %v1086_v60  ;;  %v5711_v4 = vsel %vm814_vm5, %v760_v34, %v868_v51  ;;  %v1028_v25 = vrot.slane %v5702_v3, 1 }
  0xf3   : > { %7594 = vst [vmem:[#allocation21_spill] sm:$0xff] %v5709_v58  ;;  %v737_v17 = vmul.f32 %v5565_v48, %v7595_v16  ;;  %4649 = vmatmul.mubr.msk.f32.gmra.mxu1 %vm467_vm2, %v5709_v58  ;;  %v1029_v37 = vrot.slane %v5711_v4, 1  ;;  %vm849_vm6 = vcmp.gt.f32.partialorder %v795_v9, 0.0  ;;  %vm850_vm7 = vcmp.gt.f32.partialorder %v796_v13, 0.0 }
  0xf4   : > { %v903_v7 = vmul.f32 0.2, %v795_v9  ;;  %v904_v18 = vmul.f32 0.2, %v796_v13  ;;  %v761_v6 = vadd.f32 %v5579_v15, %v701_v11  ;;  %v702_v62 = vmul.f32 %v5565_v48, %v7596_v20  ;;  %v7607_v11 = vld [vmem:[#allocation4_spill] sm:$0xff]  ;;  %v7609_v20 = vld [vmem:[#allocation5_spill] sm:$0xff] }
  0xf5   : > { %v797_v55 = vadd.f32 %v5579_v15, %v737_v17  ;;  %v5724_v38 = vsel %vm354_vm1, %v1028_v25, %v1029_v37  ;;  %v703_v36 = vmul.f32 %v5565_v48, %v7599_v30  ;;  %v738_v39 = vmul.f32 %v5565_v48, %v7600_v19 }
  0xf6   : > { %7597 = vst [vmem:[#allocation9_spill] sm:$0xff] %v5724_v38  ;;  %v5726_v47 = vsel %vm849_vm6, %v795_v9, %v903_v7  ;;  %4615 = vmatprep.mubr.msk.f32.mxu0 %vm467_vm2, %v5724_v38  ;;  %v5734_v41 = vsel %vm850_vm7, %v796_v13, %v904_v18  ;;  %vm815_vm8 = vcmp.gt.f32.partialorder %v761_v6, 0.0  ;;  %v869_v35 = vmul.f32 0.2, %v761_v6 }
  0xf7   : > { %7598 = vst [vmem:[#allocation2_spill] sm:$0xff] %v5726_v47  ;;  %7601 = vst [vmem:[#allocation3_spill] sm:$0xff] %v5734_v41  ;;  %v1088_v56 = vrot.slane %v5726_v47, 1  ;;  %v1089_v45 = vrot.slane %v5734_v41, 1  ;;  %vm851_vm9 = vcmp.gt.f32.partialorder %v797_v55, 0.0  ;;  %v762_v52 = vadd.f32 %v5579_v15, %v702_v62 }
  0xf8   : > { %v905_v40 = vmul.f32 0.2, %v797_v55  ;;  %v5739_v54 = vsel %vm815_vm8, %v761_v6, %v869_v35  ;;  %v763_v8 = vadd.f32 %v5579_v15, %v703_v36  ;;  %v739_v59 = vmul.f32 %v5565_v48, %v7602_v22  ;;  %v7608_v6 = vld [vmem:[#allocation12_spill] sm:$0xff]  ;;  %v7612_v22 = vld [vmem:[#allocation7_spill] sm:$0xff] }
  0xf9   : > { %v798_v53 = vadd.f32 %v5579_v15, %v738_v39  ;;  %v5746_v0 = vsel %vm354_vm1, %v1088_v56, %v1089_v45  ;;  %v1031_v28 = vrot.slane %v5739_v54, 1  ;;  %vm816_vm10 = vcmp.gt.f32.partialorder %v762_v52, 0.0  ;;  %v7611_v39 = vld [vmem:[#allocation6_spill] sm:$0xff] }
  0xfa   : > { %7603 = vst [vmem:[#allocation10_spill] sm:$0xff] %v5746_v0  ;;  %v5749_v12 = vsel %vm851_vm9, %v797_v55, %v905_v40  ;;  %4651 = vmatprep.mubr.msk.f32.mxu1 %vm467_vm2, %v5746_v0  ;;  %vm817_vm11 = vcmp.gt.f32.partialorder %v763_v8, 0.0  ;;  %v870_v34 = vmul.f32 0.2, %v762_v52  ;;  %v871_v42 = vmul.f32 0.2, %v763_v8 }
  0xfb   : > { %v1091_v32 = vrot.slane %v5749_v12, 1  ;;  %v5755_v21 = vsel %vm354_vm1, %v1029_v37, %v1031_v28  ;;  %v799_v2 = vadd.f32 %v5579_v15, %v739_v59  ;;  %vm852_vm12 = vcmp.gt.f32.partialorder %v798_v53, 0.0  ;;  %v5081_v0 = vld [vmem:[%s5159_s28 + $0xc8] sm:$0xff] }
  0xfc   : > { %7604 = vst [vmem:[#allocation11_spill] sm:$0xff] %v5755_v21  ;;  %v906_v60 = vmul.f32 0.2, %v798_v53  ;;  %4616 = vmatmul.mubr.msk.f32.gmra.mxu0 %vm467_vm2, %v5755_v21  ;;  %v5763_v9 = vsel %vm816_vm10, %v762_v52, %v870_v34  ;;  %v5765_v13 = vsel %vm817_vm11, %v763_v8, %v871_v42  ;;  %v704_v25 = vmul.f32 %v5565_v48, %v7607_v11 }
  0xfd   : > { %v5761_v51 = vsel %vm354_vm1, %v1089_v45, %v1091_v32  ;;  %7606 = vst [vmem:[#allocation23_spill] sm:$0xff] %v5763_v9  ;;  %v1033_v16 = vrot.slane %v5763_v9, 1  ;;  %v1034_v17 = vrot.slane %v5765_v13, 1  ;;  %vm853_vm13 = vcmp.gt.f32.partialorder %v799_v2, 0.0 }
  0xfe   : > { %7605 = vst [vmem:[#allocation22_spill] sm:$0xff] %v5761_v51  ;;  %4652 = vmatmul.mubr.msk.f32.gmra.mxu1 %vm467_vm2, %v5761_v51  ;;  %v907_v37 = vmul.f32 0.2, %v799_v2  ;;  %v5773_v7 = vsel %vm852_vm12, %v798_v53, %v906_v60  ;;  %v764_v18 = vadd.f32 %v5579_v15, %v704_v25  ;;  %v740_v55 = vmul.f32 %v5565_v48, %v7608_v6  ;;  %v7613_v53 = vld [vmem:[#allocation8_spill] sm:$0xff] }
  0xff   : > { %v705_v62 = vmul.f32 %v5565_v48, %v7609_v20  ;;  %v5781_v30 = vsel %vm354_vm1, %v1033_v16, %v1034_v17  ;;  %v1093_v19 = vrot.slane %v5773_v7, 1  ;;  %v706_v56 = vmul.f32 %v5565_v48, %v7611_v39 }
 0x100   : > { %7610 = vst [vmem:[#allocation4_spill] sm:$0xff] %v5781_v30  ;;  %v5783_v36 = vsel %vm853_vm13, %v799_v2, %v907_v37  ;;  %4618 = vmatprep.mubr.msk.f32.mxu0 %vm467_vm2, %v5781_v30  ;;  %vm818_vm14 = vcmp.gt.f32.partialorder %v764_v18, 0.0  ;;  %v872_v45 = vmul.f32 0.2, %v764_v18  ;;  %v800_v40 = vadd.f32 %v5579_v15, %v740_v55  ;;  %v5072_v37 = vld [vmem:[%s5159_s28 + $0x80] sm:$0xff] }
 0x101   : > { %v1094_v35 = vrot.slane %v5783_v36, 1  ;;  %v765_v52 = vadd.f32 %v5579_v15, %v705_v62  ;;  %v766_v8 = vadd.f32 %v5579_v15, %v706_v56  ;;  %v707_v59 = vmul.f32 %v5565_v48, %v7612_v22  ;;  %v5073_v22 = vld [vmem:[%s5159_s28 + $0x88] sm:$0x3]  ;;  %v5088_v30 = vld [vmem:[%s5159_s28 + $0x100] sm:$0x3] }
 0x102   : > { %v708_v28 = vmul.f32 %v5565_v48, %v7613_v53  ;;  %v5801_v34 = vsel %vm818_vm14, %v764_v18, %v872_v45  ;;  %vm854_vm15 = vcmp.gt.f32.partialorder %v800_v40, 0.0  ;;  %v908_v42 = vmul.f32 0.2, %v800_v40  ;;  %v5074_v53 = vld [vmem:[%s5159_s28 + $0x90] sm:$0xff] }
 0x103   : > { %v5799_v32 = vsel %vm354_vm1, %v1093_v19, %v1094_v35  ;;  %v1036_v2 = vrot.slane %v5801_v34, 1  ;;  %vm819_vm3 = vcmp.gt.f32.partialorder %v765_v52, 0.0  ;;  %vm820_vm4 = vcmp.gt.f32.partialorder %v766_v8, 0.0 }
 0x104   : > { %7614 = vst [vmem:[#allocation12_spill] sm:$0xff] %v5799_v32  ;;  %4654 = vmatprep.mubr.msk.f32.mxu1 %vm467_vm2, %v5799_v32  ;;  %v873_v60 = vmul.f32 0.2, %v765_v52  ;;  %v5806_v11 = vsel %vm854_vm15, %v800_v40, %v908_v42  ;;  %v874_v25 = vmul.f32 0.2, %v766_v8  ;;  %v767_v16 = vadd.f32 %v5579_v15, %v707_v59 }
 0x105   : > { %v709_v6 = vmul.f32 %v5072_v37, %v5565_v48  ;;  %v5812_v18 = vsel %vm354_vm1, %v1034_v17, %v1036_v2  ;;  %v1096_v55 = vrot.slane %v5806_v11, 1  ;;  %v768_v62 = vadd.f32 %v5579_v15, %v708_v28 }
 0x106   : > { %7615 = vst [vmem:[#allocation5_spill] sm:$0xff] %v5812_v18  ;;  %v5815_v20 = vsel %vm819_vm3, %v765_v52, %v873_v60  ;;  %4619 = vmatmul.mubr.msk.f32.gmra.mxu0 %vm467_vm2, %v5812_v18  ;;  %v5820_v19 = vsel %vm820_vm4, %v766_v8, %v874_v25  ;;  %vm821_vm5 = vcmp.gt.f32.partialorder %v767_v16, 0.0  ;;  %v875_v56 = vmul.f32 0.2, %v767_v16 }
 0x107   : > { %7616 = vst [vmem:[#allocation6_spill] sm:$0xff] %v5815_v20  ;;  %v1038_v39 = vrot.slane %v5815_v20, 1  ;;  %v5824_v17 = vsel %vm354_vm1, %v1094_v35, %v1096_v55  ;;  %v1039_v45 = vrot.slane %v5820_v19, 1  ;;  %v769_v40 = vadd.f32 %v5579_v15, %v709_v6 }
 0x108   : > { %7617 = vst [vmem:[#allocation7_spill] sm:$0xff] %v5824_v17  ;;  %vm822_vm6 = vcmp.gt.f32.partialorder %v768_v62, 0.0  ;;  %4655 = vmatmul.mubr.msk.f32.gmra.mxu1 %vm467_vm2, %v5824_v17  ;;  %v5830_v52 = vsel %vm821_vm5, %v767_v16, %v875_v56  ;;  %v876_v8 = vmul.f32 0.2, %v768_v62  ;;  %v710_v59 = vmul.f32 %v5073_v22, %v5565_v48  ;;  %v5075_v16 = vld [vmem:[%s5159_s28 + $0x98] sm:$0xff] }
 0x109   : > { %v711_v35 = vmul.f32 %v5074_v53, %v5565_v48  ;;  %v5837_v28 = vsel %vm354_vm1, %v1038_v39, %v1039_v45  ;;  %4659 = vmatprep.mubr.msk.f32.mxu1 %vm467_vm2, %v5605_v31  ;;  %v1041_v42 = vrot.slane %v5830_v52, 1  ;;  %vm823_vm7 = vcmp.gt.f32.partialorder %v769_v40, 0.0  ;;  %v5076_v22 = vld [vmem:[%s5159_s28 + $0xa0] sm:$0x3] }
 0x10a   : > { %7618 = vst [vmem:[#allocation8_spill] sm:$0xff] %v5837_v28  ;;  %v877_v2 = vmul.f32 0.2, %v769_v40  ;;  %4621 = vmatprep.mubr.msk.f32.mxu0 %vm467_vm2, %v5837_v28  ;;  %v5844_v60 = vsel %vm822_vm6, %v768_v62, %v876_v8  ;;  %v770_v25 = vadd.f32 %v5579_v15, %v710_v59  ;;  %v712_v37 = vmul.f32 %v5075_v16, %v5565_v48 }
 0x10b   : > { %7619 = vst [vmem:[#allocation24_spill] sm:$0xff] %v5844_v60  ;;  %v771_v6 = vadd.f32 %v5579_v15, %v711_v35  ;;  %v5851_v55 = vsel %vm354_vm1, %v1039_v45, %v1041_v42  ;;  %v1043_v56 = vrot.slane %v5844_v60, 1  ;;  %v713_v53 = vmul.f32 %v5076_v22, %v5565_v48  ;;  %v5077_v35 = vld [vmem:[%s5159_s28 + $0xa8] sm:$0xff] }
 0x10c   : > { %7620 = vst [vmem:[#allocation25_spill] sm:$0xff] %v5851_v55  ;;  %v5853_v39 = vsel %vm823_vm7, %v769_v40, %v877_v2  ;;  %4622 = vmatmul.mubr.msk.f32.gmra.mxu0 %vm467_vm2, %v5851_v55  ;;  %4660 = vmatmul.mubr.msk.f32.vlgmr.msra.gmra.mxu1 %vm467_vm2, %v5607_v63  ;;  %vm824_vm8 = vcmp.gt.f32.partialorder %v770_v25, 0.0  ;;  %v878_v8 = vmul.f32 0.2, %v770_v25  ;;  %v772_v45 = vadd.f32 %v5579_v15, %v712_v37 }
 0x10d   : > { %v1044_v62 = vrot.slane %v5853_v39, 1  ;;  %4662 = vmatprep.mubr.msk.f32.mxu1 %vm467_vm2, %v5640_v61  ;;  %vm825_vm9 = vcmp.gt.f32.partialorder %v771_v6, 0.0  ;;  %v879_v40 = vmul.f32 0.2, %v771_v6  ;;  %v773_v59 = vadd.f32 %v5579_v15, %v713_v53  ;;  %4758 = vmatpush3.msk.msra.mxu1 %vm1164_vm0, %v5656_v26 }
 0x10e   : > { %v714_v42 = vmul.f32 %v5077_v35, %v5565_v48  ;;  %v5874_v16 = vsel %vm824_vm8, %v770_v25, %v878_v8  ;;  %vm826_vm10 = vcmp.gt.f32.partialorder %v772_v45, 0.0  ;;  %v880_v37 = vmul.f32 0.2, %v772_v45 }
 0x10f   : > { %v5872_v2 = vsel %vm354_vm1, %v1043_v56, %v1044_v62  ;;  %v1046_v22 = vrot.slane %v5874_v16, 1  ;;  %v5879_v53 = vsel %vm825_vm9, %v771_v6, %v879_v40  ;;  %vm827_vm11 = vcmp.gt.f32.partialorder %v773_v59, 0.0  ;;  %v5078_v56 = vld [vmem:[%s5159_s28 + $0xb0] sm:$0xff] }
 0x110   : > { %7621 = vst [vmem:[#allocation26_spill] sm:$0xff] %v5872_v2  ;;  %4624 = vmatprep.mubr.msk.f32.mxu0 %vm467_vm2, %v5872_v2  ;;  %7622 = vst [vmem:[#allocation27_spill] sm:$0xff] %v5879_v53  ;;  %v881_v35 = vmul.f32 0.2, %v773_v59  ;;  %4663 = vmatmul.mubr.msk.f32.gmra.mxu1 %vm467_vm2, %v5644_v49  ;;  %v5883_v26 = vsel %vm826_vm10, %v772_v45, %v880_v37  ;;  %v1048_v25 = vrot.slane %v5879_v53, 1 }
 0x111   : > { %v715_v8 = vmul.f32 %v5078_v56, %v5565_v48  ;;  %v774_v17 = vadd.f32 %v5579_v15, %v714_v42  ;;  %v5892_v6 = vld [vmem:[%s7473_s1 + $0x14] sm:$0xf]  ;;  %v5895_v40 = vsel %vm354_vm1, %v1044_v62, %v1046_v22  ;;  %v1049_v45 = vrot.slane %v5883_v26, 1  ;;  %4665 = vmatprep.mubr.msk.f32.mxu1 %vm467_vm2, %v5702_v3  ;;  %v5079_v56 = vld [vmem:[%s5159_s28 + $0xb8] sm:$0x3] }
 0x112   : > { %7623 = vst [vmem:[#allocation28_spill] sm:$0xff] %v5895_v40  ;;  %v5900_v37 = vsel %vm827_vm11, %v773_v59, %v881_v35  ;;  %v716_v42 = vmul.f32 %v5079_v56, %v5565_v48  ;;  %4857 = vmatprep.subr.msk.mxu1 %vm1164_vm0, %v5892_v6  ;;  %4625 = vmatmul.mubr.msk.f32.gmra.mxu0 %vm467_vm2, %v5895_v40  ;;  %v5080_v35 = vld [vmem:[%s5159_s28 + $0xc0] sm:$0xff] }
 0x113   : > { %v1051_v62 = vrot.slane %v5900_v37, 1  ;;  %v775_v22 = vadd.f32 %v5579_v15, %v715_v8  ;;  %vm828_vm12 = vcmp.gt.f32.partialorder %v774_v17, 0.0  ;;  %v882_v32 = vmul.f32 0.2, %v774_v17 }
 0x114   : > { %v5911_v51 = vsel %vm354_vm1, %v1048_v25, %v1049_v45  ;;  %v776_v59 = vadd.f32 %v5579_v15, %v716_v42  ;;  %v717_v56 = vmul.f32 %v5080_v35, %v5565_v48  ;;  %v718_v58 = vmul.f32 %v5081_v0, %v5565_v48  ;;  %4666 = vmatmul.mubr.msk.f32.gmra.mxu1 %vm467_vm2, %v5711_v4 }
 0x115   : > { %7624 = vst [vmem:[#allocation29_spill] sm:$0xff] %v5911_v51  ;;  %4627 = vmatprep.mubr.msk.f32.mxu0 %vm467_vm2, %v5911_v51  ;;  %v5921_v8 = vsel %vm354_vm1, %v1049_v45, %v1051_v62  ;;  %vm829_vm13 = vcmp.gt.f32.partialorder %v775_v22, 0.0  ;;  %v883_v25 = vmul.f32 0.2, %v775_v22  ;;  %v5925_v42 = vsel %vm828_vm12, %v774_v17, %v882_v32  ;;  %4668 = vmatprep.mubr.msk.f32.mxu1 %vm467_vm2, %v5763_v9  ;;  %v5083_v17 = vld [vmem:[%s5159_s28 + $0xd8] sm:$0xff] }
 0x116   : > { %7625 = vst [vmem:[#allocation30_spill] sm:$0xff] %v5921_v8  ;;  %7626 = vst [vmem:[#allocation31_spill] sm:$0xff] %v5925_v42  ;;  %v1053_v35 = vrot.slane %v5925_v42, 1  ;;  %vm830_vm14 = vcmp.gt.f32.partialorder %v776_v59, 0.0  ;;  %v884_v0 = vmul.f32 0.2, %v776_v59  ;;  %v777_v44 = vadd.f32 %v5579_v15, %v717_v56  ;;  %4628 = vmatmul.mubr.msk.f32.gmra.mxu0 %vm467_vm2, %v5921_v8 }
 0x117   : > { %v5933_v45 = vsel %vm829_vm13, %v775_v22, %v883_v25  ;;  %v778_v62 = vadd.f32 %v5579_v15, %v718_v58  ;;  %v719_v32 = vmul.f32 %v5082_v33, %v5565_v48  ;;  %v720_v57 = vmul.f32 %v5083_v17, %v5565_v48  ;;  %v5087_v8 = vld [vmem:[%s5159_s28 + $0xf8] sm:$0xff] }
 0x118   : > { %v1054_v51 = vrot.slane %v5933_v45, 1  ;;  %v5941_v40 = vsel %vm830_vm14, %v776_v59, %v884_v0  ;;  %vm831_vm15 = vcmp.gt.f32.partialorder %v777_v44, 0.0  ;;  %v885_v56 = vmul.f32 0.2, %v777_v44  ;;  %4669 = vmatmul.mubr.msk.f32.gmra.mxu1 %vm467_vm2, %v5765_v13  ;;  %v5084_v59 = vld [vmem:[%s5159_s28 + $0xe0] sm:$0xff] }
 0x119   : > { %v1056_v2 = vrot.slane %v5941_v40, 1  ;;  %vm832_vm3 = vcmp.gt.f32.partialorder %v778_v62, 0.0  ;;  %v886_v58 = vmul.f32 0.2, %v778_v62  ;;  %v779_v22 = vadd.f32 %v5579_v15, %v719_v32  ;;  %4671 = vmatprep.mubr.msk.f32.mxu1 %vm467_vm2, %v5815_v20 }
 0x11a   : > { %v5948_v33 = vsel %vm354_vm1, %v1053_v35, %v1054_v51  ;;  %v5950_v25 = vsel %vm831_vm15, %v777_v44, %v885_v56  ;;  %v721_v0 = vmul.f32 %v5084_v59, %v5565_v48  ;;  %v780_v17 = vadd.f32 %v5579_v15, %v720_v57 }
 0x11b   : > { %7627 = vst [vmem:[#allocation32_spill] sm:$0xff] %v5948_v33  ;;  %4630 = vmatprep.mubr.msk.f32.mxu0 %vm467_vm2, %v5948_v33  ;;  %v5960_v32 = vsel %vm354_vm1, %v1054_v51, %v1056_v2  ;;  %v5962_v35 = vsel %vm832_vm3, %v778_v62, %v886_v58  ;;  %v1058_v44 = vrot.slane %v5950_v25, 1  ;;  %vm833_vm4 = vcmp.gt.f32.partialorder %v779_v22, 0.0  ;;  %v5085_v51 = vld [vmem:[%s5159_s28 + $0xe8] sm:$0x3]  ;;  %v5086_v62 = vld [vmem:[%s5159_s28 + $0xf0] sm:$0xff] }
 0x11c   : > { %7628 = vst [vmem:[#allocation33_spill] sm:$0xff] %v5960_v32  ;;  %4631 = vmatmul.mubr.msk.f32.gmra.mxu0 %vm467_vm2, %v5960_v32  ;;  %v1059_v56 = vrot.slane %v5962_v35, 1  ;;  %v887_v59 = vmul.f32 0.2, %v779_v22  ;;  %v781_v57 = vadd.f32 %v5579_v15, %v721_v0  ;;  %vm834_vm5 = vcmp.gt.f32.partialorder %v780_v17, 0.0  ;;  %4672 = vmatmul.mubr.msk.f32.gmra.mxu1 %vm467_vm2, %v5820_v19 }
 0x11d   : > { %v888_v33 = vmul.f32 0.2, %v780_v17  ;;  %v722_v2 = vmul.f32 %v5085_v51, %v5565_v48  ;;  %v723_v58 = vmul.f32 %v5086_v62, %v5565_v48  ;;  %v724_v32 = vmul.f32 %v5087_v8, %v5565_v48  ;;  %4674 = vmatprep.mubr.msk.f32.mxu1 %vm467_vm2, %v5844_v60 }
 0x11e   : > { %v5978_v55 = vsel %vm354_vm1, %v1058_v44, %v1059_v56  ;;  %v5980_v28 = vsel %vm833_vm4, %v779_v22, %v887_v59  ;;  %vm835_vm6 = vcmp.gt.f32.partialorder %v781_v57, 0.0  ;;  %v889_v0 = vmul.f32 0.2, %v781_v57 }
 0x11f   : > { %7629 = vst [vmem:[#allocation34_spill] sm:$0xff] %v5978_v55  ;;  %4633 = vmatprep.mubr.msk.f32.mxu0 %vm467_vm2, %v5978_v55  ;;  %v1061_v51 = vrot.slane %v5980_v28, 1  ;;  %v5988_v62 = vsel %vm834_vm5, %v780_v17, %v888_v33  ;;  %v782_v8 = vadd.f32 %v5579_v15, %v722_v2  ;;  %v783_v44 = vadd.f32 %v5579_v15, %v723_v58  ;;  %v5089_v58 = vld [vmem:[%s5159_s28 + $0x108] sm:$0xff] }
 0x120   : > { %v5992_v18 = vsel %vm835_vm6, %v781_v57, %v889_v0  ;;  %v1063_v22 = vrot.slane %v5988_v62, 1  ;;  %v784_v59 = vadd.f32 %v5579_v15, %v724_v32  ;;  %v725_v21 = vmul.f32 %v5088_v30, %v5565_v48  ;;  %4675 = vmatmul.mubr.msk.f32.gmra.mxu1 %vm467_vm2, %v5853_v39 }
 0x121   : > { %v5999_v55 = vsel %vm354_vm1, %v1059_v56, %v1061_v51  ;;  %v1064_v33 = vrot.slane %v5992_v18, 1  ;;  %vm836_vm7 = vcmp.gt.f32.partialorder %v782_v8, 0.0  ;;  %v890_v17 = vmul.f32 0.2, %v782_v8  ;;  %4677 = vmatprep.mubr.msk.f32.mxu1 %vm467_vm2, %v5879_v53 }
 0x122   : > { %7630 = vst [vmem:[#allocation35_spill] sm:$0xff] %v5999_v55  ;;  %4634 = vmatmul.mubr.msk.f32.gmra.mxu0 %vm467_vm2, %v5999_v55  ;;  %vm837_vm8 = vcmp.gt.f32.partialorder %v783_v44, 0.0  ;;  %vm838_vm9 = vcmp.gt.f32.partialorder %v784_v59, 0.0  ;;  %v891_v32 = vmul.f32 0.2, %v783_v44  ;;  %v785_v2 = vadd.f32 %v5579_v15, %v725_v21 }
 0x123   : > { %v892_v57 = vmul.f32 0.2, %v784_v59  ;;  %v6009_v30 = vsel %vm354_vm1, %v1063_v22, %v1064_v33  ;;  %v6011_v56 = vsel %vm836_vm7, %v782_v8, %v890_v17  ;;  %v726_v0 = vmul.f32 %v5089_v58, %v5565_v48 }
 0x124   : > { %7631 = vst [vmem:[#allocation36_spill] sm:$0xff] %v6009_v30  ;;  %4636 = vmatprep.mubr.msk.f32.mxu0 %vm467_vm2, %v6009_v30  ;;  %v1066_v51 = vrot.slane %v6011_v56, 1  ;;  %v6019_v55 = vsel %vm837_vm8, %v783_v44, %v891_v32  ;;  %v727_v22 = vmul.f32 %v5090_v50, %v5565_v48  ;;  %vm839_vm10 = vcmp.gt.f32.partialorder %v785_v2, 0.0  ;;  %4678 = vmatmul.mubr.msk.f32.gmra.mxu1 %vm467_vm2, %v5883_v26  ;;  %v5091_v50 = vld [vmem:[%s5159_s28 + $0x118] sm:$0x3] }
 0x125   : > { %v6021_v38 = vsel %vm838_vm9, %v784_v59, %v892_v57  ;;  %v1068_v8 = vrot.slane %v6019_v55, 1  ;;  %v893_v17 = vmul.f32 0.2, %v785_v2  ;;  %v786_v44 = vadd.f32 %v5579_v15, %v726_v0  ;;  %4680 = vmatprep.mubr.msk.f32.mxu1 %vm467_vm2, %v5925_v42 }
 0x126   : > { %v1069_v21 = vrot.slane %v6021_v38, 1  ;;  %v6030_v58 = vsel %vm354_vm1, %v1064_v33, %v1066_v51  ;;  %v787_v59 = vadd.f32 %v5579_v15, %v727_v22  ;;  %v728_v32 = vmul.f32 %v5091_v50, %v5565_v48 }
 0x127   : > { %7632 = vst [vmem:[#allocation37_spill] sm:$0xff] %v6030_v58  ;;  %4637 = vmatmul.mubr.msk.f32.gmra.mxu0 %vm467_vm2, %v6030_v58  ;;  %v6043_v30 = vsel %vm839_vm10, %v785_v2, %v893_v17  ;;  %vm840_vm11 = vcmp.gt.f32.partialorder %v786_v44, 0.0  ;;  %v894_v0 = vmul.f32 0.2, %v786_v44  ;;  %v1686_v2 = vrot.slane %v5605_v31, 2 }
 0x128   : > { %v6041_v57 = vsel %vm354_vm1, %v1068_v8, %v1069_v21  ;;  %v1071_v33 = vrot.slane %v6043_v30, 1  ;;  %vm841_vm12 = vcmp.gt.f32.partialorder %v787_v59, 0.0  ;;  %v895_v51 = vmul.f32 0.2, %v787_v59  ;;  %4681 = vmatmul.mubr.msk.f32.gmra.mxu1 %vm467_vm2, %v5933_v45 }
 0x129   : > { %7633 = vst [vmem:[#allocation38_spill] sm:$0xff] %v6041_v57  ;;  %4639 = vmatprep.mubr.msk.f32.mxu0 %vm467_vm2, %v6041_v57  ;;  %v788_v22 = vadd.f32 %v5579_v15, %v728_v32  ;;  %v6054_v8 = vsel %vm840_vm11, %v786_v44, %v894_v0  ;;  %4683 = vmatprep.mubr.msk.f32.mxu1 %vm467_vm2, %v5950_v25  ;;  %v1687_v17 = vrot.slane %v5607_v63, 2  ;;  %vm1685_vm14 = vcmask 1045504  }
 0x12a   : > { %v6052_v50 = vsel %vm354_vm1, %v1069_v21, %v1071_v33  ;;  %7634 = vst [vmem:[#allocation39_spill] sm:$0xff] %v6054_v8  ;;  %v6062_v57 = vsel %vm841_vm12, %v787_v59, %v895_v51  ;;  %v1073_v32 = vrot.slane %v6054_v8, 1  ;;  %v1689_v31 = vrot.slane %v5617_v29, 2 }
 0x12b   : > { %4640 = vmatmul.mubr.msk.f32.gmra.mxu0 %vm467_vm2, %v6052_v50  ;;  %7635 = vst [vmem:[#allocation40_spill] sm:$0xff] %v6062_v57  ;;  %vm842_vm13 = vcmp.gt.f32.partialorder %v788_v22, 0.0  ;;  %v896_v58 = vmul.f32 0.2, %v788_v22  ;;  %v1074_v21 = vrot.slane %v6062_v57, 1  ;;  %v1688_v33 = vsel %vm1685_vm14, %v1686_v2, %v1687_v17 }
 0x12c   : > { %4684 = vmatmul.mubr.msk.f32.gmra.mxu1 %vm467_vm2, %v5962_v35  ;;  %v1692_v0 = vrot.slane %v5644_v49, 2  ;;  %v1690_v29 = vsel %vm1685_vm14, %v1687_v17, %v1689_v31  ;;  %v6105_v17 = vld [vmem:[%s7473_s1 + $0x18] sm:$0xf]  ;;  %v1699_v31 = vrot.slane %v5739_v54, 2 }
 0x12d   : > { %v6066_v44 = vsel %vm842_vm13, %v788_v22, %v896_v58  ;;  %v6072_v63 = vsel %vm354_vm1, %v1073_v32, %v1074_v21  ;;  %4686 = vmatprep.mubr.msk.f32.mxu1 %vm467_vm2, %v5988_v62  ;;  %v1691_v58 = vrot.slane %v5640_v61, 2  ;;  %v1694_v22 = vrot.slane %v5679_v10, 2 }
 0x12e   : > { %7636 = vst [vmem:[#allocation41_spill] sm:$0xff] %v6072_v63  ;;  %v1076_v59 = vrot.slane %v6066_v44, 1  ;;  %4642 = vmatprep.mubr.msk.f32.mxu0 %vm467_vm2, %v6072_v63  ;;  %v1696_v32 = vrot.slane %v5702_v3, 2  ;;  %v1722_v63 = vrot.slane %v5933_v45, 2 }
 0x12f   : > { %v6095_v2 = vsel %vm1685_vm14, %v1691_v58, %v1692_v0  ;;  %v6110_v10 = vsel %vm1685_vm14, %v1692_v0, %v1694_v22  ;;  %v1702_v58 = vrot.slane %v5765_v13, 2  ;;  %v1704_v0 = vrot.slane %v5801_v34, 2 }
 0x130   : > { %v6083_v51 = vsel %vm354_vm1, %v1074_v21, %v1076_v59  ;;  %4687 = vmatmul.mubr.msk.f32.gmra.mxu1 %vm467_vm2, %v5992_v18  ;;  %v1697_v21 = vrot.slane %v5711_v4, 2  ;;  %v1707_v22 = vrot.slane %v5820_v19, 2 }
 0x131   : > { %7637 = vst [vmem:[#allocation42_spill] sm:$0xff] %v6083_v51  ;;  %4643 = vmatmul.mubr.msk.f32.gmra.mxu0 %vm467_vm2, %v6083_v51  ;;  %4689 = vmatprep.mubr.msk.f32.mxu1 %vm467_vm2, %v6019_v55  ;;  %v6148_v34 = vsel %vm1685_vm14, %v1702_v58, %v1704_v0  ;;  %v1717_v51 = vrot.slane %v5883_v26, 2 }
 0x132   : > { %4709 = vmatprep.mubr.msk.f32.mxu0 %vm467_vm2, %v1688_v33  ;;  %v6116_v59 = vsel %vm1685_vm14, %v1696_v32, %v1697_v21  ;;  %v1701_v33 = vrot.slane %v5763_v9, 2  ;;  %v6131_v54 = vsel %vm1685_vm14, %v1697_v21, %v1699_v31  ;;  %7641 = vst [vmem:[#allocation46_spill] sm:$0xff] %v6148_v34  ;;  %v1709_v32 = vrot.slane %v5830_v52, 2 }
 0x133   : > { %7638 = vst [vmem:[#allocation43_spill] sm:$0xff] %v6116_v59  ;;  %7639 = vst [vmem:[#allocation44_spill] sm:$0xff] %v6131_v54  ;;  %v1711_v31 = vrot.slane %v5844_v60, 2 }
 0x134   : > { %4690 = vmatmul.mubr.msk.f32.gmra.mxu1 %vm467_vm2, %v6021_v38  ;;  %v6165_v52 = vsel %vm1685_vm14, %v1707_v22, %v1709_v32 }
 0x135   : > { %4710 = vmatmul.mubr.msk.f32.vlgmr.msra.gmra.mxu0 %vm467_vm2, %v1690_v29  ;;  %4692 = vmatprep.mubr.msk.f32.mxu1 %vm467_vm2, %v6054_v8  ;;  %v1706_v29 = vrot.slane %v5815_v20, 2  ;;  %7643 = vst [vmem:[#allocation48_spill] sm:$0xff] %v6165_v52 }
 0x136   : > { %4712 = vmatprep.mubr.msk.f32.mxu0 %vm467_vm2, %v6095_v2  ;;  %4808 = vmatpush3.msk.msra.mxu0 %vm1164_vm0, %v5636_v5  ;;  %v6137_v5 = vsel %vm1685_vm14, %v1701_v33, %v1702_v58  ;;  %v1712_v33 = vrot.slane %v5853_v39, 2  ;;  %v1714_v58 = vrot.slane %v5874_v16, 2 }
 0x137   : > { %4907 = vmatprep.subr.msk.mxu0 %vm1164_vm0, %v6105_v17  ;;  %7640 = vst [vmem:[#allocation45_spill] sm:$0xff] %v6137_v5  ;;  %v6154_v21 = vsel %vm1685_vm14, %v1706_v29, %v1707_v22  ;;  %v1716_v29 = vrot.slane %v5879_v53, 2  ;;  %v1719_v22 = vrot.slane %v5900_v37, 2 }
 0x138   : > { %4693 = vmatmul.mubr.msk.f32.gmra.mxu1 %vm467_vm2, %v6062_v57  ;;  %7642 = vst [vmem:[#allocation47_spill] sm:$0xff] %v6154_v21  ;;  %v6171_v0 = vsel %vm1685_vm14, %v1711_v31, %v1712_v33  ;;  %v6182_v16 = vsel %vm1685_vm14, %v1712_v33, %v1714_v58  ;;  %v1721_v31 = vrot.slane %v5925_v42, 2  ;;  %v1724_v33 = vrot.slane %v5941_v40, 2 }
 0x139   : > { %4713 = vmatmul.mubr.msk.f32.gmra.mxu0 %vm467_vm2, %v6110_v10  ;;  %4695 = vmatprep.mubr.msk.f32.mxu1 %vm467_vm2, %v5611_v23  ;;  %7644 = vst [vmem:[#allocation49_spill] sm:$0xff] %v6171_v0  ;;  %7645 = vst [vmem:[#allocation50_spill] sm:$0xff] %v6182_v16  ;;  %v6188_v32 = vsel %vm1685_vm14, %v1716_v29, %v1717_v51  ;;  %v6199_v37 = vsel %vm1685_vm14, %v1717_v51, %v1719_v22  ;;  %v1726_v29 = vrot.slane %v5950_v25, 2 }
 0x13a   : > { %4715 = vmatprep.mubr.msk.f32.mxu0 %vm467_vm2, %v6116_v59  ;;  %7646 = vst [vmem:[#allocation51_spill] sm:$0xff] %v6188_v32  ;;  %7647 = vst [vmem:[#allocation52_spill] sm:$0xff] %v6199_v37  ;;  %v6205_v58 = vsel %vm1685_vm14, %v1721_v31, %v1722_v63  ;;  %v6216_v40 = vsel %vm1685_vm14, %v1722_v63, %v1724_v33  ;;  %v1731_v22 = vrot.slane %v5988_v62, 2  ;;  %v1732_v31 = vrot.slane %v5992_v18, 2 }
 0x13b   : > { %7648 = vst [vmem:[#allocation53_spill] sm:$0xff] %v6205_v58  ;;  %7649 = vst [vmem:[#allocation54_spill] sm:$0xff] %v6216_v40  ;;  %v1734_v63 = vrot.slane %v6011_v56, 2  ;;  %v1736_v33 = vrot.slane %v6019_v55, 2 }
 0x13c   : > { %4696 = vmatmul.mubr.msk.f32.gmra.mxu1 %vm467_vm2, %v5613_v43 }
 0x13d   : > { %4716 = vmatmul.mubr.msk.f32.gmra.mxu0 %vm467_vm2, %v6131_v54  ;;  %4698 = vmatprep.mubr.msk.f32.mxu1 %vm467_vm2, %v5662_v14  ;;  %v6259_v56 = vsel %vm1685_vm14, %v1732_v31, %v1734_v63 }
 0x13e   : > { %4718 = vmatprep.mubr.msk.f32.mxu0 %vm467_vm2, %v6137_v5 }
 0x140   : > { %4699 = vmatmul.mubr.msk.f32.gmra.mxu1 %vm467_vm2, %v5669_v27 }
 0x141   : > { %4719 = vmatmul.mubr.msk.f32.gmra.mxu0 %vm467_vm2, %v6148_v34  ;;  %4701 = vmatprep.mubr.msk.f32.mxu1 %vm467_vm2, %v5726_v47 }
 0x142   : > { %4721 = vmatprep.mubr.msk.f32.mxu0 %vm467_vm2, %v6154_v21 }
 0x144   : > { %4702 = vmatmul.mubr.msk.f32.gmra.mxu1 %vm467_vm2, %v5734_v41 }
 0x145   : > { %4722 = vmatmul.mubr.msk.f32.gmra.mxu0 %vm467_vm2, %v6165_v52  ;;  %4704 = vmatprep.mubr.msk.f32.mxu1 %vm467_vm2, %v5773_v7 }
 0x146   : > { %4724 = vmatprep.mubr.msk.f32.mxu0 %vm467_vm2, %v6171_v0 }
 0x148   : > { %4705 = vmatmul.mubr.msk.f32.gmra.mxu1 %vm467_vm2, %v5783_v36 }
 0x149   : > { %4725 = vmatmul.mubr.msk.f32.gmra.mxu0 %vm467_vm2, %v6182_v16  ;;  %4759 = vmatprep.mubr.msk.f32.mxu1 %vm467_vm2, %v5640_v61  ;;  %v1727_v16 = vrot.slane %v5962_v35, 2  ;;  %v1729_v61 = vrot.slane %v5980_v28, 2 }
 0x14a   : > { %4727 = vmatprep.mubr.msk.f32.mxu0 %vm467_vm2, %v6188_v32 }
 0x14b   : > { %v6222_v51 = vsel %vm1685_vm14, %v1726_v29, %v1727_v16  ;;  %v6240_v28 = vsel %vm1685_vm14, %v1727_v16, %v1729_v61  ;;  %v1737_v29 = vrot.slane %v6021_v38, 2  ;;  %v1739_v16 = vrot.slane %v6043_v30, 2 }
 0x14c   : > { %4760 = vmatmul.mubr.msk.f32.vlgmr.msra.gmra.mxu1 %vm467_vm2, %v5644_v49  ;;  %7650 = vst [vmem:[#allocation55_spill] sm:$0xff] %v6222_v51  ;;  %v6235_v49 = vld [vmem:[%s7473_s1 + $0x1c] sm:$0xf] }
 0x14d   : > { %4728 = vmatmul.mubr.msk.f32.gmra.mxu0 %vm467_vm2, %v6199_v37  ;;  %4762 = vmatprep.mubr.msk.f32.mxu1 %vm467_vm2, %v5702_v3  ;;  %v6265_v61 = vsel %vm1685_vm14, %v1736_v33, %v1737_v29  ;;  %v6276_v30 = vsel %vm1685_vm14, %v1737_v29, %v1739_v16  ;;  %v1746_v33 = vrot.slane %v5611_v23, 2  ;;  %v1749_v29 = vrot.slane %v5630_v46, 2 }
 0x14e   : > { %4730 = vmatprep.mubr.msk.f32.mxu0 %vm467_vm2, %v6205_v58  ;;  %4858 = vmatpush3.msk.msra.mxu1 %vm1164_vm0, %v5892_v6  ;;  %v6246_v6 = vsel %vm1685_vm14, %v1731_v22, %v1732_v31  ;;  %7651 = vst [vmem:[#allocation56_spill] sm:$0xff] %v6265_v61  ;;  %v1741_v22 = vrot.slane %v6054_v8, 2  ;;  %v1744_v31 = vrot.slane %v6066_v44, 2 }
 0x14f   : > { %4957 = vmatprep.subr.msk.mxu1 %vm1164_vm0, %v6235_v49 }
 0x150   : > { %4763 = vmatmul.mubr.msk.f32.gmra.mxu1 %vm467_vm2, %v5711_v4 }
 0x151   : > { %4731 = vmatmul.mubr.msk.f32.gmra.mxu0 %vm467_vm2, %v6216_v40  ;;  %4765 = vmatprep.mubr.msk.f32.mxu1 %vm467_vm2, %v5763_v9  ;;  %v1742_v9 = vrot.slane %v6062_v57, 2 }
 0x152   : > { %4733 = vmatprep.mubr.msk.f32.mxu0 %vm467_vm2, %v6222_v51 }
 0x153   : > { %v6282_v63 = vsel %vm1685_vm14, %v1741_v22, %v1742_v9  ;;  %v6293_v44 = vsel %vm1685_vm14, %v1742_v9, %v1744_v31  ;;  %v1751_v22 = vrot.slane %v5662_v14, 2  ;;  %v1754_v9 = vrot.slane %v5688_v1, 2 }
 0x154   : > { %4766 = vmatmul.mubr.msk.f32.gmra.mxu1 %vm467_vm2, %v5765_v13 }
 0x155   : > { %4734 = vmatmul.mubr.msk.f32.gmra.mxu0 %vm467_vm2, %v6240_v28  ;;  %4768 = vmatprep.mubr.msk.f32.mxu1 %vm467_vm2, %v5815_v20  ;;  %v1747_v20 = vrot.slane %v5613_v43, 2 }
 0x156   : > { %4736 = vmatprep.mubr.msk.f32.mxu0 %vm467_vm2, %v6246_v6 }
 0x157   : > { %v6299_v16 = vsel %vm1685_vm14, %v1746_v33, %v1747_v20  ;;  %v6310_v46 = vsel %vm1685_vm14, %v1747_v20, %v1749_v29  ;;  %v1756_v33 = vrot.slane %v5726_v47, 2  ;;  %v1759_v20 = vrot.slane %v5749_v12, 2 }
 0x158   : > { %4769 = vmatmul.mubr.msk.f32.gmra.mxu1 %vm467_vm2, %v5820_v19 }
 0x159   : > { %4737 = vmatmul.mubr.msk.f32.gmra.mxu0 %vm467_vm2, %v6259_v56  ;;  %4771 = vmatprep.mubr.msk.f32.mxu1 %vm467_vm2, %v5844_v60  ;;  %v1752_v60 = vrot.slane %v5669_v27, 2 }
 0x15a   : > { %4739 = vmatprep.mubr.msk.f32.mxu0 %vm467_vm2, %v6265_v61 }
 0x15b   : > { %v6316_v31 = vsel %vm1685_vm14, %v1751_v22, %v1752_v60  ;;  %v6327_v1 = vsel %vm1685_vm14, %v1752_v60, %v1754_v9  ;;  %v1761_v22 = vrot.slane %v5773_v7, 2  ;;  %v1764_v60 = vrot.slane %v5806_v11, 2  ;;  %v7654_v11 = vld [vmem:[#allocation20_spill] sm:$0xff] }
 0x15c   : > { %4772 = vmatmul.mubr.msk.f32.gmra.mxu1 %vm467_vm2, %v5853_v39  ;;  %7652 = vst [vmem:[#allocation57_spill] sm:$0xff] %v6327_v1 }
 0x15d   : > { %4740 = vmatmul.mubr.msk.f32.gmra.mxu0 %vm467_vm2, %v6276_v30  ;;  %4774 = vmatprep.mubr.msk.f32.mxu1 %vm467_vm2, %v5879_v53  ;;  %v1757_v53 = vrot.slane %v5734_v41, 2 }
 0x15e   : > { %4742 = vmatprep.mubr.msk.f32.mxu0 %vm467_vm2, %v6282_v63 }
 0x15f   : > { %v6333_v29 = vsel %vm1685_vm14, %v1756_v33, %v1757_v53  ;;  %v6344_v12 = vsel %vm1685_vm14, %v1757_v53, %v1759_v20  ;;  %v7655_v33 = vld [vmem:[#allocation9_spill] sm:$0xff] }
 0x160   : > { %4775 = vmatmul.mubr.msk.f32.gmra.mxu1 %vm467_vm2, %v5883_v26  ;;  %7653 = vst [vmem:[#allocation58_spill] sm:$0xff] %v6333_v29 }
 0x161   : > { %4743 = vmatmul.mubr.msk.f32.gmra.mxu0 %vm467_vm2, %v6293_v44  ;;  %4777 = vmatprep.mubr.msk.f32.mxu1 %vm467_vm2, %v5925_v42  ;;  %v1762_v42 = vrot.slane %v5783_v36, 2 }
 0x162   : > { %4745 = vmatprep.mubr.msk.f32.mxu0 %vm467_vm2, %v6299_v16 }
 0x163   : > { %v6350_v9 = vsel %vm1685_vm14, %v1761_v22, %v1762_v42  ;;  %v6359_v53 = vsel %vm1685_vm14, %v1762_v42, %v1764_v60  ;;  %v6378_v42 = vld [vmem:[%s7473_s1 + $0x20] sm:$0xf]  ;;  %v7656_v22 = vld [vmem:[#allocation11_spill] sm:$0xff]  ;;  %v7657_v60 = vld [vmem:[#allocation4_spill] sm:$0xff] }
 0x164   : > { %4778 = vmatmul.mubr.msk.f32.gmra.mxu1 %vm467_vm2, %v5933_v45 }
 0x165   : > { %4746 = vmatmul.mubr.msk.f32.gmra.mxu0 %vm467_vm2, %v6310_v46  ;;  %4780 = vmatprep.mubr.msk.f32.mxu1 %vm467_vm2, %v5950_v25 }
 0x166   : > { %4748 = vmatprep.mubr.msk.f32.mxu0 %vm467_vm2, %v6316_v31 }
 0x168   : > { %4781 = vmatmul.mubr.msk.f32.gmra.mxu1 %vm467_vm2, %v5962_v35 }
 0x169   : > { %4749 = vmatmul.mubr.msk.f32.gmra.mxu0 %vm467_vm2, %v6327_v1  ;;  %4783 = vmatprep.mubr.msk.f32.mxu1 %vm467_vm2, %v5988_v62 }
 0x16a   : > { %4751 = vmatprep.mubr.msk.f32.mxu0 %vm467_vm2, %v6333_v29 }
 0x16c   : > { %4784 = vmatmul.mubr.msk.f32.gmra.mxu1 %vm467_vm2, %v5992_v18 }
 0x16d   : > { %4752 = vmatmul.mubr.msk.f32.gmra.mxu0 %vm467_vm2, %v6344_v12  ;;  %4786 = vmatprep.mubr.msk.f32.mxu1 %vm467_vm2, %v6019_v55 }
 0x16e   : > { %4754 = vmatprep.mubr.msk.f32.mxu0 %vm467_vm2, %v6350_v9 }
 0x170   : > { %4787 = vmatmul.mubr.msk.f32.gmra.mxu1 %vm467_vm2, %v6021_v38 }
 0x171   : > { %4755 = vmatmul.mubr.msk.f32.gmra.mxu0 %vm467_vm2, %v6359_v53  ;;  %4789 = vmatprep.mubr.msk.f32.mxu1 %vm467_vm2, %v6054_v8  ;;  %v7660_v8 = vld [vmem:[#allocation25_spill] sm:$0xff] }
 0x172   : > { %4809 = vmatprep.mubr.msk.f32.mxu0 %vm467_vm2, %v5667_v24  ;;  %v5092_v24 = vld [vmem:[%s5159_s28 + $0x180] sm:$0xff] }
 0x173   : > { %v741_v20 = vmul.f32 %v5092_v24, %v5565_v48 }
 0x174   : > { %4790 = vmatmul.mubr.msk.f32.gmra.mxu1 %vm467_vm2, %v6062_v57  ;;  %v7659_v57 = vld [vmem:[#allocation8_spill] sm:$0xff] }
 0x175   : > { %4810 = vmatmul.mubr.msk.f32.vlgmr.msra.gmra.mxu0 %vm467_vm2, %v7654_v11  ;;  %4792 = vmatprep.mubr.msk.f32.mxu1 %vm467_vm2, %v5611_v23  ;;  %v5093_v11 = vld [vmem:[%s5159_s28 + $0x188] sm:$0xff]  ;;  %v7658_v23 = vld [vmem:[#allocation5_spill] sm:$0xff] }
 0x176   : > { %4812 = vmatprep.mubr.msk.f32.mxu0 %vm467_vm2, %v7655_v33  ;;  %4908 = vmatpush3.msk.msra.mxu0 %vm1164_vm0, %v6105_v17  ;;  %v742_v24 = vmul.f32 %v5093_v11, %v5565_v48  ;;  %v801_v17 = vadd.f32 %v5579_v15, %v741_v20  ;;  %v7661_v20 = vld [vmem:[#allocation26_spill] sm:$0xff] }
 0x177   : > { %5007 = vmatprep.subr.msk.mxu0 %vm1164_vm0, %v6378_v42 }
 0x178   : > { %4793 = vmatmul.mubr.msk.f32.gmra.mxu1 %vm467_vm2, %v5613_v43  ;;  %v802_v43 = vadd.f32 %v5579_v15, %v742_v24  ;;  %vm855_vm15 = vcmp.gt.f32.partialorder %v801_v17, 0.0  ;;  %v7663_v24 = vld [vmem:[#allocation29_spill] sm:$0xff] }
 0x179   : > { %4813 = vmatmul.mubr.msk.f32.gmra.mxu0 %vm467_vm2, %v7656_v22  ;;  %4795 = vmatprep.mubr.msk.f32.mxu1 %vm467_vm2, %v5662_v14  ;;  %v909_v14 = vmul.f32 0.2, %v801_v17 }
 0x17a   : > { %4815 = vmatprep.mubr.msk.f32.mxu0 %vm467_vm2, %v7657_v60  ;;  %v910_v11 = vmul.f32 0.2, %v802_v43  ;;  %vm856_vm3 = vcmp.gt.f32.partialorder %v802_v43, 0.0 }
 0x17c   : > { %4796 = vmatmul.mubr.msk.f32.gmra.mxu1 %vm467_vm2, %v5669_v27  ;;  %v6418_v27 = vsel %vm855_vm15, %v801_v17, %v909_v14  ;;  %v7665_v14 = vld [vmem:[#allocation32_spill] sm:$0xff]  ;;  %v7666_v17 = vld [vmem:[#allocation33_spill] sm:$0xff] }
 0x17d   : > { %4816 = vmatmul.mubr.msk.f32.gmra.mxu0 %vm467_vm2, %v7658_v23  ;;  %4798 = vmatprep.mubr.msk.f32.mxu1 %vm467_vm2, %v5726_v47  ;;  %v7662_v47 = vld [vmem:[#allocation28_spill] sm:$0xff] }
 0x17e   : > { %4818 = vmatprep.mubr.msk.f32.mxu0 %vm467_vm2, %v7659_v57 }
 0x180   : > { %4799 = vmatmul.mubr.msk.f32.gmra.mxu1 %vm467_vm2, %v5734_v41  ;;  %v6428_v41 = vsel %vm856_vm3, %v802_v43, %v910_v11  ;;  %v7667_v43 = vld [vmem:[#allocation34_spill] sm:$0xff]  ;;  %v7668_v11 = vld [vmem:[#allocation35_spill] sm:$0xff] }
 0x181   : > { %4819 = vmatmul.mubr.msk.f32.gmra.mxu0 %vm467_vm2, %v7660_v8  ;;  %4801 = vmatprep.mubr.msk.f32.mxu1 %vm467_vm2, %v5773_v7 }
 0x182   : > { %4821 = vmatprep.mubr.msk.f32.mxu0 %vm467_vm2, %v7661_v20  ;;  %v7664_v20 = vld [vmem:[#allocation30_spill] sm:$0xff] }
 0x184   : > { %4802 = vmatmul.mubr.msk.f32.gmra.mxu1 %vm467_vm2, %v5783_v36 }
 0x185   : > { %4822 = vmatmul.mubr.msk.f32.gmra.mxu0 %vm467_vm2, %v7662_v47  ;;  %4804 = vmatprep.mubr.msk.f32.mxu1 %vm467_vm2, %v6418_v27 }
 0x186   : > { %4824 = vmatprep.mubr.msk.f32.mxu0 %vm467_vm2, %v7663_v24 }
 0x188   : > { %4805 = vmatmul.mubr.msk.f32.gmra.mxu1 %vm467_vm2, %v6428_v41 }
 0x189   : > { %4825 = vmatmul.mubr.msk.f32.gmra.mxu0 %vm467_vm2, %v7664_v20  ;;  %4859 = vmatprep.mubr.msk.f32.mxu1 %vm467_vm2, %v6095_v2  ;;  %v7669_v2 = vld [vmem:[#allocation36_spill] sm:$0xff] }
 0x18a   : > { %4827 = vmatprep.mubr.msk.f32.mxu0 %vm467_vm2, %v7665_v14 }
 0x18c   : > { %4860 = vmatmul.mubr.msk.f32.vlgmr.msra.gmra.mxu1 %vm467_vm2, %v6110_v10  ;;  %v7670_v10 = vld [vmem:[#allocation37_spill] sm:$0xff] }
 0x18d   : > { %4828 = vmatmul.mubr.msk.f32.gmra.mxu0 %vm467_vm2, %v7666_v17  ;;  %4862 = vmatprep.mubr.msk.f32.mxu1 %vm467_vm2, %v6116_v59  ;;  %v7671_v59 = vld [vmem:[#allocation38_spill] sm:$0xff] }
 0x18e   : > { %4830 = vmatprep.mubr.msk.f32.mxu0 %vm467_vm2, %v7667_v43  ;;  %4958 = vmatpush3.msk.msra.mxu1 %vm1164_vm0, %v6235_v49  ;;  %v7672_v49 = vld [vmem:[#allocation41_spill] sm:$0xff] }
 0x190   : > { %4863 = vmatmul.mubr.msk.f32.gmra.mxu1 %vm467_vm2, %v6131_v54  ;;  %v7673_v54 = vld [vmem:[#allocation42_spill] sm:$0xff] }
 0x191   : > { %4831 = vmatmul.mubr.msk.f32.gmra.mxu0 %vm467_vm2, %v7668_v11  ;;  %4865 = vmatprep.mubr.msk.f32.mxu1 %vm467_vm2, %v6137_v5  ;;  %v5094_v5 = vld [vmem:[%s5159_s28 + $0x190] sm:$0x3] }
 0x192   : > { %4833 = vmatprep.mubr.msk.f32.mxu0 %vm467_vm2, %v7669_v2 }
 0x194   : > { %4866 = vmatmul.mubr.msk.f32.gmra.mxu1 %vm467_vm2, %v6148_v34  ;;  %v743_v34 = vmul.f32 %v5094_v5, %v5565_v48  ;;  %v7677_v5 = vld [vmem:[#allocation19_spill] sm:$0xff] }
 0x195   : > { %4834 = vmatmul.mubr.msk.f32.gmra.mxu0 %vm467_vm2, %v7670_v10  ;;  %4868 = vmatprep.mubr.msk.f32.mxu1 %vm467_vm2, %v6154_v21  ;;  %v7675_v21 = vld [vmem:[#allocation15_spill] sm:$0xff] }
 0x196   : > { %4836 = vmatprep.mubr.msk.f32.mxu0 %vm467_vm2, %v7671_v59  ;;  %v7674_v59 = vld [vmem:[#allocation50_spill] sm:$0xff] }
 0x198   : > { %4869 = vmatmul.mubr.msk.f32.gmra.mxu1 %vm467_vm2, %v6165_v52  ;;  %v803_v52 = vadd.f32 %v5579_v15, %v743_v34  ;;  %v7679_v34 = vld [vmem:[#allocation10_spill] sm:$0xff] }
 0x199   : > { %4837 = vmatmul.mubr.msk.f32.gmra.mxu0 %vm467_vm2, %v6052_v50  ;;  %4871 = vmatprep.mubr.msk.f32.mxu1 %vm467_vm2, %v6171_v0  ;;  %v7678_v0 = vld [vmem:[#allocation21_spill] sm:$0xff] }
 0x19a   : > { %4839 = vmatprep.mubr.msk.f32.mxu0 %vm467_vm2, %v7672_v49  ;;  %v7676_v49 = vld [vmem:[#allocation16_spill] sm:$0xff]  ;;  %vm857_vm4 = vcmp.gt.f32.partialorder %v803_v52, 0.0 }
 0x19c   : > { %4872 = vmatmul.mubr.msk.f32.gmra.mxu1 %vm467_vm2, %v7674_v59  ;;  %v911_v59 = vmul.f32 0.2, %v803_v52 }
 0x19d   : > { %4840 = vmatmul.mubr.msk.f32.gmra.mxu0 %vm467_vm2, %v7673_v54  ;;  %4874 = vmatprep.mubr.msk.f32.mxu1 %vm467_vm2, %v6188_v32  ;;  %v2362_v32 = vrot.slane %v6428_v41, 1 }
 0x19e   : > { %4842 = vmatprep.mubr.msk.f32.mxu0 %vm467_vm2, %v7675_v21 }
 0x1a0   : > { %4875 = vmatmul.mubr.msk.f32.gmra.mxu1 %vm467_vm2, %v6199_v37  ;;  %v2361_v37 = vrot.slane %v6418_v27, 1 }
 0x1a1   : > { %4843 = vmatmul.mubr.msk.f32.gmra.mxu0 %vm467_vm2, %v7676_v49  ;;  %4877 = vmatprep.mubr.msk.f32.mxu1 %vm467_vm2, %v6205_v58  ;;  %v7680_v58 = vld [vmem:[#allocation22_spill] sm:$0xff] }
 0x1a2   : > { %4845 = vmatprep.mubr.msk.f32.mxu0 %vm467_vm2, %v7677_v5  ;;  %v965_v5 = vsel %vm857_vm4, %v803_v52, %v911_v59 }
 0x1a4   : > { %4878 = vmatmul.mubr.msk.f32.gmra.mxu1 %vm467_vm2, %v6216_v40  ;;  %v2364_v40 = vrot.slane %v965_v5, 1 }
 0x1a5   : > { %4846 = vmatmul.mubr.msk.f32.gmra.mxu0 %vm467_vm2, %v7678_v0  ;;  %4880 = vmatprep.mubr.msk.f32.mxu1 %vm467_vm2, %v6222_v51  ;;  %v7681_v0 = vld [vmem:[#allocation12_spill] sm:$0xff]  ;;  %v6510_v51 = vsel %vm354_vm1, %v2361_v37, %v2362_v32 }
 0x1a6   : > { %4848 = vmatprep.mubr.msk.f32.mxu0 %vm467_vm2, %v7679_v34  ;;  %v7682_v34 = vld [vmem:[#allocation7_spill] sm:$0xff]  ;;  %v6519_v59 = vsel %vm354_vm1, %v2362_v32, %v2364_v40 }
 0x1a8   : > { %4881 = vmatmul.mubr.msk.f32.gmra.mxu1 %vm467_vm2, %v6240_v28  ;;  %v4611_v52 = vpop.f32.mrf.mxu0 }
 0x1a9   : > { %4849 = vmatmul.mubr.msk.f32.gmra.mxu0 %vm467_vm2, %v7680_v58  ;;  %4883 = vmatprep.mubr.msk.f32.mxu1 %vm467_vm2, %v6246_v6 }
 0x1aa   : > { %4851 = vmatprep.mubr.msk.f32.mxu0 %vm467_vm2, %v7681_v0  ;;  %v1234_v32 = vpop.f32.mrf.mxu0 }
 0x1ab   : > { %v6527_v37 = vpop.f32.mrf.mxu1 }
 0x1ac   : > { %4884 = vmatmul.mubr.msk.f32.gmra.mxu1 %vm467_vm2, %v6259_v56  ;;  %7683 = vst [vmem:[#allocation20_spill] sm:$0xff] %v6527_v37 }
 0x1ad   : > { %4852 = vmatmul.mubr.msk.f32.gmra.mxu0 %vm467_vm2, %v7682_v34  ;;  %4886 = vmatprep.mubr.msk.f32.mxu1 %vm467_vm2, %v6265_v61  ;;  %v6537_v40 = vpop.f32.mrf.mxu1  ;;  %v7685_v61 = vld [vmem:[#allocation23_spill] sm:$0xff] }
 0x1ae   : > { %4854 = vmatprep.mubr.msk.f32.mxu0 %vm467_vm2, %v6510_v51  ;;  %7684 = vst [vmem:[#allocation9_spill] sm:$0xff] %v6537_v40  ;;  %v2633_v40 = vrot.slane %v6428_v41, 2 }
 0x1b0   : > { %4887 = vmatmul.mubr.msk.f32.gmra.mxu1 %vm467_vm2, %v6276_v30 }
 0x1b1   : > { %4855 = vmatmul.mubr.msk.f32.gmra.mxu0 %vm467_vm2, %v6519_v59  ;;  %4889 = vmatprep.mubr.msk.f32.mxu1 %vm467_vm2, %v6282_v63  ;;  %v4614_v37 = vpop.f32.mrf.mxu0 }
 0x1b2   : > { %4909 = vmatprep.mubr.msk.f32.mxu0 %vm467_vm2, %v5702_v3 }
 0x1b3   : > { %v6549_v3 = vpop.f32.mrf.mxu1 }
 0x1b4   : > { %4890 = vmatmul.mubr.msk.f32.gmra.mxu1 %vm467_vm2, %v6293_v44  ;;  %7686 = vst [vmem:[#allocation11_spill] sm:$0xff] %v6549_v3 }
 0x1b5   : > { %4910 = vmatmul.mubr.msk.f32.vlgmr.msra.gmra.mxu0 %vm467_vm2, %v5711_v4  ;;  %4892 = vmatprep.mubr.msk.f32.mxu1 %vm467_vm2, %v6299_v16  ;;  %v7687_v4 = vld [vmem:[#allocation6_spill] sm:$0xff] }
 0x1b6   : > { %4912 = vmatprep.mubr.msk.f32.mxu0 %vm467_vm2, %v7685_v61  ;;  %5008 = vmatpush3.msk.msra.mxu0 %vm1164_vm0, %v6378_v42  ;;  %v1244_v61 = vpop.f32.mrf.mxu0  ;;  %v6559_v42 = vpop.f32.mrf.mxu1 }
 0x1b7   : > { %7688 = vst [vmem:[#allocation4_spill] sm:$0xff] %v6559_v42  ;;  %v7691_v42 = vld [vmem:[#allocation27_spill] sm:$0xff] }
 0x1b8   : > { %4893 = vmatmul.mubr.msk.f32.gmra.mxu1 %vm467_vm2, %v6310_v46 }
 0x1b9   : > { %4913 = vmatmul.mubr.msk.f32.gmra.mxu0 %vm467_vm2, %v5765_v13  ;;  %4895 = vmatprep.mubr.msk.f32.mxu1 %vm467_vm2, %v6316_v31  ;;  %v7689_v13 = vld [vmem:[#allocation24_spill] sm:$0xff] }
 0x1ba   : > { %4915 = vmatprep.mubr.msk.f32.mxu0 %vm467_vm2, %v7687_v4  ;;  %v2632_v4 = vrot.slane %v6418_v27, 2 }
 0x1bc   : > { %4896 = vmatmul.mubr.msk.f32.gmra.mxu1 %vm467_vm2, %v6327_v1  ;;  %v4617_v3 = vpop.f32.mrf.mxu0  ;;  %v6578_v1 = vsel %vm1685_vm14, %v2632_v4, %v2633_v40 }
 0x1bd   : > { %4916 = vmatmul.mubr.msk.f32.gmra.mxu0 %vm467_vm2, %v5820_v19  ;;  %4898 = vmatprep.mubr.msk.f32.mxu1 %vm467_vm2, %v6333_v29 }
 0x1be   : > { %4918 = vmatprep.mubr.msk.f32.mxu0 %vm467_vm2, %v7689_v13  ;;  %v6571_v19 = vpop.f32.mrf.mxu1  ;;  %v2635_v13 = vrot.slane %v965_v5, 2  ;;  %v1254_v29 = vpop.f32.mrf.mxu0 }
 0x1bf   : > { %7690 = vst [vmem:[#allocation5_spill] sm:$0xff] %v6571_v19  ;;  %v7693_v19 = vld [vmem:[#allocation31_spill] sm:$0xff] }
 0x1c0   : > { %4899 = vmatmul.mubr.msk.f32.gmra.mxu1 %vm467_vm2, %v6344_v12  ;;  %v6591_v5 = vsel %vm1685_vm14, %v2633_v40, %v2635_v13 }
 0x1c1   : > { %4919 = vmatmul.mubr.msk.f32.gmra.mxu0 %vm467_vm2, %v5853_v39  ;;  %4901 = vmatprep.mubr.msk.f32.mxu1 %vm467_vm2, %v6350_v9  ;;  %v6584_v39 = vpop.f32.mrf.mxu1 }
 0x1c2   : > { %4921 = vmatprep.mubr.msk.f32.mxu0 %vm467_vm2, %v7691_v42  ;;  %7692 = vst [vmem:[#allocation8_spill] sm:$0xff] %v6584_v39 }
 0x1c4   : > { %4902 = vmatmul.mubr.msk.f32.gmra.mxu1 %vm467_vm2, %v6359_v53 }
 0x1c5   : > { %4922 = vmatmul.mubr.msk.f32.gmra.mxu0 %vm467_vm2, %v5883_v26  ;;  %4904 = vmatprep.mubr.msk.f32.mxu1 %vm467_vm2, %v6578_v1 }
 0x1c6   : > { %4924 = vmatprep.mubr.msk.f32.mxu0 %vm467_vm2, %v7693_v19  ;;  %v4620_v42 = vpop.f32.mrf.mxu0 }
 0x1c8   : > { %v6595_v4 = vpop.f32.mrf.mxu1  ;;  %4905 = vmatmul.mubr.msk.f32.gmra.mxu1 %vm467_vm2, %v6591_v5  ;;  %v1264_v26 = vpop.f32.mrf.mxu0 }
 0x1c9   : > { %4925 = vmatmul.mubr.msk.f32.gmra.mxu0 %vm467_vm2, %v5933_v45  ;;  %4959 = vmatprep.mubr.msk.f32.mxu1 %vm467_vm2, %v7655_v33 }
 0x1ca   : > { %4927 = vmatprep.mubr.msk.f32.mxu0 %vm467_vm2, %v5950_v25  ;;  %v6603_v19 = vpop.f32.mrf.mxu1 }
 0x1cc   : > { %v4623_v40 = vpop.f32.mrf.mxu0  ;;  %v4661_v13 = vpop.f32.mrf.mxu1  ;;  %4960 = vmatmul.mubr.msk.f32.vlgmr.msra.gmra.mxu1 %vm467_vm2, %v7656_v22 }
 0x1cd   : > { %4928 = vmatmul.mubr.msk.f32.gmra.mxu0 %vm467_vm2, %v5962_v35  ;;  %v6611_v45 = vadd.f32 %v4661_v13, %v4611_v52  ;;  %4962 = vmatprep.mubr.msk.f32.mxu1 %vm467_vm2, %v7657_v60 }
 0x1ce   : > { %4930 = vmatprep.mubr.msk.f32.mxu0 %vm467_vm2, %v5988_v62  ;;  %v1274_v25 = vpop.f32.mrf.mxu0  ;;  %v1526_v33 = vpop.f32.mrf.mxu1 }
 0x1cf   : > { %v6615_v39 = vadd.f32 %v1526_v33, %v1234_v32  ;;  %v7696_v33 = vld [vmem:[#allocation40_spill] sm:$0xff] }
 0x1d0   : > { %v4664_v35 = vpop.f32.mrf.mxu1  ;;  %4963 = vmatmul.mubr.msk.f32.gmra.mxu1 %vm467_vm2, %v7658_v23  ;;  %v7694_v23 = vld [vmem:[#allocation39_spill] sm:$0xff] }
 0x1d1   : > { %4931 = vmatmul.mubr.msk.f32.gmra.mxu0 %vm467_vm2, %v5992_v18  ;;  %v6623_v62 = vadd.f32 %v4664_v35, %v4614_v37  ;;  %4965 = vmatprep.mubr.msk.f32.mxu1 %vm467_vm2, %v7659_v57  ;;  %v7695_v37 = vld [vmem:[#allocation26_spill] sm:$0xff] }
 0x1d2   : > { %4933 = vmatprep.mubr.msk.f32.mxu0 %vm467_vm2, %v6019_v55  ;;  %v4626_v22 = vpop.f32.mrf.mxu0  ;;  %v1536_v60 = vpop.f32.mrf.mxu1 }
 0x1d3   : > { %v6627_v52 = vadd.f32 %v1536_v60, %v1244_v61 }
 0x1d4   : > { %v1284_v18 = vpop.f32.mrf.mxu0  ;;  %v4667_v32 = vpop.f32.mrf.mxu1  ;;  %4966 = vmatmul.mubr.msk.f32.gmra.mxu1 %vm467_vm2, %v7660_v8  ;;  %v7697_v8 = vld [vmem:[#allocation13_spill] sm:$0xff] }
 0x1d5   : > { %4934 = vmatmul.mubr.msk.f32.gmra.mxu0 %vm467_vm2, %v6021_v38  ;;  %v6635_v55 = vadd.f32 %v4667_v32, %v4617_v3  ;;  %4968 = vmatprep.mubr.msk.f32.mxu1 %vm467_vm2, %v7695_v37  ;;  %v7698_v37 = vld [vmem:[#allocation14_spill] sm:$0xff] }
 0x1d6   : > { %4936 = vmatprep.mubr.msk.f32.mxu0 %vm467_vm2, %v7694_v23  ;;  %v4629_v57 = vpop.f32.mrf.mxu0  ;;  %v1546_v61 = vpop.f32.mrf.mxu1  ;;  %v303_v23 = vld [vmem:[%s5159_s28 + $0x198] sm:$0xff] }
 0x1d7   : > { %v6639_v13 = vadd.f32 %v1546_v61, %v1254_v29 }
 0x1d8   : > { %v1294_v38 = vpop.f32.mrf.mxu0  ;;  %v4670_v35 = vpop.f32.mrf.mxu1  ;;  %4969 = vmatmul.mubr.msk.f32.gmra.mxu1 %vm467_vm2, %v7662_v47  ;;  %v7699_v47 = vld [vmem:[#allocation17_spill] sm:$0xff] }
 0x1d9   : > { %4937 = vmatmul.mubr.msk.f32.gmra.mxu0 %vm467_vm2, %v7696_v33  ;;  %v6647_v3 = vadd.f32 %v4670_v35, %v4620_v42  ;;  %4971 = vmatprep.mubr.msk.f32.mxu1 %vm467_vm2, %v7663_v24  ;;  %v304_v35 = vld [vmem:[%s5159_s28 + $0x1a0] sm:$0xff] }
 0x1da   : > { %4939 = vmatprep.mubr.msk.f32.mxu0 %vm467_vm2, %v7697_v8  ;;  %v1556_v60 = vpop.f32.mrf.mxu1 }
 0x1db   : > { %v6651_v32 = vadd.f32 %v1556_v60, %v1264_v26  ;;  %v744_v26 = vmul.f32 %v5565_v48, %v303_v23  ;;  %v7700_v60 = vld [vmem:[#allocation18_spill] sm:$0xff] }
 0x1dc   : > { %v4632_v29 = vpop.f32.mrf.mxu0  ;;  %v4673_v61 = vpop.f32.mrf.mxu1  ;;  %4972 = vmatmul.mubr.msk.f32.gmra.mxu1 %vm467_vm2, %v7664_v20  ;;  %v7701_v20 = vld [vmem:[#allocation2_spill] sm:$0xff] }
 0x1dd   : > { %4940 = vmatmul.mubr.msk.f32.gmra.mxu0 %vm467_vm2, %v7698_v37  ;;  %v6660_v33 = vadd.f32 %v4673_v61, %v4623_v40  ;;  %4974 = vmatprep.mubr.msk.f32.mxu1 %vm467_vm2, %v7665_v14  ;;  %v745_v14 = vmul.f32 %v5565_v48, %v304_v35  ;;  %v804_v23 = vadd.f32 %v5579_v15, %v744_v26 }
 0x1de   : > { %4942 = vmatprep.mubr.msk.f32.mxu0 %vm467_vm2, %v7699_v47  ;;  %v1304_v42 = vpop.f32.mrf.mxu0  ;;  %v1566_v24 = vpop.f32.mrf.mxu1 }
 0x1df   : > { %v6666_v8 = vadd.f32 %v1566_v24, %v1274_v25  ;;  %v912_v35 = vmul.f32 0.2, %v804_v23  ;;  %vm858_vm0 = vcmp.gt.f32.partialorder %v804_v23, 0.0 }
 0x1e0   : > { %v4676_v37 = vpop.f32.mrf.mxu1  ;;  %4975 = vmatmul.mubr.msk.f32.gmra.mxu1 %vm467_vm2, %v7666_v17 }
 0x1e1   : > { %4943 = vmatmul.mubr.msk.f32.gmra.mxu0 %vm467_vm2, %v7700_v60  ;;  %v6674_v61 = vadd.f32 %v4676_v37, %v4626_v22  ;;  %4977 = vmatprep.mubr.msk.f32.mxu1 %vm467_vm2, %v7667_v43  ;;  %v7702_v60 = vld [vmem:[#allocation3_spill] sm:$0xff]  ;;  %v805_v22 = vadd.f32 %v5579_v15, %v745_v14  ;;  %v6709_v14 = vsel %vm858_vm0, %v804_v23, %v912_v35 }
 0x1e2   : > { %4945 = vmatprep.mubr.msk.f32.mxu0 %vm467_vm2, %v7701_v20  ;;  %v4635_v40 = vpop.f32.mrf.mxu0  ;;  %v1576_v25 = vpop.f32.mrf.mxu1 }
 0x1e3   : > { %v6682_v24 = vadd.f32 %v1576_v25, %v1284_v18  ;;  %vm859_vm5 = vcmp.gt.f32.partialorder %v805_v22, 0.0 }
 0x1e4   : > { %v6680_v47 = vpop.f32.mrf.mxu0  ;;  %v4679_v17 = vpop.f32.mrf.mxu1  ;;  %4978 = vmatmul.mubr.msk.f32.gmra.mxu1 %vm467_vm2, %v7668_v11 }
 0x1e5   : > { %4946 = vmatmul.mubr.msk.f32.gmra.mxu0 %vm467_vm2, %v7702_v60  ;;  %v6690_v43 = vadd.f32 %v4679_v17, %v4629_v57  ;;  %4980 = vmatprep.mubr.msk.f32.mxu1 %vm467_vm2, %v7669_v2  ;;  %v913_v2 = vmul.f32 0.2, %v805_v22  ;;  %v7703_v57 = vld [vmem:[#allocation38_spill] sm:$0xff]  ;;  %v7704_v60 = vld [vmem:[#allocation41_spill] sm:$0xff]  ;;  %v305_v17 = vld [vmem:[%s5159_s28 + $0x1a8] sm:$0x3] }
 0x1e6   : > { %4948 = vmatprep.mubr.msk.f32.mxu0 %vm467_vm2, %v5773_v7  ;;  %v1586_v18 = vpop.f32.mrf.mxu1 }
 0x1e7   : > { %v4638_v26 = vpop.f32.mrf.mxu0  ;;  %v6695_v37 = vadd.f32 %v1586_v18, %v1294_v38 }
 0x1e8   : > { %v4682_v20 = vpop.f32.mrf.mxu1  ;;  %4981 = vmatmul.mubr.msk.f32.gmra.mxu1 %vm467_vm2, %v7670_v10 }
 0x1e9   : > { %4949 = vmatmul.mubr.msk.f32.gmra.mxu0 %vm467_vm2, %v5783_v36  ;;  %v6699_v11 = vpop.f32.mrf.mxu0  ;;  %v6705_v7 = vadd.f32 %v4682_v20, %v4632_v29  ;;  %4983 = vmatprep.mubr.msk.f32.mxu1 %vm467_vm2, %v7703_v57  ;;  %v6721_v29 = vsel %vm859_vm5, %v805_v22, %v913_v2  ;;  %v746_v20 = vmul.f32 %v5565_v48, %v305_v17  ;;  %v7706_v57 = vld [vmem:[#allocation44_spill] sm:$0xff] }
 0x1ea   : > { %4951 = vmatprep.mubr.msk.f32.mxu0 %vm467_vm2, %v6418_v27  ;;  %v1596_v36 = vpop.f32.mrf.mxu1 }
 0x1eb   : > { %v4641_v38 = vpop.f32.mrf.mxu0  ;;  %v6711_v25 = vadd.f32 %v1596_v36, %v1304_v42  ;;  %v806_v17 = vadd.f32 %v5579_v15, %v746_v20  ;;  %v7712_v15 = vld [vmem:[#allocation10_spill] sm:$0xff] }
 0x1ec   : > { %v4685_v27 = vpop.f32.mrf.mxu1  ;;  %4984 = vmatmul.mubr.msk.f32.gmra.mxu1 %vm467_vm2, %v6052_v50  ;;  %v7705_v50 = vld [vmem:[#allocation43_spill] sm:$0xff] }
 0x1ed   : > { %4952 = vmatmul.mubr.msk.f32.gmra.mxu0 %vm467_vm2, %v6428_v41  ;;  %v6715_v10 = vpop.f32.mrf.mxu0  ;;  %v6723_v23 = vadd.f32 %v4685_v27, %v4635_v40  ;;  %4986 = vmatprep.mubr.msk.f32.mxu1 %vm467_vm2, %v7704_v60  ;;  %v7708_v27 = vld [vmem:[#allocation19_spill] sm:$0xff]  ;;  %vm860_vm6 = vcmp.gt.f32.partialorder %v806_v17, 0.0 }
 0x1ee   : > { %4954 = vmatprep.mubr.msk.f32.mxu0 %vm467_vm2, %v6709_v14  ;;  %v6727_v42 = vpop.f32.mrf.mxu1 }
 0x1f0   : > { %v4688_v18 = vpop.f32.mrf.mxu1  ;;  %4987 = vmatmul.mubr.msk.f32.gmra.mxu1 %vm467_vm2, %v7673_v54 }
 0x1f1   : > { %v4644_v41 = vpop.f32.mrf.mxu0  ;;  %4955 = vmatmul.mubr.msk.f32.gmra.mxu0 %vm467_vm2, %v6721_v29  ;;  %v6736_v22 = vadd.f32 %v4688_v18, %v4638_v26  ;;  %4989 = vmatprep.mubr.msk.f32.mxu1 %vm467_vm2, %v7675_v21  ;;  %v7707_v26 = vld [vmem:[#allocation45_spill] sm:$0xff] }
 0x1f2   : > { %5009 = vmatprep.mubr.msk.f32.mxu0 %vm467_vm2, %v7705_v50  ;;  %v6742_v35 = vpop.f32.mrf.mxu1  ;;  %v7709_v50 = vld [vmem:[#allocation46_spill] sm:$0xff] }
 0x1f3   : > { %v6740_v40 = vpop.f32.mrf.mxu0 }
 0x1f4   : > { %v4691_v36 = vpop.f32.mrf.mxu1  ;;  %4990 = vmatmul.mubr.msk.f32.gmra.mxu1 %vm467_vm2, %v7676_v49 }
 0x1f5   : > { %v4711_v2 = vpop.f32.mrf.mxu0  ;;  %5010 = vmatmul.mubr.msk.f32.vlgmr.msra.gmra.mxu0 %vm467_vm2, %v7706_v57  ;;  %v6754_v21 = vadd.f32 %v4691_v36, %v4641_v38  ;;  %4992 = vmatprep.mubr.msk.f32.mxu1 %vm467_vm2, %v7708_v27  ;;  %v7711_v57 = vld [vmem:[#allocation47_spill] sm:$0xff] }
 0x1f6   : > { %v6750_v54 = vadd.f32 %v4711_v2, %v6611_v45  ;;  %5012 = vmatprep.mubr.msk.f32.mxu0 %vm467_vm2, %v7707_v26  ;;  %v6758_v60 = vpop.f32.mrf.mxu1  ;;  %v7710_v2 = vld [vmem:[#allocation21_spill] sm:$0xff]  ;;  %v914_v26 = vmul.f32 0.2, %v806_v17 }
 0x1f7   : > { %v1901_v48 = vpop.f32.mrf.mxu0 }
 0x1f8   : > { %v6762_v18 = vadd.f32 %v1901_v48, %v6615_v39  ;;  %v4694_v45 = vpop.f32.mrf.mxu1  ;;  %4993 = vmatmul.mubr.msk.f32.gmra.mxu1 %vm467_vm2, %v7710_v2 }
 0x1f9   : > { %v4714_v49 = vpop.f32.mrf.mxu0  ;;  %5013 = vmatmul.mubr.msk.f32.gmra.mxu0 %vm467_vm2, %v7709_v50  ;;  %v6773_v36 = vadd.f32 %v4694_v45, %v4644_v41  ;;  %4995 = vmatprep.mubr.msk.f32.mxu1 %vm467_vm2, %v7712_v15  ;;  %v7713_v50 = vld [vmem:[#allocation48_spill] sm:$0xff]  ;;  %v6799_v15 = vsel %vm860_vm6, %v806_v17, %v914_v26 }
 0x1fa   : > { %v6769_v38 = vadd.f32 %v4714_v49, %v6623_v62  ;;  %5015 = vmatprep.mubr.msk.f32.mxu0 %vm467_vm2, %v7711_v57  ;;  %v6777_v20 = vpop.f32.mrf.mxu1  ;;  %v7714_v49 = vld [vmem:[#allocation49_spill] sm:$0xff]  ;;  %v3173_v57 = vrot.slane %v6721_v29, 1 }
 0x1fb   : > { %v1911_v39 = vpop.f32.mrf.mxu0 }
 0x1fc   : > { %v6780_v27 = vadd.f32 %v1911_v39, %v6627_v52  ;;  %v6784_v62 = vpop.f32.mrf.mxu1  ;;  %4996 = vmatmul.mubr.msk.f32.gmra.mxu1 %vm467_vm2, %v7680_v58  ;;  %v3172_v52 = vrot.slane %v6709_v14, 1  ;;  %v7715_v39 = vld [vmem:[#allocation50_spill] sm:$0xff] }
 0x1fd   : > { %v4717_v48 = vpop.f32.mrf.mxu0  ;;  %5016 = vmatmul.mubr.msk.f32.gmra.mxu0 %vm467_vm2, %v7713_v50  ;;  %4998 = vmatprep.mubr.msk.f32.mxu1 %vm467_vm2, %v7681_v0  ;;  %v7716_v50 = vld [vmem:[#allocation51_spill] sm:$0xff] }
 0x1fe   : > { %v6789_v41 = vadd.f32 %v4717_v48, %v6635_v55  ;;  %5018 = vmatprep.mubr.msk.f32.mxu0 %vm467_vm2, %v7714_v49  ;;  %v6796_v2 = vpop.f32.mrf.mxu1  ;;  %v3174_v49 = vsel %vm354_vm1, %v3172_v52, %v3173_v57 }
 0x1ff   : > { %v1921_v45 = vpop.f32.mrf.mxu0 }
 0x200   : > { %v6802_v58 = vadd.f32 %v1921_v45, %v6639_v13  ;;  %v6806_v48 = vpop.f32.mrf.mxu1  ;;  %4999 = vmatmul.mubr.msk.f32.gmra.mxu1 %vm467_vm2, %v7682_v34  ;;  %v3175_v13 = vrot.slane %v6799_v15, 1 }
 0x201   : > { %v4720_v55 = vpop.f32.mrf.mxu0  ;;  %5019 = vmatmul.mubr.msk.f32.gmra.mxu0 %vm467_vm2, %v7715_v39  ;;  %5001 = vmatprep.mubr.msk.f32.mxu1 %vm467_vm2, %v6510_v51  ;;  %v7718_v39 = vld [vmem:[#allocation52_spill] sm:$0xff] }
 0x202   : > { %v6811_v0 = vadd.f32 %v4720_v55, %v6647_v3  ;;  %5021 = vmatprep.mubr.msk.f32.mxu0 %vm467_vm2, %v7716_v50  ;;  %v6818_v26 = vpop.f32.mrf.mxu1  ;;  %v7719_v55 = vld [vmem:[#allocation53_spill] sm:$0xff] }
 0x203   : > { %v1931_v17 = vpop.f32.mrf.mxu0  ;;  %7717 = vst [vmem:[#allocation25_spill] sm:$0xff] %v6818_v26  ;;  %v7720_v26 = vld [vmem:[#allocation54_spill] sm:$0xff] }
 0x204   : > { %v6822_v45 = vadd.f32 %v1931_v17, %v6651_v32  ;;  %v6826_v3 = vpop.f32.mrf.mxu1  ;;  %5002 = vmatmul.mubr.msk.f32.gmra.mxu1 %vm467_vm2, %v6519_v59  ;;  %v3176_v32 = vsel %vm354_vm1, %v3173_v57, %v3175_v13 }
 0x205   : > { %v4723_v34 = vpop.f32.mrf.mxu0  ;;  %5022 = vmatmul.mubr.msk.f32.gmra.mxu0 %vm467_vm2, %v7718_v39  ;;  %5004 = vmatprep.mubr.msk.f32.mxu1 %vm467_vm2, %v3174_v49 }
 0x206   : > { %v6831_v51 = vadd.f32 %v4723_v34, %v6660_v33  ;;  %5024 = vmatprep.mubr.msk.f32.mxu0 %vm467_vm2, %v7719_v55  ;;  %v6837_v50 = vpop.f32.mrf.mxu1  ;;  %v7721_v34 = vld [vmem:[#allocation55_spill] sm:$0xff] }
 0x207   : > { %v1941_v52 = vpop.f32.mrf.mxu0 }
 0x208   : > { %v6840_v17 = vadd.f32 %v1941_v52, %v6666_v8  ;;  %v4706_v59 = vpop.f32.mrf.mxu1  ;;  %5005 = vmatmul.mubr.msk.f32.gmra.mxu1 %vm467_vm2, %v3176_v32 }
 0x209   : > { %v4726_v39 = vpop.f32.mrf.mxu0  ;;  %5025 = vmatmul.mubr.msk.f32.gmra.mxu0 %vm467_vm2, %v7720_v26  ;;  %v6851_v57 = vadd.f32 %v4706_v59, %v6595_v4 }
 0x20a   : > { %v6846_v33 = vadd.f32 %v4726_v39, %v6674_v61  ;;  %5027 = vmatprep.mubr.msk.f32.mxu0 %vm467_vm2, %v7721_v34  ;;  %v6853_v49 = vpop.f32.mrf.mxu1 }
 0x20b   : > { %v1951_v13 = vpop.f32.mrf.mxu0 }
 0x20c   : > { %v6856_v8 = vadd.f32 %v1951_v13, %v6682_v24  ;;  %v4761_v26 = vpop.f32.mrf.mxu1 }
 0x20d   : > { %v4729_v55 = vpop.f32.mrf.mxu0  ;;  %5028 = vmatmul.mubr.msk.f32.gmra.mxu0 %vm467_vm2, %v6240_v28  ;;  %v6866_v4 = vadd.f32 %v4761_v26, %v6750_v54 }
 0x20e   : > { %v6861_v61 = vadd.f32 %v4729_v55, %v6690_v43  ;;  %5030 = vmatprep.mubr.msk.f32.mxu0 %vm467_vm2, %v6246_v6  ;;  %v2169_v52 = vpop.f32.mrf.mxu1  ;;  %v7722_v6 = vld [vmem:[#allocation56_spill] sm:$0xff] }
 0x20f   : > { %v1961_v32 = vpop.f32.mrf.mxu0  ;;  %v6872_v24 = vadd.f32 %v2169_v52, %v6762_v18 }
 0x210   : > { %v6869_v39 = vadd.f32 %v1961_v32, %v6695_v37  ;;  %v4764_v28 = vpop.f32.mrf.mxu1 }
 0x211   : > { %v4732_v59 = vpop.f32.mrf.mxu0  ;;  %5031 = vmatmul.mubr.msk.f32.gmra.mxu0 %vm467_vm2, %v6259_v56  ;;  %v6882_v54 = vadd.f32 %v4764_v28, %v6769_v38 }
 0x212   : > { %v6877_v43 = vadd.f32 %v4732_v59, %v6705_v7  ;;  %5033 = vmatprep.mubr.msk.f32.mxu0 %vm467_vm2, %v7722_v6  ;;  %v2179_v37 = vpop.f32.mrf.mxu1  ;;  %v1607_v7 = vadd.f32 %v6727_v42, %v6680_v47 }
 0x213   : > { %v1971_v34 = vpop.f32.mrf.mxu0  ;;  %v6888_v18 = vadd.f32 %v2179_v37, %v6780_v27  ;;  %v7723_v37 = vld [vmem:[#allocation57_spill] sm:$0xff] }
 0x214   : > { %v6885_v13 = vadd.f32 %v1971_v34, %v6711_v25  ;;  %v4767_v56 = vpop.f32.mrf.mxu1 }
 0x215   : > { %v4735_v55 = vpop.f32.mrf.mxu0  ;;  %5034 = vmatmul.mubr.msk.f32.gmra.mxu0 %vm467_vm2, %v6276_v30  ;;  %v6900_v25 = vadd.f32 %v4767_v56, %v6789_v41  ;;  %v7725_v56 = vld [vmem:[#allocation20_spill] sm:$0xff] }
 0x216   : > { %v6895_v26 = vadd.f32 %v4735_v55, %v6723_v23  ;;  %5036 = vmatprep.mubr.msk.f32.mxu0 %vm467_vm2, %v6282_v63  ;;  %v2189_v27 = vpop.f32.mrf.mxu1  ;;  %v1617_v23 = vadd.f32 %v6742_v35, %v6699_v11 }
 0x217   : > { %v1981_v38 = vpop.f32.mrf.mxu0  ;;  %v6905_v52 = vadd.f32 %v2189_v27, %v6802_v58 }
 0x218   : > { %v6902_v32 = vadd.f32 %v1981_v38, %v1607_v7  ;;  %v4770_v47 = vpop.f32.mrf.mxu1  ;;  %v1652_v7 = vadd.f32 %v6784_v62, %v7725_v56  ;;  %v3443_v62 = vrot.slane %v6709_v14, 2 }
 0x219   : > { %v4738_v30 = vpop.f32.mrf.mxu0  ;;  %5037 = vmatmul.mubr.msk.f32.gmra.mxu0 %vm467_vm2, %v6293_v44  ;;  %v6917_v42 = vadd.f32 %v4770_v47, %v6811_v0 }
 0x21a   : > { %v6912_v63 = vadd.f32 %v4738_v30, %v6736_v22  ;;  %5039 = vmatprep.mubr.msk.f32.mxu0 %vm467_vm2, %v6299_v16  ;;  %v2199_v58 = vpop.f32.mrf.mxu1  ;;  %v1627_v22 = vadd.f32 %v6758_v60, %v6715_v10  ;;  %v7724_v60 = vld [vmem:[#allocation58_spill] sm:$0xff] }
 0x21b   : > { %v1991_v41 = vpop.f32.mrf.mxu0  ;;  %v6922_v28 = vadd.f32 %v2199_v58, %v6822_v45 }
 0x21c   : > { %v6919_v59 = vadd.f32 %v1991_v41, %v1617_v23  ;;  %v4773_v11 = vpop.f32.mrf.mxu1  ;;  %v7726_v23 = vld [vmem:[#allocation11_spill] sm:$0xff] }
 0x21d   : > { %v4741_v44 = vpop.f32.mrf.mxu0  ;;  %5040 = vmatmul.mubr.msk.f32.gmra.mxu0 %vm467_vm2, %v6310_v46  ;;  %v6934_v35 = vadd.f32 %v4773_v11, %v6831_v51  ;;  %v1662_v41 = vadd.f32 %v6806_v48, %v7726_v23 }
 0x21e   : > { %v6929_v16 = vadd.f32 %v4741_v44, %v6754_v21  ;;  %5042 = vmatprep.mubr.msk.f32.mxu0 %vm467_vm2, %v6316_v31  ;;  %v2209_v45 = vpop.f32.mrf.mxu1  ;;  %v1637_v21 = vadd.f32 %v6777_v20, %v6740_v40 }
 0x21f   : > { %v2001_v0 = vpop.f32.mrf.mxu0  ;;  %v6939_v34 = vadd.f32 %v2209_v45, %v6840_v17  ;;  %v7728_v45 = vld [vmem:[#allocation8_spill] sm:$0xff] }
 0x220   : > { %v6936_v6 = vadd.f32 %v2001_v0, %v1627_v22  ;;  %v4776_v10 = vpop.f32.mrf.mxu1 }
 0x221   : > { %v4744_v46 = vpop.f32.mrf.mxu0  ;;  %5043 = vmatmul.mubr.msk.f32.gmra.mxu0 %vm467_vm2, %v7723_v37  ;;  %v6951_v51 = vadd.f32 %v4776_v10, %v6846_v33 }
 0x222   : > { %v6946_v31 = vadd.f32 %v4744_v46, %v6773_v36  ;;  %5045 = vmatprep.mubr.msk.f32.mxu0 %vm467_vm2, %v7724_v60  ;;  %v2219_v17 = vpop.f32.mrf.mxu1 }
 0x223   : > { %v2011_v55 = vpop.f32.mrf.mxu0  ;;  %v6958_v27 = vadd.f32 %v2219_v17, %v6856_v8  ;;  %v3444_v8 = vrot.slane %v6721_v29, 2  ;;  %v3446_v29 = vrot.slane %v6799_v15, 2 }
 0x224   : > { %v6955_v38 = vadd.f32 %v2011_v55, %v1637_v21  ;;  %v4779_v36 = vpop.f32.mrf.mxu1 }
 0x225   : > { %v4747_v40 = vpop.f32.mrf.mxu0  ;;  %5046 = vmatmul.mubr.msk.f32.gmra.mxu0 %vm467_vm2, %v6344_v12  ;;  %v6967_v33 = vadd.f32 %v4779_v36, %v6861_v61  ;;  %v3445_v48 = vsel %vm1685_vm14, %v3443_v62, %v3444_v8  ;;  %v3447_v15 = vsel %vm1685_vm14, %v3444_v8, %v3446_v29 }
 0x226   : > { %v6962_v20 = vadd.f32 %v4747_v40, %v1652_v7  ;;  %5048 = vmatprep.mubr.msk.f32.mxu0 %vm467_vm2, %v6350_v9  ;;  %v2229_v47 = vpop.f32.mrf.mxu1 }
 0x227   : > { %v2021_v30 = vpop.f32.mrf.mxu0  ;;  %v6974_v12 = vadd.f32 %v2229_v47, %v6869_v39  ;;  %v7727_v39 = vld [vmem:[#allocation5_spill] sm:$0xff] }
 0x228   : > { %v4782_v9 = vpop.f32.mrf.mxu1  ;;  %v1672_v22 = vadd.f32 %v6826_v3, %v7727_v39 }
 0x229   : > { %v4750_v58 = vpop.f32.mrf.mxu0  ;;  %5049 = vmatmul.mubr.msk.f32.gmra.mxu0 %vm467_vm2, %v6359_v53  ;;  %v6981_v14 = vadd.f32 %v4782_v9, %v6877_v43  ;;  %v1667_v43 = vadd.f32 %v6837_v50, %v7728_v45  ;;  %v1677_v50 = vadd.f32 %v6853_v49, %v6603_v19 }
 0x22a   : > { %v2087_v44 = vadd.f32 %v4750_v58, %v1662_v41  ;;  %5051 = vmatprep.mubr.msk.f32.mxu0 %vm467_vm2, %v6578_v1  ;;  %v2239_v11 = vpop.f32.mrf.mxu1 }
 0x22b   : > { %v2031_v61 = vpop.f32.mrf.mxu0  ;;  %v6988_v0 = vadd.f32 %v2239_v11, %v6885_v13 }
 0x22c   : > { %v4785_v1 = vpop.f32.mrf.mxu1 }
 0x22d   : > { %v4753_v53 = vpop.f32.mrf.mxu0  ;;  %5052 = vmatmul.mubr.msk.f32.gmra.mxu0 %vm467_vm2, %v6591_v5  ;;  %v6997_v37 = vadd.f32 %v4785_v1, %v6895_v26  ;;  %v7731_v1 = vld [vmem:[#allocation25_spill] sm:$0xff] }
 0x22e   : > { %v2089_v46 = vadd.f32 %v4753_v53, %v1672_v22  ;;  %5054 = vmatprep.mubr.msk.f32.mxu0 %vm467_vm2, %v3445_v48  ;;  %v2249_v10 = vpop.f32.mrf.mxu1  ;;  %v7730_v53 = vld [vmem:[#allocation4_spill] sm:$0xff] }
 0x22f   : > { %v2041_v3 = vpop.f32.mrf.mxu0  ;;  %v7000_v21 = vadd.f32 %v2249_v10, %v6902_v32  ;;  %v1657_v45 = vadd.f32 %v7731_v1, %v7730_v53 }
 0x230   : > { %v2088_v13 = vadd.f32 %v2041_v3, %v1667_v43  ;;  %v4788_v5 = vpop.f32.mrf.mxu1 }
 0x231   : > { %v4756_v60 = vpop.f32.mrf.mxu0  ;;  %5055 = vmatmul.mubr.msk.f32.gmra.mxu0 %vm467_vm2, %v3447_v15  ;;  %v7007_v17 = vadd.f32 %v4788_v5, %v6912_v63  ;;  %v2086_v15 = vadd.f32 %v2031_v61, %v1657_v45 }
 0x232   : > { %v2091_v55 = vadd.f32 %v4756_v60, %v6851_v57  ;;  %v2259_v56 = vpop.f32.mrf.mxu1 }
 0x233   : > { %v2051_v26 = vpop.f32.mrf.mxu0  ;;  %v7010_v40 = vadd.f32 %v2259_v56, %v6919_v59 }
 0x234   : > { %v2090_v7 = vadd.f32 %v2051_v26, %v1677_v50  ;;  %v4791_v36 = vpop.f32.mrf.mxu1 }
 0x235   : > { %v4811_v32 = vpop.f32.mrf.mxu0  ;;  %v7014_v47 = vadd.f32 %v4791_v36, %v6929_v16 }
 0x236   : > { %v2601_v62 = vadd.f32 %v4811_v32, %v6866_v4  ;;  %v2269_v19 = vpop.f32.mrf.mxu1  ;;  %v7729_v4 = vld [vmem:[#allocation9_spill] sm:$0xff] }
 0x237   : > { %v2441_v8 = vpop.f32.mrf.mxu0  ;;  %v7018_v49 = vadd.f32 %v2269_v19, %v6936_v6  ;;  %v1647_v16 = vadd.f32 %v6796_v2, %v7729_v4 }
 0x238   : > { %v2600_v57 = vadd.f32 %v2441_v8, %v6872_v24  ;;  %v4794_v23 = vpop.f32.mrf.mxu1 }
 0x239   : > { %v4814_v63 = vpop.f32.mrf.mxu0  ;;  %v7022_v59 = vadd.f32 %v4794_v23, %v6946_v31  ;;  %v2084_v11 = vadd.f32 %v2021_v30, %v1647_v16 }
 0x23a   : > { %v2603_v41 = vadd.f32 %v4814_v63, %v6882_v54  ;;  %v2279_v9 = vpop.f32.mrf.mxu1 }
 0x23b   : > { %v2451_v58 = vpop.f32.mrf.mxu0  ;;  %v7028_v48 = vadd.f32 %v2279_v9, %v6955_v38 }
 0x23c   : > { %v2602_v29 = vadd.f32 %v2451_v58, %v6888_v18  ;;  %v4797_v6 = vpop.f32.mrf.mxu1 }
 0x23d   : > { %v4817_v24 = vpop.f32.mrf.mxu0  ;;  %v7032_v54 = vadd.f32 %v4797_v6, %v6962_v20 }
 0x23e   : > { %v2605_v39 = vadd.f32 %v4817_v24, %v6900_v25  ;;  %v2289_v22 = vpop.f32.mrf.mxu1 }
 0x23f   : > { %v2461_v31 = vpop.f32.mrf.mxu0  ;;  %v7037_v43 = vadd.f32 %v2289_v22, %v2084_v11 }
 0x240   : > { %v2604_v2 = vadd.f32 %v2461_v31, %v6905_v52  ;;  %v4800_v38 = vpop.f32.mrf.mxu1 }
 0x241   : > { %v4820_v18 = vpop.f32.mrf.mxu0  ;;  %v7040_v30 = vadd.f32 %v4800_v38, %v2087_v44 }
 0x242   : > { %v2607_v3 = vadd.f32 %v4820_v18, %v6917_v42  ;;  %v2299_v10 = vpop.f32.mrf.mxu1 }
 0x243   : > { %v2471_v25 = vpop.f32.mrf.mxu0  ;;  %v7043_v60 = vadd.f32 %v2299_v10, %v2086_v15 }
 0x244   : > { %v2606_v20 = vadd.f32 %v2471_v25, %v6922_v28  ;;  %v4803_v50 = vpop.f32.mrf.mxu1 }
 0x245   : > { %v4823_v5 = vpop.f32.mrf.mxu0  ;;  %v7046_v52 = vadd.f32 %v4803_v50, %v2089_v46 }
 0x246   : > { %v2609_v26 = vadd.f32 %v4823_v5, %v6934_v35  ;;  %v2309_v32 = vpop.f32.mrf.mxu1 }
 0x247   : > { %v2481_v56 = vpop.f32.mrf.mxu0  ;;  %v7049_v36 = vadd.f32 %v2309_v32, %v2088_v13 }
 0x248   : > { %v2608_v61 = vadd.f32 %v2481_v56, %v6939_v34  ;;  %v4806_v44 = vpop.f32.mrf.mxu1 }
 0x249   : > { %v4826_v42 = vpop.f32.mrf.mxu0  ;;  %v7052_v19 = vadd.f32 %v4806_v44, %v2091_v55 }
 0x24a   : > { %v2611_v8 = vadd.f32 %v4826_v42, %v6951_v51  ;;  %v2319_v63 = vpop.f32.mrf.mxu1 }
 0x24b   : > { %v2491_v28 = vpop.f32.mrf.mxu0  ;;  %v7055_v58 = vadd.f32 %v2319_v63, %v2090_v7 }
 0x24c   : > { %v2610_v23 = vadd.f32 %v2491_v28, %v6958_v27  ;;  %v4861_v46 = vpop.f32.mrf.mxu1 }
 0x24d   : > { %v4829_v35 = vpop.f32.mrf.mxu0  ;;  %v7058_v4 = vadd.f32 %v4861_v46, %v2601_v62 }
 0x24e   : > { %v2613_v9 = vadd.f32 %v4829_v35, %v6967_v33  ;;  %v2712_v13 = vpop.f32.mrf.mxu1 }
 0x24f   : > { %v2501_v34 = vpop.f32.mrf.mxu0  ;;  %v7061_v24 = vadd.f32 %v2712_v13, %v2600_v57 }
 0x250   : > { %v2612_v16 = vadd.f32 %v2501_v34, %v6974_v12  ;;  %v4864_v55 = vpop.f32.mrf.mxu1 }
 0x251   : > { %v4832_v51 = vpop.f32.mrf.mxu0  ;;  %v7064_v11 = vadd.f32 %v4864_v55, %v2603_v41 }
 0x252   : > { %v2615_v6 = vadd.f32 %v4832_v51, %v6981_v14  ;;  %v2722_v7 = vpop.f32.mrf.mxu1 }
 0x253   : > { %v2511_v27 = vpop.f32.mrf.mxu0  ;;  %v7067_v22 = vadd.f32 %v2722_v7, %v2602_v29 }
 0x254   : > { %v2614_v31 = vadd.f32 %v2511_v27, %v6988_v0  ;;  %v4867_v62 = vpop.f32.mrf.mxu1 }
 0x255   : > { %v4835_v33 = vpop.f32.mrf.mxu0  ;;  %v7070_v1 = vadd.f32 %v4867_v62, %v2605_v39 }
 0x256   : > { %v2617_v53 = vadd.f32 %v4835_v33, %v6997_v37  ;;  %v2732_v57 = vpop.f32.mrf.mxu1 }
 0x257   : > { %v2521_v12 = vpop.f32.mrf.mxu0  ;;  %v7073_v18 = vadd.f32 %v2732_v57, %v2604_v2 }
 0x258   : > { %v2616_v45 = vadd.f32 %v2521_v12, %v7000_v21  ;;  %v4870_v41 = vpop.f32.mrf.mxu1 }
 0x259   : > { %v4838_v14 = vpop.f32.mrf.mxu0  ;;  %v7076_v15 = vadd.f32 %v4870_v41, %v2607_v3 }
 0x25a   : > { %v2619_v38 = vadd.f32 %v4838_v14, %v7007_v17  ;;  %v2742_v29 = vpop.f32.mrf.mxu1 }
 0x25b   : > { %v2531_v0 = vpop.f32.mrf.mxu0  ;;  %v7079_v10 = vadd.f32 %v2742_v29, %v2606_v20 }
 0x25c   : > { %v2618_v25 = vadd.f32 %v2531_v0, %v7010_v40  ;;  %v4873_v39 = vpop.f32.mrf.mxu1 }
 0x25d   : > { %v4841_v37 = vpop.f32.mrf.mxu0  ;;  %v7082_v50 = vadd.f32 %v4873_v39, %v2609_v26 }
 0x25e   : > { %v2621_v5 = vadd.f32 %v4841_v37, %v7014_v47  ;;  %v2752_v2 = vpop.f32.mrf.mxu1 }
 0x25f   : > { %v2541_v21 = vpop.f32.mrf.mxu0  ;;  %v7085_v32 = vadd.f32 %v2752_v2, %v2608_v61 }
 0x260   : > { %v2620_v56 = vadd.f32 %v2541_v21, %v7018_v49  ;;  %v4876_v3 = vpop.f32.mrf.mxu1 }
 0x261   : > { %v4844_v17 = vpop.f32.mrf.mxu0  ;;  %v7088_v44 = vadd.f32 %v4876_v3, %v2611_v8 }
 0x262   : > { %v2623_v42 = vadd.f32 %v4844_v17, %v7022_v59  ;;  %v2762_v20 = vpop.f32.mrf.mxu1 }
 0x263   : > { %v2551_v40 = vpop.f32.mrf.mxu0  ;;  %v7091_v63 = vadd.f32 %v2762_v20, %v2610_v23 }
 0x264   : > { %v2622_v28 = vadd.f32 %v2551_v40, %v7028_v48  ;;  %v4879_v26 = vpop.f32.mrf.mxu1 }
 0x265   : > { %v4847_v47 = vpop.f32.mrf.mxu0  ;;  %v7094_v46 = vadd.f32 %v4879_v26, %v2613_v9 }
 0x266   : > { %v2625_v35 = vadd.f32 %v4847_v47, %v7032_v54  ;;  %v2772_v61 = vpop.f32.mrf.mxu1 }
 0x267   : > { %v2561_v49 = vpop.f32.mrf.mxu0  ;;  %v7097_v13 = vadd.f32 %v2772_v61, %v2612_v16 }
 0x268   : > { %v2624_v34 = vadd.f32 %v2561_v49, %v7037_v43  ;;  %v4882_v8 = vpop.f32.mrf.mxu1 }
 0x269   : > { %v4850_v59 = vpop.f32.mrf.mxu0  ;;  %v7100_v55 = vadd.f32 %v4882_v8, %v2615_v6 }
 0x26a   : > { %v2627_v51 = vadd.f32 %v4850_v59, %v7040_v30  ;;  %v2782_v23 = vpop.f32.mrf.mxu1 }
 0x26b   : > { %v2571_v48 = vpop.f32.mrf.mxu0  ;;  %v7103_v7 = vadd.f32 %v2782_v23, %v2614_v31 }
 0x26c   : > { %v2626_v27 = vadd.f32 %v2571_v48, %v7043_v60  ;;  %v4885_v9 = vpop.f32.mrf.mxu1 }
 0x26d   : > { %v4853_v54 = vpop.f32.mrf.mxu0  ;;  %v7106_v62 = vadd.f32 %v4885_v9, %v2617_v53 }
 0x26e   : > { %v2629_v33 = vadd.f32 %v4853_v54, %v7046_v52  ;;  %v2792_v16 = vpop.f32.mrf.mxu1 }
 0x26f   : > { %v2581_v43 = vpop.f32.mrf.mxu0  ;;  %v7109_v57 = vadd.f32 %v2792_v16, %v2616_v45 }
 0x270   : > { %v2628_v12 = vadd.f32 %v2581_v43, %v7049_v36  ;;  %v4888_v6 = vpop.f32.mrf.mxu1 }
 0x271   : > { %v4856_v30 = vpop.f32.mrf.mxu0  ;;  %v7114_v60 = vadd.f32 %v4888_v6, %v2619_v38 }
 0x272   : > { %v7112_v14 = vadd.f32 %v4856_v30, %v7052_v19  ;;  %v2802_v41 = vpop.f32.mrf.mxu1 }
 0x273   : > { %v2591_v31 = vpop.f32.mrf.mxu0  ;;  %v7119_v52 = vadd.f32 %v2802_v41, %v2618_v25 }
 0x274   : > { %v7117_v0 = vadd.f32 %v2591_v31, %v7055_v58  ;;  %v4891_v29 = vpop.f32.mrf.mxu1 }
 0x275   : > { %v4911_v53 = vpop.f32.mrf.mxu0  ;;  %v7122_v45 = vadd.f32 %v4891_v29, %v2621_v5 }
 0x276   : > { %v3140_v36 = vadd.f32 %v4911_v53, %v7058_v4  ;;  %v2812_v39 = vpop.f32.mrf.mxu1 }
 0x277   : > { %v2980_v37 = vpop.f32.mrf.mxu0  ;;  %v7125_v21 = vadd.f32 %v2812_v39, %v2620_v56 }
 0x278   : > { %v3139_v19 = vadd.f32 %v2980_v37, %v7061_v24  ;;  %v4894_v2 = vpop.f32.mrf.mxu1 }
 0x279   : > { %v4914_v38 = vpop.f32.mrf.mxu0  ;;  %v7128_v58 = vadd.f32 %v4894_v2, %v2623_v42 }
 0x27a   : > { %v3142_v17 = vadd.f32 %v4914_v38, %v7064_v11  ;;  %v2822_v3 = vpop.f32.mrf.mxu1 }
 0x27b   : > { %v2990_v25 = vpop.f32.mrf.mxu0  ;;  %v7131_v20 = vadd.f32 %v2822_v3, %v2622_v28 }
 0x27c   : > { %v3141_v40 = vadd.f32 %v2990_v25, %v7067_v22  ;;  %v4897_v5 = vpop.f32.mrf.mxu1 }
 0x27d   : > { %v4917_v4 = vpop.f32.mrf.mxu0  ;;  %v7134_v26 = vadd.f32 %v4897_v5, %v2625_v35 }
 0x27e   : > { %v3144_v47 = vadd.f32 %v4917_v4, %v7070_v1  ;;  %v2832_v56 = vpop.f32.mrf.mxu1 }
 0x27f   : > { %v3000_v24 = vpop.f32.mrf.mxu0  ;;  %v7137_v61 = vadd.f32 %v2832_v56, %v2624_v34 }
 0x280   : > { %v3143_v49 = vadd.f32 %v3000_v24, %v7073_v18  ;;  %v4900_v42 = vpop.f32.mrf.mxu1 }
 0x281   : > { %v4920_v11 = vpop.f32.mrf.mxu0  ;;  %v7140_v8 = vadd.f32 %v4900_v42, %v2627_v51 }
 0x282   : > { %v3146_v59 = vadd.f32 %v4920_v11, %v7076_v15  ;;  %v2842_v28 = vpop.f32.mrf.mxu1 }
 0x283   : > { %v3010_v22 = vpop.f32.mrf.mxu0  ;;  %v7143_v23 = vadd.f32 %v2842_v28, %v2626_v27 }
 0x284   : > { %v3145_v48 = vadd.f32 %v3010_v22, %v7079_v10  ;;  %v4903_v35 = vpop.f32.mrf.mxu1 }
 0x285   : > { %v4923_v1 = vpop.f32.mrf.mxu0  ;;  %v7148_v18 = vadd.f32 %v4903_v35, %v2629_v33 }
 0x286   : > { %v7146_v54 = vadd.f32 %v4923_v1, %v7082_v50  ;;  %v2852_v9 = vpop.f32.mrf.mxu1 }
 0x287   : > { %v3020_v34 = vpop.f32.mrf.mxu0  ;;  %v7153_v15 = vadd.f32 %v2852_v9, %v2628_v12 }
 0x288   : > { %v7151_v43 = vadd.f32 %v3020_v34, %v7085_v32  ;;  %v7155_v16 = vpop.f32.mrf.mxu1 }
 0x289   : > { %v4926_v51 = vpop.f32.mrf.mxu0 }
 0x28a   : > { %v7158_v10 = vadd.f32 %v4926_v51, %v7088_v44  ;;  %v7160_v30 = vpop.f32.mrf.mxu1 }
 0x28b   : > { %v3030_v27 = vpop.f32.mrf.mxu0 }
 0x28c   : > { %v7163_v50 = vadd.f32 %v3030_v27, %v7091_v63  ;;  %v4961_v6 = vpop.f32.mrf.mxu1 }
 0x28d   : > { %v4929_v33 = vpop.f32.mrf.mxu0  ;;  %v7168_v32 = vadd.f32 %v4961_v6, %v3140_v36  ;;  %v3754_v36 = vld [vmem:[%s7477_s5 + $0x8] sm:$0xff] }
 0x28e   : > { %v7166_v31 = vadd.f32 %v4929_v33, %v7094_v46  ;;  %v3252_v41 = vpop.f32.mrf.mxu1  ;;  %3833 = vmatprep.mubr.f32.mxu1 %v3754_v36 }
 0x28f   : > { %v3040_v12 = vpop.f32.mrf.mxu0  ;;  %v3411_v44 = vadd.f32 %v3252_v41, %v3139_v19 }
 0x290   : > { %v7171_v53 = vadd.f32 %v3040_v12, %v7097_v13  ;;  %v4964_v37 = vpop.f32.mrf.mxu1 }
 0x291   : > { %v4932_v29 = vpop.f32.mrf.mxu0  ;;  %v3414_v63 = vadd.f32 %v4964_v37, %v3142_v17 }
 0x292   : > { %v7174_v39 = vadd.f32 %v4932_v29, %v7100_v55  ;;  %v3262_v2 = vpop.f32.mrf.mxu1 }
 0x293   : > { %v3050_v38 = vpop.f32.mrf.mxu0  ;;  %v3413_v46 = vadd.f32 %v3262_v2, %v3141_v40 }
 0x294   : > { %v7177_v25 = vadd.f32 %v3050_v38, %v7103_v7  ;;  %v4967_v13 = vpop.f32.mrf.mxu1 }
 0x295   : > { %v4935_v3 = vpop.f32.mrf.mxu0  ;;  %v3416_v4 = vadd.f32 %v4967_v13, %v3144_v47 }
 0x296   : > { %v7183_v19 = vadd.f32 %v4935_v3, %v7106_v62  ;;  %v3272_v5 = vpop.f32.mrf.mxu1 }
 0x297   : > { %v3060_v55 = vpop.f32.mrf.mxu0  ;;  %v3415_v24 = vadd.f32 %v3272_v5, %v3143_v49 }
 0x298   : > { %7732 = vst [vmem:[#allocation28_spill] sm:$0xff] %v7183_v19  ;;  %v7186_v17 = vadd.f32 %v3060_v55, %v7109_v57  ;;  %v4970_v56 = vpop.f32.mrf.mxu1 }
 0x299   : > { %v4938_v7 = vpop.f32.mrf.mxu0  ;;  %v3418_v11 = vadd.f32 %v4970_v56, %v3146_v59 }
 0x29a   : > { %7733 = vst [vmem:[#allocation29_spill] sm:$0xff] %v7186_v17  ;;  %v7189_v40 = vadd.f32 %v4938_v7, %v7114_v60  ;;  %v3282_v22 = vpop.f32.mrf.mxu1 }
 0x29b   : > { %v3070_v42 = vpop.f32.mrf.mxu0  ;;  %v3417_v62 = vadd.f32 %v3282_v22, %v3145_v48 }
 0x29c   : > { %7734 = vst [vmem:[#allocation30_spill] sm:$0xff] %v7189_v40  ;;  %v7192_v28 = vadd.f32 %v3070_v42, %v7119_v52  ;;  %v7194_v47 = vpop.f32.mrf.mxu1 }
 0x29d   : > { %v4941_v1 = vpop.f32.mrf.mxu0 }
 0x29e   : > { %7735 = vst [vmem:[#allocation32_spill] sm:$0xff] %v7192_v28  ;;  %v7197_v35 = vadd.f32 %v4941_v1, %v7122_v45  ;;  %v7199_v49 = vpop.f32.mrf.mxu1 }
 0x29f   : > { %v3080_v57 = vpop.f32.mrf.mxu0 }
 0x2a0   : > { %7736 = vst [vmem:[#allocation33_spill] sm:$0xff] %v7197_v35  ;;  %v7202_v34 = vadd.f32 %v3080_v57, %v7125_v21  ;;  %v7204_v59 = vpop.f32.mrf.mxu1 }
 0x2a1   : > { %v4944_v60 = vpop.f32.mrf.mxu0 }
 0x2a2   : > { %7737 = vst [vmem:[#allocation34_spill] sm:$0xff] %v7202_v34  ;;  %v7207_v9 = vadd.f32 %v4944_v60, %v7128_v58  ;;  %v7209_v48 = vpop.f32.mrf.mxu1 }
 0x2a3   : > { %v3090_v52 = vpop.f32.mrf.mxu0 }
 0x2a4   : > { %v7212_v51 = vadd.f32 %v3090_v52, %v7131_v20  ;;  %v7214_v27 = vpop.f32.mrf.mxu1 }
 0x2a5   : > { %v4947_v45 = vpop.f32.mrf.mxu0 }
 0x2a6   : > { %v7217_v33 = vadd.f32 %v4947_v45, %v7134_v26  ;;  %v7219_v6 = vpop.f32.mrf.mxu1 }
 0x2a7   : > { %v3100_v21 = vpop.f32.mrf.mxu0 }
 0x2a8   : > { %v7222_v12 = vadd.f32 %v3100_v21, %v7137_v61  ;;  %v7227_v37 = vpop.f32.mrf.mxu1 }
 0x2a9   : > { %v4950_v58 = vpop.f32.mrf.mxu0  ;;  %v3426_v40 = vadd.f32 %v7227_v37, %v7174_v39 }
 0x2aa   : > { %v7225_v41 = vadd.f32 %v4950_v58, %v7140_v8  ;;  %v7235_v36 = vpop.f32.mrf.mxu1 }
 0x2ab   : > { %v3110_v29 = vpop.f32.mrf.mxu0 }
 0x2ac   : > { %v7230_v20 = vadd.f32 %v3110_v29, %v7143_v23  ;;  %v7240_v8 = vpop.f32.mrf.mxu1 }
 0x2ad   : > { %v4953_v38 = vpop.f32.mrf.mxu0  ;;  %7738 = vst [vmem:[#allocation35_spill] sm:$0xff] %v7240_v8 }
 0x2ae   : > { %v7233_v26 = vadd.f32 %v4953_v38, %v7148_v18  ;;  %v7245_v23 = vpop.f32.mrf.mxu1 }
 0x2af   : > { %v3120_v2 = vpop.f32.mrf.mxu0  ;;  %7740 = vst [vmem:[#allocation37_spill] sm:$0xff] %v7245_v23 }
 0x2b0   : > { %v7238_v61 = vadd.f32 %v3120_v2, %v7153_v15  ;;  %v7251_v22 = vpop.f32.mrf.mxu1 }
 0x2b1   : > { %v4956_v3 = vpop.f32.mrf.mxu0  ;;  %7743 = vst [vmem:[#allocation16_spill] sm:$0xff] %v7251_v22  ;;  %v2901_v22 = vadd.f32 %v7160_v30, %v7117_v0  ;;  %v3424_v0 = vadd.f32 %v7214_v27, %v7166_v31  ;;  %v7315_v30 = vld [vmem:[%s7474_s2] ss:$0 sm:$0xff] }
 0x2b2   : > { %v7257_v52 = vpop.f32.mrf.mxu1 }
 0x2b3   : > { %v3130_v13 = vpop.f32.mrf.mxu0  ;;  %7746 = vst [vmem:[#allocation7_spill] sm:$0xff] %v7257_v52 }
 0x2b5   : > { %v5011_v55 = vpop.f32.mrf.mxu0 }
 0x2b6   : > { %v7243_v5 = vadd.f32 %v5011_v55, %v7168_v32 }
 0x2b7   : > { %v3523_v7 = vpop.f32.mrf.mxu0 }
 0x2b8   : > { %7739 = vst [vmem:[#allocation36_spill] sm:$0xff] %v7243_v5  ;;  %v7247_v56 = vadd.f32 %v3523_v7, %v3411_v44  ;;  %v7263_v44 = vpop.f32.mrf.mxu1 }
 0x2b9   : > { %v5014_v18 = vpop.f32.mrf.mxu0  ;;  %7749 = vst [vmem:[#allocation24_spill] sm:$0xff] %v7263_v44 }
 0x2ba   : > { %7741 = vst [vmem:[#allocation42_spill] sm:$0xff] %v7247_v56  ;;  %v7249_v42 = vadd.f32 %v5014_v18, %v3414_v63 }
 0x2bb   : > { %v3533_v15 = vpop.f32.mrf.mxu0 }
 0x2bc   : > { %7742 = vst [vmem:[#allocation15_spill] sm:$0xff] %v7249_v42  ;;  %v7253_v1 = vadd.f32 %v3533_v15, %v3413_v46  ;;  %v7269_v46 = vpop.f32.mrf.mxu1 }
 0x2bd   : > { %v5017_v57 = vpop.f32.mrf.mxu0  ;;  %7751 = vst [vmem:[#allocation31_spill] sm:$0xff] %v7269_v46  ;;  %v3169_v46 = vadd.f32 %v3130_v13, %v2901_v22 }
 0x2be   : > { %7744 = vst [vmem:[#allocation22_spill] sm:$0xff] %v7253_v1  ;;  %v7255_v60 = vadd.f32 %v5017_v57, %v3416_v4  ;;  %v7275_v55 = vpop.f32.mrf.mxu1 }
 0x2bf   : > { %v3543_v32 = vpop.f32.mrf.mxu0 }
 0x2c0   : > { %7745 = vst [vmem:[#allocation12_spill] sm:$0xff] %v7255_v60  ;;  %v7259_v45 = vadd.f32 %v3543_v32, %v3415_v24 }
 0x2c1   : > { %v5020_v21 = vpop.f32.mrf.mxu0 }
 0x2c2   : > { %7747 = vst [vmem:[#allocation23_spill] sm:$0xff] %v7259_v45  ;;  %v7261_v58 = vadd.f32 %v5020_v21, %v3418_v11  ;;  %v7279_v11 = vpop.f32.mrf.mxu1 }
 0x2c3   : > { %v3553_v63 = vpop.f32.mrf.mxu0 }
 0x2c4   : > { %7748 = vst [vmem:[#allocation6_spill] sm:$0xff] %v7261_v58  ;;  %v7265_v29 = vadd.f32 %v3553_v63, %v3417_v62  ;;  %v4997_v57 = vpop.f32.mrf.mxu1 }
 0x2c5   : > { %v7267_v38 = vpop.f32.mrf.mxu0 }
 0x2c6   : > { %7750 = vst [vmem:[#allocation27_spill] sm:$0xff] %v7265_v29  ;;  %v7283_v21 = vpop.f32.mrf.mxu1 }
 0x2c7   : > { %v7271_v2 = vpop.f32.mrf.mxu0 }
 0x2c8   : > { %v5000_v5 = vpop.f32.mrf.mxu1 }
 0x2c9   : > { %v7273_v4 = vpop.f32.mrf.mxu0  ;;  %v3438_v31 = vadd.f32 %v5000_v5, %v7225_v41 }
 0x2ca   : > { %v3382_v23 = vpop.f32.mrf.mxu1 }
 0x2cb   : > { %v7277_v24 = vpop.f32.mrf.mxu0  ;;  %v3437_v13 = vadd.f32 %v3382_v23, %v7230_v20  ;;  %v3420_v20 = vadd.f32 %v7194_v47, %v7146_v54  ;;  %v3434_v54 = vadd.f32 %v7275_v55, %v7207_v9 }
 0x2cc   : > { %v5003_v8 = vpop.f32.mrf.mxu1 }
 0x2cd   : > { %v5029_v7 = vpop.f32.mrf.mxu0 }
 0x2ce   : > { %v3392_v60 = vpop.f32.mrf.mxu1 }
 0x2cf   : > { %v3583_v18 = vpop.f32.mrf.mxu0 }
 0x2d0   : > { %v5006_v28 = vpop.f32.mrf.mxu1 }
 0x2d1   : > { %v5032_v15 = vpop.f32.mrf.mxu0 }
 0x2d2   : > { %v3402_v58 = vpop.f32.mrf.mxu1  ;;  %v3697_v44 = vadd.f32 %v5032_v15, %v3426_v40 }
 0x2d3   : > { %v3593_v62 = vpop.f32.mrf.mxu0 }
 0x2d5   : > { %v7281_v32 = vpop.f32.mrf.mxu0 }
 0x2d6   : > { %7752 = vst [vmem:[#allocation39_spill] sm:$0xff] %v7281_v32 }
 0x2d7   : > { %v7285_v63 = vpop.f32.mrf.mxu0 }
 0x2d8   : > { %7753 = vst [vmem:[#allocation26_spill] sm:$0xff] %v7285_v63 }
 0x2d9   : > { %v7287_v56 = vpop.f32.mrf.mxu0 }
 0x2da   : > { %7754 = vst [vmem:[#allocation40_spill] sm:$0xff] %v7287_v56 }
 0x2db   : > { %v7289_v1 = vpop.f32.mrf.mxu0 }
 0x2dc   : > { %7755 = vst [vmem:[#allocation13_spill] sm:$0xff] %v7289_v1  ;;  %v2902_v1 = vadd.f32 %v7155_v16, %v7112_v14  ;;  %v3441_v14 = vadd.f32 %v3402_v58, %v3169_v46 }
 0x2dd   : > { %v7291_v42 = vpop.f32.mrf.mxu0 }
 0x2de   : > { %7756 = vst [vmem:[#allocation14_spill] sm:$0xff] %v7291_v42 }
 0x2df   : > { %v7293_v17 = vpop.f32.mrf.mxu0 }
 0x2e0   : > { %7757 = vst [vmem:[#allocation17_spill] sm:$0xff] %v7293_v17  ;;  %v3170_v17 = vadd.f32 %v4956_v3, %v2902_v1 }
 0x2e1   : > { %v7295_v45 = vpop.f32.mrf.mxu0 }
 0x2e2   : > { %7758 = vst [vmem:[#allocation18_spill] sm:$0xff] %v7295_v45  ;;  %v3442_v34 = vadd.f32 %v5006_v28, %v3170_v17  ;;  %v3440_v45 = vadd.f32 %v5003_v8, %v7233_v26  ;;  %v3439_v17 = vadd.f32 %v3392_v60, %v7238_v61  ;;  %v3423_v26 = vadd.f32 %v7219_v6, %v7171_v53 }
 0x2e3   : > { %v7297_v19 = vpop.f32.mrf.mxu0  ;;  %v3421_v6 = vadd.f32 %v7209_v48, %v7163_v50  ;;  %v3435_v50 = vadd.f32 %v7283_v21, %v7222_v12  ;;  %v7768_v21 = vld [vmem:[#allocation30_spill] sm:$0xff] }
 0x2e4   : > { %7759 = vst [vmem:[#allocation2_spill] sm:$0xff] %v7297_v19  ;;  %v3425_v19 = vadd.f32 %v7235_v36, %v7177_v25  ;;  %v3694_v61 = vadd.f32 %v3583_v18, %v3423_v26  ;;  %v7774_v26 = vld [vmem:[#allocation40_spill] sm:$0xff] }
 0x2e5   : > { %v5047_v32 = vpop.f32.mrf.mxu0  ;;  %v3692_v23 = vadd.f32 %v7277_v24, %v3421_v6  ;;  %v7766_v18 = vld [vmem:[#allocation14_spill] sm:$0xff] }
 0x2e6   : > { %v3696_v39 = vadd.f32 %v3593_v62, %v3425_v19  ;;  %v3422_v19 = vadd.f32 %v7204_v59, %v7158_v10  ;;  %v3436_v10 = vadd.f32 %v4997_v57, %v7217_v33  ;;  %v3733_v22 = vadd.f32 %v7315_v30, %v3694_v61  ;;  %v7767_v62 = vld [vmem:[#allocation6_spill] sm:$0xff] }
 0x2e7   : > { %v7299_v52 = vpop.f32.mrf.mxu0  ;;  %v3419_v33 = vadd.f32 %v7199_v49, %v7151_v43  ;;  %v3731_v58 = vadd.f32 %v7315_v30, %v3692_v23  ;;  %v3433_v43 = vadd.f32 %v7279_v11, %v7212_v51  ;;  %v7764_v51 = vld [vmem:[#allocation34_spill] sm:$0xff]  ;;  %v7783_v23 = vld [vmem:[#allocation15_spill] sm:$0xff] }
 0x2e8   : > { %v3735_v3 = vadd.f32 %v7315_v30, %v3696_v39  ;;  %v3693_v41 = vadd.f32 %v7273_v4, %v3422_v19  ;;  %v3707_v48 = vadd.f32 %v5047_v32, %v3436_v10  ;;  %v3706_v47 = vadd.f32 %v7299_v52, %v3435_v50  ;;  %v7761_v52 = vld [vmem:[#allocation33_spill] sm:$0xff]  ;;  %v7777_v19 = vld [vmem:[#allocation35_spill] sm:$0xff]  ;;  %v7784_v50 = vld [vmem:[#allocation26_spill] sm:$0xff] }
 0x2e9   : > { %v5050_v63 = vpop.f32.mrf.mxu0  ;;  %v3690_v12 = vadd.f32 %v7271_v2, %v3419_v33  ;;  %v7760_v49 = vld [vmem:[#allocation18_spill] sm:$0xff]  ;;  %v3728_v32 = vadd.f32 %v7315_v30, %v7767_v62 }
 0x2ea   : > { %v3709_v8 = vadd.f32 %v5050_v63, %v3438_v31  ;;  %v3732_v60 = vadd.f32 %v7315_v30, %v3693_v41  ;;  %v3745_v2 = vadd.f32 %v7315_v30, %v3706_v47  ;;  %v7769_v63 = vld [vmem:[#allocation16_spill] sm:$0xff]  ;;  %v7780_v41 = vld [vmem:[#allocation29_spill] sm:$0xff]  ;;  %v7785_v33 = vld [vmem:[#allocation22_spill] sm:$0xff] }
 0x2eb   : > { %v3653_v56 = vpop.f32.mrf.mxu0  ;;  %v7763_v4 = vld [vmem:[#allocation2_spill] sm:$0xff]  ;;  %v3729_v24 = vadd.f32 %v7315_v30, %v3690_v12  ;;  %v7775_v31 = vld [vmem:[#allocation12_spill] sm:$0xff] }
 0x2ec   : > { %v3708_v59 = vadd.f32 %v3653_v56, %v3437_v13  ;;  %v3748_v1 = vadd.f32 %v7315_v30, %v3709_v8  ;;  %v3691_v56 = vadd.f32 %v7267_v38, %v3420_v20  ;;  %v7762_v38 = vld [vmem:[#allocation24_spill] sm:$0xff]  ;;  %v3704_v55 = vadd.f32 %v7763_v4, %v3433_v43  ;;  %v7787_v12 = vld [vmem:[#allocation42_spill] sm:$0xff]  ;;  %v3764_v4 = vld [vmem:[%s7477_s5 + $0x58] sm:$0xff] }
 0x2ed   : > { %v5053_v29 = vpop.f32.mrf.mxu0  ;;  %v3432_v46 = vadd.f32 %v7762_v38, %v7761_v52  ;;  %v3753_v43 = vld [vmem:[%s7477_s5] sm:$0xff]  ;;  %v3759_v52 = vld [vmem:[%s7477_s5 + $0x30] sm:$0xff]  ;;  %v3762_v38 = vld [vmem:[%s7477_s5 + $0x48] sm:$0xff] }
 0x2ee   : > { %v3711_v28 = vadd.f32 %v5053_v29, %v3440_v45  ;;  %v3747_v45 = vadd.f32 %v7315_v30, %v3708_v59  ;;  %v3746_v29 = vadd.f32 %v7315_v30, %v3707_v48  ;;  %v3730_v9 = vadd.f32 %v7315_v30, %v3691_v56  ;;  %v7782_v59 = vld [vmem:[#allocation39_spill] sm:$0xff] }
 0x2ef   : > { %v3663_v42 = vpop.f32.mrf.mxu0  ;;  %v3703_v15 = vadd.f32 %v7766_v18, %v3432_v46  ;;  %v3743_v39 = vadd.f32 %v7315_v30, %v3704_v55  ;;  %v3723_v56 = vadd.f32 %v7315_v30, %v7785_v33  ;;  %v3761_v46 = vld [vmem:[%s7477_s5 + $0x40] sm:$0xff]  ;;  %v3763_v55 = vld [vmem:[%s7477_s5 + $0x50] sm:$0xff] }
 0x2f0   : > { %v3710_v27 = vadd.f32 %v3663_v42, %v3439_v17  ;;  %v3750_v53 = vadd.f32 %v7315_v30, %v3711_v28  ;;  %v7772_v28 = vld [vmem:[#allocation32_spill] sm:$0xff] }
 0x2f1   : > { %v5056_v35 = vpop.f32.mrf.mxu0 }
 0x2f2   : > { %v3713_v16 = vadd.f32 %v5056_v35, %v3442_v34  ;;  %v3695_v35 = vadd.f32 %v5029_v7, %v3424_v0  ;;  %v3736_v34 = vadd.f32 %v7315_v30, %v3697_v44  ;;  %v3749_v42 = vadd.f32 %v7315_v30, %v3710_v27  ;;  %v7765_v7 = vld [vmem:[#allocation31_spill] sm:$0xff] }
 0x2f3   : > { %v3673_v37 = vpop.f32.mrf.mxu0  ;;  %v3705_v44 = vadd.f32 %v7760_v49, %v3434_v54  ;;  %v3431_v11 = vadd.f32 %v7765_v7, %v7764_v51  ;;  %v3726_v27 = vadd.f32 %v7315_v30, %v7775_v31  ;;  %v7786_v54 = vld [vmem:[#allocation36_spill] sm:$0xff]  ;;  %v3756_v49 = vld [vmem:[%s7477_s5 + $0x18] sm:$0xff] }
 0x2f4   : > { %v3752_v25 = vadd.f32 %v7315_v30, %v3713_v16  ;;  %v3712_v40 = vadd.f32 %v3673_v37, %v3441_v14  ;;  %v3734_v5 = vadd.f32 %v7315_v30, %v3695_v35  ;;  %v3430_v14 = vadd.f32 %v7769_v63, %v7768_v21  ;;  %v7770_v16 = vld [vmem:[#allocation17_spill] sm:$0xff]  ;;  %v7771_v37 = vld [vmem:[#allocation27_spill] sm:$0xff]  ;;  %v3767_v7 = vld [vmem:[%s7477_s5 + $0x70] sm:$0xff] }
 0x2f5   : > { %v3744_v57 = vadd.f32 %v7315_v30, %v3705_v44  ;;  %v3702_v0 = vadd.f32 %v7770_v16, %v3431_v11  ;;  %v3727_v17 = vadd.f32 %v7315_v30, %v7771_v37  ;;  %v3722_v47 = vadd.f32 %v7315_v30, %v7786_v54  ;;  %v3755_v44 = vld [vmem:[%s7477_s5 + $0x10] sm:$0xff]  ;;  %v3768_v51 = vld [vmem:[%s7477_s5 + $0x78] sm:$0xff] }
 0x2f6   : > { %v3751_v36 = vadd.f32 %v7315_v30, %v3712_v40  ;;  %4551 = vmatprep.subr.mxu1 %v3752_v25  ;;  %v7773_v25 = vld [vmem:[#allocation7_spill] sm:$0xff]  ;;  %v3701_v35 = vadd.f32 %v7774_v26, %v3430_v14 }
 0x2f7   : > { %4552 = vmatpush3.msra.mxu1 %v3736_v34  ;;  %v3429_v40 = vadd.f32 %v7773_v25, %v7772_v28  ;;  %v3742_v34 = vadd.f32 %v7315_v30, %v3703_v15  ;;  %v3741_v8 = vadd.f32 %v7315_v30, %v3702_v0 }
 0x2f8   : > { %4553 = vmatprep.subr.mxu1 %v3751_v36  ;;  %v7776_v36 = vld [vmem:[#allocation28_spill] sm:$0xff]  ;;  %v3740_v20 = vadd.f32 %v7315_v30, %v3701_v35 }
 0x2f9   : > { %4554 = vmatpush3.msra.mxu1 %v3735_v3  ;;  %v3428_v61 = vadd.f32 %v7777_v19, %v7776_v36  ;;  %v7778_v3 = vld [vmem:[#allocation13_spill] sm:$0xff] }
 0x2fa   : > { %4555 = vmatprep.subr.mxu1 %v3750_v53  ;;  %v3700_v13 = vadd.f32 %v7778_v3, %v3429_v40  ;;  %v7779_v53 = vld [vmem:[#allocation23_spill] sm:$0xff] }
 0x2fb   : > { %4556 = vmatpush3.msra.mxu1 %v3734_v5  ;;  %v3725_v6 = vadd.f32 %v7315_v30, %v7779_v53  ;;  %v7781_v5 = vld [vmem:[#allocation37_spill] sm:$0xff] }
 0x2fc   : > { %4557 = vmatprep.subr.mxu1 %v3749_v42  ;;  %v3427_v10 = vadd.f32 %v7781_v5, %v7780_v41  ;;  %v3699_v42 = vadd.f32 %v7782_v59, %v3428_v61 }
 0x2fd   : > { %4558 = vmatpush3.msra.mxu1 %v3733_v22  ;;  %v3724_v22 = vadd.f32 %v7315_v30, %v7783_v23 }
 0x2fe   : > { %4559 = vmatprep.subr.mxu1 %v3748_v1  ;;  %v3698_v48 = vadd.f32 %v7784_v50, %v3427_v10  ;;  %v3739_v1 = vadd.f32 %v7315_v30, %v3700_v13 }
 0x2ff   : > { %4560 = vmatpush3.msra.mxu1 %v3732_v60  ;;  %v3738_v60 = vadd.f32 %v7315_v30, %v3699_v42 }
 0x300   : > { %4561 = vmatprep.subr.mxu1 %v3747_v45  ;;  %v3737_v45 = vadd.f32 %v7315_v30, %v3698_v48 }
 0x301   : > { %4562 = vmatpush3.msra.mxu1 %v3731_v58  ;;  %v3721_v58 = vadd.f32 %v7315_v30, %v7787_v12  ;;  %v3758_v30 = vld [vmem:[%s7477_s5 + $0x28] sm:$0xff] }
 0x302   : > { %4563 = vmatprep.subr.mxu1 %v3746_v29  ;;  %v3757_v29 = vld [vmem:[%s7477_s5 + $0x20] sm:$0xff] }
 0x303   : > { %4564 = vmatpush3.msra.mxu1 %v3730_v9  ;;  %v3760_v9 = vld [vmem:[%s7477_s5 + $0x38] sm:$0xff] }
 0x304   : > { %4565 = vmatprep.subr.mxu1 %v3745_v2  ;;  %v3766_v2 = vld [vmem:[%s7477_s5 + $0x68] sm:$0xff] }
 0x305   : > { %4566 = vmatpush3.msra.mxu1 %v3729_v24  ;;  %v3765_v24 = vld [vmem:[%s7477_s5 + $0x60] sm:$0xff] }
 0x306   : > { %4567 = vmatprep.subr.mxu1 %v3744_v57 }
 0x307   : > { %4568 = vmatpush3.msra.mxu1 %v3728_v32 }
 0x308   : > { %4569 = vmatprep.subr.mxu1 %v3743_v39 }
 0x309   : > { %4570 = vmatpush3.msra.mxu1 %v3727_v17 }
 0x30a   : > { %4571 = vmatprep.subr.mxu1 %v3742_v34 }
 0x30b   : > { %4572 = vmatpush3.msra.mxu1 %v3726_v27 }
 0x30c   : > { %4573 = vmatprep.subr.mxu1 %v3741_v8 }
 0x30d   : > { %4574 = vmatpush3.msra.mxu1 %v3725_v6 }
 0x30e   : > { %4575 = vmatprep.subr.mxu1 %v3740_v20 }
 0x30f   : > { %4576 = vmatpush3.msra.mxu1 %v3724_v22 }
 0x310   : > { %4577 = vmatprep.subr.mxu1 %v3739_v1 }
 0x311   : > { %4578 = vmatpush3.msra.mxu1 %v3723_v56 }
 0x312   : > { %4579 = vmatprep.subr.mxu1 %v3738_v60 }
 0x313   : > { %4580 = vmatpush3.msra.mxu1 %v3722_v47 }
 0x314   : > { %4581 = vmatprep.subr.mxu1 %v3737_v45 }
 0x315   : > { %4582 = vmatpush3.msra.mxu1 %v3721_v58 }
 0x316   : > { %3834 = vmatmul.mubr.f32.vlgmr.msra.gmra.mxu1 %v3753_v43 }
 0x317   : > { %3838 = vmatprep.mubr.f32.mxu1 %v3756_v49 }
 0x31a   : > { %3839 = vmatmul.mubr.f32.gmra.mxu1 %v3755_v44 }
 0x31b   : > { %3843 = vmatprep.mubr.f32.mxu1 %v3758_v30 }
 0x31e   : > { %3844 = vmatmul.mubr.f32.gmra.mxu1 %v3757_v29 }
 0x31f   : > { %3848 = vmatprep.mubr.f32.mxu1 %v3760_v9 }
 0x322   : > { %3849 = vmatmul.mubr.f32.gmra.mxu1 %v3759_v52 }
 0x323   : > { %3853 = vmatprep.mubr.f32.mxu1 %v3762_v38 }
 0x326   : > { %3854 = vmatmul.mubr.f32.gmra.mxu1 %v3761_v46 }
 0x327   : > { %3858 = vmatprep.mubr.f32.mxu1 %v3764_v4 }
 0x32a   : > { %3859 = vmatmul.mubr.f32.gmra.mxu1 %v3763_v55 }
 0x32b   : > { %3863 = vmatprep.mubr.f32.mxu1 %v3766_v2 }
 0x32e   : > { %3864 = vmatmul.mubr.f32.gmra.mxu1 %v3765_v24 }
 0x32f   : > { %3868 = vmatprep.mubr.f32.mxu1 %v3768_v51 }
 0x332   : > { %3869 = vmatmul.mubr.f32.gmra.mxu1 %v3767_v7 }
 0x3d6   : > { %v4583_v11 = vpop.f32.mrf.mxu1 }
 0x3d8   : > { %v4584_v18 = vpop.f32.mrf.mxu1 }
 0x3d9   : > { %v4585_v15 = vadd.f32 %v4584_v18, %v4583_v11 }
 0x3da   : > { %v4586_v57 = vpop.f32.mrf.mxu1 }
 0x3db   : > { %3874 = vst.msk [vmem:[%s7451_s18] sm:$0xff] %vm467_vm2, %v4585_v15 }
 0x3dc   : > { %v4587_v62 = vpop.f32.mrf.mxu1 }
 0x3dd   : > { %v4588_v32 = vadd.f32 %v4587_v62, %v4586_v57 }
 0x3de   : > { %v4589_v21 = vpop.f32.mrf.mxu1 }
 0x3df   : > { %3875 = vst.msk [vmem:[%s7451_s18 + $0x8] sm:$0xff] %vm467_vm2, %v4588_v32 }
 0x3e0   : > { %v4590_v63 = vpop.f32.mrf.mxu1 }
 0x3e1   : > { %v4591_v14 = vadd.f32 %v4590_v63, %v4589_v21 }
 0x3e2   : > { %v4592_v16 = vpop.f32.mrf.mxu1 }
 0x3e3   : > { %3876 = vst.msk [vmem:[%s7451_s18 + $0x10] sm:$0xff] %vm467_vm2, %v4591_v14 }
 0x3e4   : > { %v4593_v0 = vpop.f32.mrf.mxu1 }
 0x3e5   : > { %v4594_v39 = vadd.f32 %v4593_v0, %v4592_v16 }
 0x3e6   : > { %v4595_v37 = vpop.f32.mrf.mxu1 }
 0x3e7   : > { %3877 = vst.msk [vmem:[%s7451_s18 + $0x18] sm:$0xff] %vm467_vm2, %v4594_v39 }
 0x3e8   : > { %v4596_v17 = vpop.f32.mrf.mxu1 }
 0x3e9   : > { %v4597_v28 = vadd.f32 %v4596_v17, %v4595_v37 }
 0x3ea   : > { %v4598_v25 = vpop.f32.mrf.mxu1 }
 0x3eb   : > { %3878 = vst.msk [vmem:[%s7451_s18 + $0x20] sm:$0xff] %vm467_vm2, %v4597_v28 }
 0x3ec   : > { %v4599_v40 = vpop.f32.mrf.mxu1 }
 0x3ed   : > { %v4600_v26 = vadd.f32 %v4599_v40, %v4598_v25 }
 0x3ee   : > { %v4601_v35 = vpop.f32.mrf.mxu1 }
 0x3ef   : > { %3879 = vst.msk [vmem:[%s7451_s18 + $0x28] sm:$0xff] %vm467_vm2, %v4600_v26 }
 0x3f0   : > { %v4602_v34 = vpop.f32.mrf.mxu1 }
 0x3f1   : > { %v4603_v31 = vadd.f32 %v4602_v34, %v4601_v35 }
 0x3f2   : > { %v4604_v27 = vpop.f32.mrf.mxu1 }
 0x3f3   : > { %3880 = vst.msk [vmem:[%s7451_s18 + $0x30] sm:$0xff] %vm467_vm2, %v4603_v31 }
 0x3f4   : > { %v4605_v36 = vpop.f32.mrf.mxu1 }
 0x3f5   : > { %v4606_v19 = vadd.f32 %v4605_v36, %v4604_v27 }
 0x3f7   : > { %3881 = vst.msk [vmem:[%s7451_s18 + $0x38] sm:$0xff] %vm467_vm2, %v4606_v19 }
 0x3f8 PF: > { %s16_s21 = sadd.s32 1, %s5101_s21  }
 0x3f9   : > { %p13_p4 = scmp.ge.s32.totalorder %s16_s21, 4  }
 0x3fb   :  { %15 = sbr.rel (!%p13_p4) target bundleno = 1 (0x1), region = 82 }

</bundles_post_ra>
